<compile_context>
chip_gen: v5e
topology: v5e:2x2
jax: 0.10.0
libtpu: 0.0.40
codegen_flags: <defaults>
</compile_context>

<pallas_src>
import functools
import math

import jax
import jax.numpy as jnp
from jax.experimental import pallas as pl
from jax.experimental.pallas import tpu as pltpu

LN_EPS = 1e-12


# --------------------------------------------------------------- per-chip cfg

def _tpu_generation():
    """Best-effort TPU generation from device_kind; 0 if unknown."""
    try:
        kind = jax.devices()[0].device_kind.lower()
    except Exception:
        return 0
    for gen in (7, 6, 5, 4):
        if f"v{gen}" in kind or f"tpu{gen}" in kind:
            return gen
    return 0


_GEN = _tpu_generation()
if _GEN in (5, 6):
    # v5e / v6e: 128 MiB physical VMEM -> raise the scoped limit, grow tiles.
    VMEM_LIMIT_BYTES = 96 * 1024 * 1024
    _TM_TGT, _TN_TGT, _TK_TGT = 512, 512, 512
else:
    # v7x (64 MiB VMEM) and unknown chips: conservative limit and tiles.
    VMEM_LIMIT_BYTES = 32 * 1024 * 1024
    _TM_TGT, _TN_TGT, _TK_TGT = 256, 256, 512


# ------------------------------------------------------------------ helpers

def _tile(dim, target, multiple):
    """Largest t <= target with dim % t == 0 and t % multiple == 0, else dim.

    Returning `dim` (the full axis) is always BlockSpec-legal; otherwise the
    returned tile satisfies the (8, 128) divisibility requirement via
    `multiple` and divides `dim` exactly (no ragged last tile)."""
    t = min(target, dim)
    t -= t % multiple
    while t >= multiple:
        if dim % t == 0:
            return t
        t -= multiple
    return dim


def _cparams(sem):
    return pltpu.CompilerParams(dimension_semantics=sem,
                                vmem_limit_bytes=VMEM_LIMIT_BYTES)


def _layernorm_f32(h, gamma, beta):
    mean = jnp.mean(h, axis=-1, keepdims=True)
    var = jnp.mean(jnp.square(h - mean), axis=-1, keepdims=True)
    y = (h - mean) * jax.lax.rsqrt(var + LN_EPS)
    return y * gamma.astype(jnp.float32) + beta.astype(jnp.float32)


# ------------------------------------------------------------------ kernels

def embed_ln_kernel(x_ref, pos_ref, tok_ref, g_ref, b_ref, o_ref):
    # x/tok: (1, ts, H); pos: (ts, H) broadcast over batch; g/b: (1, H)
    h = (x_ref[...].astype(jnp.float32)
         + pos_ref[...][None].astype(jnp.float32)
         + tok_ref[...].astype(jnp.float32))
    o_ref[...] = _layernorm_f32(h, g_ref[...], b_ref[...]).astype(o_ref.dtype)


def linear_kernel(x_ref, w_ref, b_ref, o_ref, acc_ref, *, activation):
    # grid (M/tm, N/tn, K/tk); x: (tm, tk); w: (tk, tn); b: (1, tn); acc f32.
    k_i = pl.program_id(2)

    @pl.when(k_i == 0)
    def _():
        acc_ref[...] = jnp.zeros_like(acc_ref)

    acc_ref[...] += jnp.dot(x_ref[...], w_ref[...],
                            preferred_element_type=jnp.float32)

    @pl.when(k_i == pl.num_programs(2) - 1)
    def _():
        y = acc_ref[...] + b_ref[...].astype(jnp.float32)
        if activation == "gelu":  # exact (erf) GELU, as in BERT
            y = 0.5 * y * (1.0 + jax.lax.erf(y * (1.0 / math.sqrt(2.0))))
        o_ref[...] = y.astype(o_ref.dtype)


def linear_res_ln_kernel(x_ref, w_ref, b_ref, res_ref, g_ref, beta_ref,
                         o_ref, acc_ref):
    # grid (M/tm, K/tk); N (= hidden) is kept whole so LayerNorm can finalize
    # in-kernel: out = LN(x @ w + b + residual) * gamma + beta.
    k_i = pl.program_id(1)

    @pl.when(k_i == 0)
    def _():
        acc_ref[...] = jnp.zeros_like(acc_ref)

    acc_ref[...] += jnp.dot(x_ref[...], w_ref[...],
                            preferred_element_type=jnp.float32)

    @pl.when(k_i == pl.num_programs(1) - 1)
    def _():
        h = (acc_ref[...] + b_ref[...].astype(jnp.float32)
             + res_ref[...].astype(jnp.float32))
        o_ref[...] = _layernorm_f32(h, g_ref[...], beta_ref[...]).astype(o_ref.dtype)


def attention_kernel(q_ref, k_ref, v_ref, mask_ref, o_ref, *, scale):
    # Single-pass softmax attention: the whole key/value row fits in VMEM for
    # BERT-length sequences (S <= 512), so no online-softmax carry / scratch.
    #   q_ref:       (1, tq, 1, nH, dH)  query tile, all heads, native dtype
    #   k_ref/v_ref: (1, S,  1, nH, dH)  full key/value row, all heads
    #   mask_ref:    (1, 1, S)           additive mask (-10000 on padded keys)
    #   o_ref:       (1, tq, H)          lane-dense context output (H = nH*dH)
    _, tq, _, n_heads, d_head = q_ref.shape
    s_len = k_ref.shape[1]

    # Fold 1/sqrt(dH) into Q (nH*tq*dH muls, cheaper than scaling the scores);
    # operands stay in their native dtype for full-rate MXU, accumulate in f32.
    q = q_ref[...].reshape(tq, n_heads, d_head) * scale
    k = k_ref[...].reshape(s_len, n_heads, d_head)
    v = v_ref[...].reshape(s_len, n_heads, d_head)

    s = jnp.einsum("qhd,khd->hqk", q, k,
                   preferred_element_type=jnp.float32)          # (nH, tq, S)
    s = s + mask_ref[...].astype(jnp.float32)                   # (1,1,S) bcast

    m = jnp.max(s, axis=-1, keepdims=True)
    p = jnp.exp(s - m)
    l = jnp.sum(p, axis=-1, keepdims=True)
    p = p * (1.0 / l)                                            # exact softmax

    ctx = jnp.einsum("hqk,khd->qhd", p.astype(v.dtype), v,
                     preferred_element_type=jnp.float32)         # (tq, nH, dH)
    # Plain reshape -> lane-dense (tq, H) store (H is a multiple of 128 for
    # real BERT); no swapaxes transpose, no masked dH-wide writebacks.
    o_ref[...] = ctx.reshape(1, tq, n_heads * d_head).astype(o_ref.dtype)


# ------------------------------------------------------------------ wrappers

def embed_layernorm(x, pos, tok, gamma, beta):
    B, S, H = x.shape
    ts = _tile(S, 256, 8)
    grid = (B, S // ts)
    return pl.pallas_call(
        embed_ln_kernel,
        out_shape=jax.ShapeDtypeStruct((B, S, H), x.dtype),
        grid_spec=pltpu.PrefetchScalarGridSpec(
            num_scalar_prefetch=0,
            grid=grid,
            in_specs=[
                pl.BlockSpec((1, ts, H), lambda b, si: (b, si, 0)),
                pl.BlockSpec((ts, H), lambda b, si: (si, 0)),
                pl.BlockSpec((1, ts, H), lambda b, si: (b, si, 0)),
                pl.BlockSpec((1, H), lambda b, si: (0, 0)),
                pl.BlockSpec((1, H), lambda b, si: (0, 0)),
            ],
            out_specs=pl.BlockSpec((1, ts, H), lambda b, si: (b, si, 0))),
        compiler_params=_cparams(("parallel", "parallel")),
    )(x, pos, tok, gamma, beta)


def linear(x, w, b, activation=None):
    M, K = x.shape
    N = w.shape[1]
    tm = _tile(M, _TM_TGT, 8)
    tn = _tile(N, _TN_TGT, 128)
    tk = _tile(K, _TK_TGT, 128)
    grid = (M // tm, N // tn, K // tk)
    esize = jnp.dtype(x.dtype).itemsize
    cost = pl.CostEstimate(
        flops=2 * M * N * K,
        transcendentals=(M * N) if activation == "gelu" else 0,
        bytes_accessed=esize * ((N // tn) * M * K + (M // tm) * K * N
                                + N + M * N))
    return pl.pallas_call(
        functools.partial(linear_kernel, activation=activation),
        out_shape=jax.ShapeDtypeStruct((M, N), x.dtype),
        grid_spec=pltpu.PrefetchScalarGridSpec(
            num_scalar_prefetch=0,
            grid=grid,
            in_specs=[
                pl.BlockSpec((tm, tk), lambda i, j, k: (i, k)),
                pl.BlockSpec((tk, tn), lambda i, j, k: (k, j)),
                pl.BlockSpec((1, tn), lambda i, j, k: (0, j)),
            ],
            out_specs=pl.BlockSpec((tm, tn), lambda i, j, k: (i, j)),
            scratch_shapes=[pltpu.VMEM((tm, tn), jnp.float32)]),
        compiler_params=_cparams(("parallel", "parallel", "arbitrary")),
        cost_estimate=cost,
    )(x, w, b)


def linear_residual_layernorm(x, w, b, residual, gamma, beta):
    M, K = x.shape
    N = w.shape[1]  # full feature dim stays resident for the fused LayerNorm
    tm = _tile(M, _TM_TGT, 8)
    tk = _tile(K, _TK_TGT, 128)
    grid = (M // tm, K // tk)
    esize = jnp.dtype(x.dtype).itemsize
    cost = pl.CostEstimate(
        flops=2 * M * N * K + 10 * M * N,
        transcendentals=M,  # rsqrt per row
        bytes_accessed=esize * (M * K + (M // tm) * K * N + 3 * N + 2 * M * N))
    return pl.pallas_call(
        linear_res_ln_kernel,
        out_shape=jax.ShapeDtypeStruct((M, N), x.dtype),
        grid_spec=pltpu.PrefetchScalarGridSpec(
            num_scalar_prefetch=0,
            grid=grid,
            in_specs=[
                pl.BlockSpec((tm, tk), lambda i, k: (i, k)),
                pl.BlockSpec((tk, N), lambda i, k: (k, 0)),
                pl.BlockSpec((1, N), lambda i, k: (0, 0)),
                pl.BlockSpec((tm, N), lambda i, k: (i, 0)),
                pl.BlockSpec((1, N), lambda i, k: (0, 0)),
                pl.BlockSpec((1, N), lambda i, k: (0, 0)),
            ],
            out_specs=pl.BlockSpec((tm, N), lambda i, k: (i, 0)),
            scratch_shapes=[pltpu.VMEM((tm, N), jnp.float32)]),
        compiler_params=_cparams(("parallel", "arbitrary")),
        cost_estimate=cost,
    )(x, w, b, residual, gamma, beta)


def attention(qkv5, add_mask, out_dtype):
    # qkv5: (B, S, 3, nH, dH) fused projection output; add_mask: (B, 1, S)
    B, S, _, nH, dH = qkv5.shape
    H = nH * dH
    tq = _tile(S, 128, 8)
    grid = (B, S // tq)
    kern = functools.partial(attention_kernel, scale=1.0 / math.sqrt(dH))
    esize = jnp.dtype(qkv5.dtype).itemsize
    cost = pl.CostEstimate(
        flops=4 * B * S * S * H,
        transcendentals=B * nH * S * S,
        bytes_accessed=esize * (B * S * 3 * H                 # q read once
                                + (S // tq) * B * 2 * S * H   # k/v per q tile
                                + B * S * H) + 4 * B * S)
    return pl.pallas_call(
        kern,
        out_shape=jax.ShapeDtypeStruct((B, S, H), out_dtype),
        grid_spec=pltpu.PrefetchScalarGridSpec(
            num_scalar_prefetch=0,
            grid=grid,
            in_specs=[
                pl.BlockSpec((1, tq, 1, nH, dH), lambda b, qi: (b, qi, 0, 0, 0)),
                pl.BlockSpec((1, S, 1, nH, dH), lambda b, qi: (b, 0, 1, 0, 0)),
                pl.BlockSpec((1, S, 1, nH, dH), lambda b, qi: (b, 0, 2, 0, 0)),
                pl.BlockSpec((1, 1, S), lambda b, qi: (b, 0, 0)),
            ],
            out_specs=pl.BlockSpec((1, tq, H), lambda b, qi: (b, qi, 0))),
        compiler_params=_cparams(("parallel", "parallel")),
        cost_estimate=cost,
    )(qkv5, qkv5, qkv5, add_mask)


# ------------------------------------------------------------------ model

class Config:
    hidden_size = 32
    num_attention_heads = 2
    intermediate_size = 64
    num_hidden_layers = 2
    max_position_embeddings = 16
    type_vocab_size = 2
    initializer_range = 0.02


def init_params(cfg, key, dtype=jnp.float32):
    # Pass dtype=jnp.bfloat16 (and bf16 inputs_embeds) to halve HBM traffic;
    # all kernels accumulate in f32 and do LayerNorm math in f32 regardless.
    H, I = cfg.hidden_size, cfg.intermediate_size
    keys = iter(jax.random.split(key, 8 * cfg.num_hidden_layers + 8))

    def normal(shape):
        return (cfg.initializer_range *
                jax.random.normal(next(keys), shape, jnp.float32)).astype(dtype)

    params = {
        "pos_emb": normal((cfg.max_position_embeddings, H)),
        "tok_emb": normal((cfg.type_vocab_size, H)),
        "emb_ln_g": jnp.ones((1, H), dtype),
        "emb_ln_b": jnp.zeros((1, H), dtype),
        "layers": [],
    }
    for _ in range(cfg.num_hidden_layers):
        params["layers"].append({
            # fused [Q | K | V] projection weights: (H, 3H)
            "qkv_w": jnp.concatenate([normal((H, H)) for _ in range(3)], axis=1),
            "qkv_b": jnp.zeros((1, 3 * H), dtype),
            "ao_w": normal((H, H)), "ao_b": jnp.zeros((1, H), dtype),
            "attn_ln_g": jnp.ones((1, H), dtype),
            "attn_ln_b": jnp.zeros((1, H), dtype),
            "i_w": normal((H, I)), "i_b": jnp.zeros((1, I), dtype),
            "o_w": normal((I, H)), "o_b": jnp.zeros((1, H), dtype),
            "ffn_ln_g": jnp.ones((1, H), dtype),
            "ffn_ln_b": jnp.zeros((1, H), dtype),
        })
    return params


def fuse_bert_forward(params, cfg, inputs_embeds, attention_mask, token_type_ids):
    B, S, H = inputs_embeds.shape
    nH = cfg.num_attention_heads
    dH = H // nH
    dtype = inputs_embeds.dtype
    M = B * S

    # get_extended_attention_mask -> additive (B, 1, S) mask; never broadcast
    # to (B*nH, S, S) in HBM (broadcast happens inside the attention kernel).
    add_mask = ((1.0 - attention_mask.astype(jnp.float32)) * -10000.0
                ).reshape(B, 1, S)

    # embeddings: token-type gather in glue (tiny); pos_emb passed as (S, H)
    # and broadcast over the batch inside the kernel.
    pos = params["pos_emb"][:S].astype(dtype)                  # (S, H)
    tok = params["tok_emb"][token_type_ids].astype(dtype)      # (B, S, H)
    hidden = embed_layernorm(inputs_embeds, pos, tok,
                             params["emb_ln_g"], params["emb_ln_b"])
    hidden2d = hidden.reshape(M, H)

    for layer in params["layers"]:
        x2d = hidden2d

        # fused Q/K/V projection: one (M, H) @ (H, 3H) matmul
        qkv = linear(x2d, layer["qkv_w"], layer["qkv_b"])       # (M, 3H)
        qkv5 = qkv.reshape(B, S, 3, nH, dH)                     # free reshape

        ctx = attention(qkv5, add_mask, dtype)                  # (B, S, H)
        ctx2d = ctx.reshape(M, H)                               # free reshape

        # attention output projection + residual + LayerNorm (fused)
        hidden2d = linear_residual_layernorm(
            ctx2d, layer["ao_w"], layer["ao_b"], x2d,
            layer["attn_ln_g"], layer["attn_ln_b"])

        # FFN: intermediate (GELU fused), then output proj + residual + LN
        inter = linear(hidden2d, layer["i_w"], layer["i_b"], activation="gelu")
        hidden2d = linear_residual_layernorm(
            inter, layer["o_w"], layer["o_b"], hidden2d,
            layer["ffn_ln_g"], layer["ffn_ln_b"])

    return hidden2d.reshape(B, S, H)


# ------------------------------------------------------- pure-JAX reference

def reference_forward(params, cfg, inputs_embeds, attention_mask, token_type_ids):
    """Non-Pallas reference (f32, HIGHEST matmul precision) for validation."""
    B, S, H = inputs_embeds.shape
    nH = cfg.num_attention_heads
    dH = H // nH
    hi = jax.lax.Precision.HIGHEST
    f32 = jnp.float32

    def ln(h, g, b):
        mean = jnp.mean(h, -1, keepdims=True)
        var = jnp.mean(jnp.square(h - mean), -1, keepdims=True)
        return (h - mean) * jax.lax.rsqrt(var + LN_EPS) * g.astype(f32) + b.astype(f32)

    mask = (1.0 - attention_mask.astype(f32)) * -10000.0          # (B, S)
    pos = params["pos_emb"][:S].astype(f32)
    tok = params["tok_emb"][token_type_ids].astype(f32)
    h = ln(inputs_embeds.astype(f32) + pos[None] + tok,
           params["emb_ln_g"], params["emb_ln_b"])

    for layer in params["layers"]:
        x = h
        qkv = (jnp.einsum("bsh,hk->bsk", x, layer["qkv_w"].astype(f32), precision=hi)
               + layer["qkv_b"].astype(f32))
        qkv = qkv.reshape(B, S, 3, nH, dH)
        q = qkv[:, :, 0] * (1.0 / math.sqrt(dH))
        k = qkv[:, :, 1]
        v = qkv[:, :, 2]
        s = jnp.einsum("bqhd,bkhd->bhqk", q, k, precision=hi) + mask[:, None, None, :]
        p = jax.nn.softmax(s, axis=-1)
        ctx = jnp.einsum("bhqk,bkhd->bqhd", p, v, precision=hi).reshape(B, S, H)
        a = (jnp.einsum("bsh,hk->bsk", ctx, layer["ao_w"].astype(f32), precision=hi)
             + layer["ao_b"].astype(f32))
        h = ln(a + x, layer["attn_ln_g"], layer["attn_ln_b"])
        i = (jnp.einsum("bsh,hk->bsk", h, layer["i_w"].astype(f32), precision=hi)
             + layer["i_b"].astype(f32))
        i = 0.5 * i * (1.0 + jax.lax.erf(i * (1.0 / math.sqrt(2.0))))
        o = (jnp.einsum("bsk,kh->bsh", i, layer["o_w"].astype(f32), precision=hi)
             + layer["o_b"].astype(f32))
        h = ln(o + h, layer["ffn_ln_g"], layer["ffn_ln_b"])
    return h


# ------------------------------------------------------------------ main

if __name__ == "__main__":
    cfg = Config()
    key = jax.random.PRNGKey(0)
    pkey, xkey, tkey = jax.random.split(key, 3)

    params = init_params(cfg, pkey)

    B, S, H = 2, 8, cfg.hidden_size
    inputs_embeds = jax.random.normal(xkey, (B, S, H), jnp.float32)
    attention_mask = jnp.ones((B, S), jnp.float32).at[1, 6:].set(0.0)
    token_type_ids = jax.random.randint(tkey, (B, S), 0, cfg.type_vocab_size)

    fwd = jax.jit(fuse_bert_forward, static_argnums=(1,))
    out = fwd(params, cfg, inputs_embeds, attention_mask, token_type_ids)
    jax.block_until_ready(out)
    assert out.shape == (B, S, H)

    ref = reference_forward(params, cfg, inputs_embeds, attention_mask,
                            token_type_ids)
    err = float(jnp.max(jnp.abs(out.astype(jnp.float32) - ref)))
    assert err < 2e-3, f"mismatch vs pure-JAX reference: max abs err = {err}"

    print("KERNEL_OK")
</pallas_src>

<mosaic_0001>
module attributes {stable_mosaic.version = 11 : i64} {
  func.func @embed_ln_kernel(%arg0: i32, %arg1: i32, %arg2: memref<1x8x32xf32, #tpu.memory_space<vmem>>, %arg3: memref<8x32xf32, #tpu.memory_space<vmem>>, %arg4: memref<1x8x32xf32, #tpu.memory_space<vmem>>, %arg5: memref<1x32xf32, #tpu.memory_space<vmem>>, %arg6: memref<1x32xf32, #tpu.memory_space<vmem>>, %arg7: memref<1x8x32xf32, #tpu.memory_space<vmem>>) attributes {dimension_semantics = [#tpu.dimension_semantics<parallel>, #tpu.dimension_semantics<parallel>], iteration_bounds = array<i64: 2, 1>, scalar_prefetch = 0 : i64, scratch_operands = 0 : i64, tpu.core_type = #tpu.core_type<tc>, window_params = [{transform_indices = @transform_0, window_bounds = array<i64: 1, 8, 32>}, {transform_indices = @transform_1, window_bounds = array<i64: 8, 32>}, {transform_indices = @transform_2, window_bounds = array<i64: 1, 8, 32>}, {pipeline_mode = #tpu.pipeline_mode<synchronous>, transform_indices = @transform_3, window_bounds = array<i64: 1, 32>}, {pipeline_mode = #tpu.pipeline_mode<synchronous>, transform_indices = @transform_4, window_bounds = array<i64: 1, 32>}, {transform_indices = @transform_5, window_bounds = array<i64: 1, 8, 32>}]} {
    %c0 = arith.constant 0 : index
    %c0_0 = arith.constant 0 : index
    %c0_1 = arith.constant 0 : index
    %0 = vector.load %arg2[%c0, %c0_0, %c0_1] : memref<1x8x32xf32, #tpu.memory_space<vmem>>, vector<1x8x32xf32>
    %c0_2 = arith.constant 0 : index
    %c0_3 = arith.constant 0 : index
    %1 = vector.load %arg3[%c0_2, %c0_3] : memref<8x32xf32, #tpu.memory_space<vmem>>, vector<8x32xf32>
    %2 = vector.shape_cast %1 : vector<8x32xf32> to vector<1x8x32xf32>
    %3 = arith.addf %0, %2 : vector<1x8x32xf32>
    %c0_4 = arith.constant 0 : index
    %c0_5 = arith.constant 0 : index
    %c0_6 = arith.constant 0 : index
    %4 = vector.load %arg4[%c0_4, %c0_5, %c0_6] : memref<1x8x32xf32, #tpu.memory_space<vmem>>, vector<1x8x32xf32>
    %5 = arith.addf %3, %4 : vector<1x8x32xf32>
    %c0_7 = arith.constant 0 : index
    %c0_8 = arith.constant 0 : index
    %6 = vector.load %arg5[%c0_7, %c0_8] : memref<1x32xf32, #tpu.memory_space<vmem>>, vector<1x32xf32>
    %c0_9 = arith.constant 0 : index
    %c0_10 = arith.constant 0 : index
    %7 = vector.load %arg6[%c0_9, %c0_10] : memref<1x32xf32, #tpu.memory_space<vmem>>, vector<1x32xf32>
    %cst = arith.constant dense<0.000000e+00> : vector<1x8xf32>
    %8 = vector.multi_reduction <add>, %5, %cst [2] : vector<1x8x32xf32> to vector<1x8xf32>
    %9 = vector.shape_cast %8 : vector<1x8xf32> to vector<1x8x1xf32>
    %cst_11 = arith.constant 3.200000e+01 : f32
    %10 = vector.broadcast %cst_11 : f32 to vector<1x8x1xf32>
    %11 = arith.divf %9, %10 : vector<1x8x1xf32>
    %12 = vector.broadcast %11 : vector<1x8x1xf32> to vector<1x8x32xf32>
    %13 = arith.subf %5, %12 : vector<1x8x32xf32>
    %14 = arith.mulf %13, %13 : vector<1x8x32xf32>
    %cst_12 = arith.constant dense<0.000000e+00> : vector<1x8xf32>
    %15 = vector.multi_reduction <add>, %14, %cst_12 [2] : vector<1x8x32xf32> to vector<1x8xf32>
    %16 = vector.shape_cast %15 : vector<1x8xf32> to vector<1x8x1xf32>
    %cst_13 = arith.constant 3.200000e+01 : f32
    %17 = vector.broadcast %cst_13 : f32 to vector<1x8x1xf32>
    %18 = arith.divf %16, %17 : vector<1x8x1xf32>
    %19 = vector.broadcast %11 : vector<1x8x1xf32> to vector<1x8x32xf32>
    %20 = arith.subf %5, %19 : vector<1x8x32xf32>
    %cst_14 = arith.constant 9.99999996E-13 : f32
    %21 = vector.broadcast %cst_14 : f32 to vector<1x8x1xf32>
    %22 = arith.addf %18, %21 : vector<1x8x1xf32>
    %23 = math.rsqrt %22 : vector<1x8x1xf32>
    %24 = vector.broadcast %23 : vector<1x8x1xf32> to vector<1x8x32xf32>
    %25 = arith.mulf %20, %24 : vector<1x8x32xf32>
    %26 = vector.shape_cast %6 : vector<1x32xf32> to vector<1x1x32xf32>
    %27 = vector.broadcast %26 : vector<1x1x32xf32> to vector<1x8x32xf32>
    %28 = arith.mulf %25, %27 : vector<1x8x32xf32>
    %29 = vector.shape_cast %7 : vector<1x32xf32> to vector<1x1x32xf32>
    %30 = vector.broadcast %29 : vector<1x1x32xf32> to vector<1x8x32xf32>
    %31 = arith.addf %28, %30 : vector<1x8x32xf32>
    %c0_15 = arith.constant 0 : index
    %c0_16 = arith.constant 0 : index
    %c0_17 = arith.constant 0 : index
    %32 = vector.load %arg7[%c0_15, %c0_16, %c0_17] : memref<1x8x32xf32, #tpu.memory_space<vmem>>, vector<1x8x32xf32>
    tpu.vector_store %arg7[%c0_15, %c0_16, %c0_17], %31 {strides = array<i32>} : memref<1x8x32xf32, #tpu.memory_space<vmem>>, vector<1x8x32xf32>,
    return
  }
  func.func @transform_0(%arg0: i32, %arg1: i32) -> (i32, i32, i32) {
    %c0_i32 = arith.constant 0 : i32
    %c0_i32_0 = arith.constant 0 : i32
    return %arg0, %arg1, %c0_i32 : i32, i32, i32
  }
  func.func @transform_1(%arg0: i32, %arg1: i32) -> (i32, i32) {
    %c0_i32 = arith.constant 0 : i32
    %c0_i32_0 = arith.constant 0 : i32
    return %arg1, %c0_i32 : i32, i32
  }
  func.func @transform_2(%arg0: i32, %arg1: i32) -> (i32, i32, i32) {
    %c0_i32 = arith.constant 0 : i32
    %c0_i32_0 = arith.constant 0 : i32
    return %arg0, %arg1, %c0_i32 : i32, i32, i32
  }
  func.func @transform_3(%arg0: i32, %arg1: i32) -> (i32, i32) {
    %c0_i32 = arith.constant 0 : i32
    %c0_i32_0 = arith.constant 0 : i32
    %c0_i32_1 = arith.constant 0 : i32
    return %c0_i32, %c0_i32_0 : i32, i32
  }
  func.func @transform_4(%arg0: i32, %arg1: i32) -> (i32, i32) {
    %c0_i32 = arith.constant 0 : i32
    %c0_i32_0 = arith.constant 0 : i32
    %c0_i32_1 = arith.constant 0 : i32
    return %c0_i32, %c0_i32_0 : i32, i32
  }
  func.func @transform_5(%arg0: i32, %arg1: i32) -> (i32, i32, i32) {
    %c0_i32 = arith.constant 0 : i32
    %c0_i32_0 = arith.constant 0 : i32
    return %arg0, %arg1, %c0_i32 : i32, i32, i32
  }
}

module attributes {stable_mosaic.version = 11 : i64} {
  func.func @linear_kernel(%arg0: i32, %arg1: i32, %arg2: i32, %arg3: memref<16x32xf32, #tpu.memory_space<vmem>>, %arg4: memref<32x96xf32, #tpu.memory_space<vmem>>, %arg5: memref<1x96xf32, #tpu.memory_space<vmem>>, %arg6: memref<16x96xf32, #tpu.memory_space<vmem>>, %arg7: memref<16x96xf32, #tpu.memory_space<vmem>>) attributes {dimension_semantics = [#tpu.dimension_semantics<parallel>, #tpu.dimension_semantics<parallel>, #tpu.dimension_semantics<arbitrary>], iteration_bounds = array<i64: 1, 1, 1>, scalar_prefetch = 0 : i64, scratch_operands = 1 : i64, tpu.core_type = #tpu.core_type<tc>, window_params = [{transform_indices = @transform_0, window_bounds = array<i64: 16, 32>}, {transform_indices = @transform_1, window_bounds = array<i64: 32, 96>}, {transform_indices = @transform_2, window_bounds = array<i64: 1, 96>}, {transform_indices = @transform_3, window_bounds = array<i64: 16, 96>}]} {
    %c0_i32 = arith.constant 0 : i32
    %0 = arith.cmpi eq, %arg2, %c0_i32 : i32
    %1 = arith.extui %0 : i1 to i32
    %c0_i32_0 = arith.constant 0 : i32
    %2 = arith.cmpi ne, %1, %c0_i32_0 : i32
    scf.if %2 {
      %cst_10 = arith.constant 0.000000e+00 : f32
      %12 = vector.broadcast %cst_10 : f32 to vector<16x96xf32>
      %c0_11 = arith.constant 0 : index
      %c0_12 = arith.constant 0 : index
      %13 = vector.load %arg7[%c0_11, %c0_12] : memref<16x96xf32, #tpu.memory_space<vmem>>, vector<16x96xf32>
      tpu.vector_store %arg7[%c0_11, %c0_12], %12 {strides = array<i32>} : memref<16x96xf32, #tpu.memory_space<vmem>>, vector<16x96xf32>,
    } else {
    }
    %c0 = arith.constant 0 : index
    %c0_1 = arith.constant 0 : index
    %3 = vector.load %arg7[%c0, %c0_1] : memref<16x96xf32, #tpu.memory_space<vmem>>, vector<16x96xf32>
    %c0_2 = arith.constant 0 : index
    %c0_3 = arith.constant 0 : index
    %4 = vector.load %arg3[%c0_2, %c0_3] : memref<16x32xf32, #tpu.memory_space<vmem>>, vector<16x32xf32>
    %c0_4 = arith.constant 0 : index
    %c0_5 = arith.constant 0 : index
    %5 = vector.load %arg4[%c0_4, %c0_5] : memref<32x96xf32, #tpu.memory_space<vmem>>, vector<32x96xf32>
    %cst = arith.constant dense<0.000000e+00> : vector<16x96xf32>
    %6 = tpu.matmul %4, %5, %cst {dimension_numbers = #tpu.dot_dimension_numbers<[1], [0], [0], [1], [0, 0, 1, 1], [], []>} : vector<16x32xf32>, vector<32x96xf32>, vector<16x96xf32> -> vector<16x96xf32>
    %7 = arith.addf %3, %6 : vector<16x96xf32>
    %c0_6 = arith.constant 0 : index
    %c0_7 = arith.constant 0 : index
    %8 = vector.load %arg7[%c0_6, %c0_7] : memref<16x96xf32, #tpu.memory_space<vmem>>, vector<16x96xf32>
    tpu.vector_store %arg7[%c0_6, %c0_7], %7 {strides = array<i32>} : memref<16x96xf32, #tpu.memory_space<vmem>>, vector<16x96xf32>,
    %c0_i32_8 = arith.constant 0 : i32
    %9 = arith.cmpi eq, %arg2, %c0_i32_8 : i32
    %10 = arith.extui %9 : i1 to i32
    %c0_i32_9 = arith.constant 0 : i32
    %11 = arith.cmpi ne, %10, %c0_i32_9 : i32
    scf.if %11 {
      %c0_10 = arith.constant 0 : index
      %c0_11 = arith.constant 0 : index
      %12 = vector.load %arg7[%c0_10, %c0_11] : memref<16x96xf32, #tpu.memory_space<vmem>>, vector<16x96xf32>
      %c0_12 = arith.constant 0 : index
      %c0_13 = arith.constant 0 : index
      %13 = vector.load %arg5[%c0_12, %c0_13] : memref<1x96xf32, #tpu.memory_space<vmem>>, vector<1x96xf32>
      %14 = vector.broadcast %13 : vector<1x96xf32> to vector<16x96xf32>
      %15 = arith.addf %12, %14 : vector<16x96xf32>
      %c0_14 = arith.constant 0 : index
      %c0_15 = arith.constant 0 : index
      %16 = vector.load %arg6[%c0_14, %c0_15] : memref<16x96xf32, #tpu.memory_space<vmem>>, vector<16x96xf32>
      tpu.vector_store %arg6[%c0_14, %c0_15], %15 {strides = array<i32>} : memref<16x96xf32, #tpu.memory_space<vmem>>, vector<16x96xf32>,
    } else {
    }
    return
  }
  func.func @transform_0(%arg0: i32, %arg1: i32, %arg2: i32) -> (i32, i32) {
    %c0_i32 = arith.constant 0 : i32
    return %arg0, %arg2 : i32, i32
  }
  func.func @transform_1(%arg0: i32, %arg1: i32, %arg2: i32) -> (i32, i32) {
    %c0_i32 = arith.constant 0 : i32
    return %arg2, %arg1 : i32, i32
  }
  func.func @transform_2(%arg0: i32, %arg1: i32, %arg2: i32) -> (i32, i32) {
    %c0_i32 = arith.constant 0 : i32
    %c0_i32_0 = arith.constant 0 : i32
    return %c0_i32, %arg1 : i32, i32
  }
  func.func @transform_3(%arg0: i32, %arg1: i32, %arg2: i32) -> (i32, i32) {
    %c0_i32 = arith.constant 0 : i32
    return %arg0, %arg1 : i32, i32
  }
}

module attributes {stable_mosaic.version = 11 : i64} {
  func.func @attention_kernel(%arg0: i32, %arg1: i32, %arg2: memref<1x8x1x2x16xf32, #tpu.memory_space<vmem>>, %arg3: memref<1x8x1x2x16xf32, #tpu.memory_space<vmem>>, %arg4: memref<1x8x1x2x16xf32, #tpu.memory_space<vmem>>, %arg5: memref<1x1x8xf32, #tpu.memory_space<vmem>>, %arg6: memref<1x8x32xf32, #tpu.memory_space<vmem>>) attributes {dimension_semantics = [#tpu.dimension_semantics<parallel>, #tpu.dimension_semantics<parallel>], iteration_bounds = array<i64: 2, 1>, scalar_prefetch = 0 : i64, scratch_operands = 0 : i64, tpu.core_type = #tpu.core_type<tc>, window_params = [{transform_indices = @transform_0, window_bounds = array<i64: 1, 8, 1, 2, 16>}, {transform_indices = @transform_1, window_bounds = array<i64: 1, 8, 1, 2, 16>}, {transform_indices = @transform_2, window_bounds = array<i64: 1, 8, 1, 2, 16>}, {transform_indices = @transform_3, window_bounds = array<i64: 1, 1, 8>}, {transform_indices = @transform_4, window_bounds = array<i64: 1, 8, 32>}]} {
    %c0 = arith.constant 0 : index
    %c0_0 = arith.constant 0 : index
    %c0_1 = arith.constant 0 : index
    %c0_2 = arith.constant 0 : index
    %c0_3 = arith.constant 0 : index
    %0 = vector.load %arg2[%c0, %c0_0, %c0_1, %c0_2, %c0_3] : memref<1x8x1x2x16xf32, #tpu.memory_space<vmem>>, vector<1x8x1x2x16xf32>
    %1 = vector.shape_cast %0 : vector<1x8x1x2x16xf32> to vector<8x2x16xf32>
    %cst = arith.constant 2.500000e-01 : f32
    %2 = vector.broadcast %cst : f32 to vector<8x2x16xf32>
    %3 = arith.mulf %1, %2 : vector<8x2x16xf32>
    %c0_4 = arith.constant 0 : index
    %c0_5 = arith.constant 0 : index
    %c0_6 = arith.constant 0 : index
    %c0_7 = arith.constant 0 : index
    %c0_8 = arith.constant 0 : index
    %4 = vector.load %arg3[%c0_4, %c0_5, %c0_6, %c0_7, %c0_8] : memref<1x8x1x2x16xf32, #tpu.memory_space<vmem>>, vector<1x8x1x2x16xf32>
    %5 = vector.shape_cast %4 : vector<1x8x1x2x16xf32> to vector<8x2x16xf32>
    %c0_9 = arith.constant 0 : index
    %c0_10 = arith.constant 0 : index
    %c0_11 = arith.constant 0 : index
    %c0_12 = arith.constant 0 : index
    %c0_13 = arith.constant 0 : index
    %6 = vector.load %arg4[%c0_9, %c0_10, %c0_11, %c0_12, %c0_13] : memref<1x8x1x2x16xf32, #tpu.memory_space<vmem>>, vector<1x8x1x2x16xf32>
    %7 = vector.shape_cast %6 : vector<1x8x1x2x16xf32> to vector<8x2x16xf32>
    "tpu.trace_start"() <{level = 10 : i32, message = "qhd,khd->hqk"}> : () -> ()
    %cst_14 = arith.constant dense<0.000000e+00> : vector<2x8x8xf32>
    %8 = tpu.matmul %3, %5, %cst_14 {dimension_numbers = #tpu.dot_dimension_numbers<[2], [2], [0], [0], [0, 1, 0, 0, 1, 0], [1], [1]>} : vector<8x2x16xf32>, vector<8x2x16xf32>, vector<2x8x8xf32> -> vector<2x8x8xf32>
    "tpu.trace_stop"() : () -> ()
    %c0_15 = arith.constant 0 : index
    %c0_16 = arith.constant 0 : index
    %c0_17 = arith.constant 0 : index
    %9 = vector.load %arg5[%c0_15, %c0_16, %c0_17] : memref<1x1x8xf32, #tpu.memory_space<vmem>>, vector<1x1x8xf32>
    %10 = vector.broadcast %9 : vector<1x1x8xf32> to vector<2x8x8xf32>
    %11 = arith.addf %8, %10 : vector<2x8x8xf32>
    %cst_18 = arith.constant dense<0xFF800000> : vector<2x8xf32>
    %12 = vector.multi_reduction <maximumf>, %11, %cst_18 [2] : vector<2x8x8xf32> to vector<2x8xf32>
    %13 = vector.shape_cast %12 : vector<2x8xf32> to vector<2x8x1xf32>
    %14 = vector.broadcast %13 : vector<2x8x1xf32> to vector<2x8x8xf32>
    %15 = arith.subf %11, %14 : vector<2x8x8xf32>
    %16 = math.exp %15 : vector<2x8x8xf32>
    %cst_19 = arith.constant dense<0.000000e+00> : vector<2x8xf32>
    %17 = vector.multi_reduction <add>, %16, %cst_19 [2] : vector<2x8x8xf32> to vector<2x8xf32>
    %18 = vector.shape_cast %17 : vector<2x8xf32> to vector<2x8x1xf32>
    %cst_20 = arith.constant 1.000000e+00 : f32
    %19 = vector.broadcast %cst_20 : f32 to vector<2x8x1xf32>
    %20 = arith.divf %19, %18 : vector<2x8x1xf32>
    %21 = vector.broadcast %20 : vector<2x8x1xf32> to vector<2x8x8xf32>
    %22 = arith.mulf %16, %21 : vector<2x8x8xf32>
    "tpu.trace_start"() <{level = 10 : i32, message = "hqk,khd->qhd"}> : () -> ()
    %cst_21 = arith.constant dense<0.000000e+00> : vector<2x16x8xf32>
    %23 = tpu.matmul %7, %22, %cst_21 {dimension_numbers = #tpu.dot_dimension_numbers<[0], [2], [2], [1], [0, 1, 0, 2, 1, 1], [1], [0]>} : vector<8x2x16xf32>, vector<2x8x8xf32>, vector<2x16x8xf32> -> vector<2x16x8xf32>
    %24 = tpu.transpose %23, [2, 0, 1] : vector<2x16x8xf32> -> vector<8x2x16xf32>
    "tpu.trace_stop"() : () -> ()
    %25 = vector.shape_cast %24 : vector<8x2x16xf32> to vector<1x8x32xf32>
    %c0_22 = arith.constant 0 : index
    %c0_23 = arith.constant 0 : index
    %c0_24 = arith.constant 0 : index
    %26 = vector.load %arg6[%c0_22, %c0_23, %c0_24] : memref<1x8x32xf32, #tpu.memory_space<vmem>>, vector<1x8x32xf32>
    tpu.vector_store %arg6[%c0_22, %c0_23, %c0_24], %25 {strides = array<i32>} : memref<1x8x32xf32, #tpu.memory_space<vmem>>, vector<1x8x32xf32>,
    return
  }
  func.func @transform_0(%arg0: i32, %arg1: i32) -> (i32, i32, i32, i32, i32) {
    %c0_i32 = arith.constant 0 : i32
    %c0_i32_0 = arith.constant 0 : i32
    %c0_i32_1 = arith.constant 0 : i32
    %c0_i32_2 = arith.constant 0 : i32
    return %arg0, %arg1, %c0_i32, %c0_i32_0, %c0_i32_1 : i32, i32, i32, i32, i32
  }
  func.func @transform_1(%arg0: i32, %arg1: i32) -> (i32, i32, i32, i32, i32) {
    %c0_i32 = arith.constant 0 : i32
    %c1_i32 = arith.constant 1 : i32
    %c0_i32_0 = arith.constant 0 : i32
    %c0_i32_1 = arith.constant 0 : i32
    %c0_i32_2 = arith.constant 0 : i32
    return %arg0, %c0_i32, %c1_i32, %c0_i32_0, %c0_i32_1 : i32, i32, i32, i32, i32
  }
  func.func @transform_2(%arg0: i32, %arg1: i32) -> (i32, i32, i32, i32, i32) {
    %c0_i32 = arith.constant 0 : i32
    %c2_i32 = arith.constant 2 : i32
    %c0_i32_0 = arith.constant 0 : i32
    %c0_i32_1 = arith.constant 0 : i32
    %c0_i32_2 = arith.constant 0 : i32
    return %arg0, %c0_i32, %c2_i32, %c0_i32_0, %c0_i32_1 : i32, i32, i32, i32, i32
  }
  func.func @transform_3(%arg0: i32, %arg1: i32) -> (i32, i32, i32) {
    %c0_i32 = arith.constant 0 : i32
    %c0_i32_0 = arith.constant 0 : i32
    %c0_i32_1 = arith.constant 0 : i32
    return %arg0, %c0_i32, %c0_i32_0 : i32, i32, i32
  }
  func.func @transform_4(%arg0: i32, %arg1: i32) -> (i32, i32, i32) {
    %c0_i32 = arith.constant 0 : i32
    %c0_i32_0 = arith.constant 0 : i32
    return %arg0, %arg1, %c0_i32 : i32, i32, i32
  }
}

module attributes {stable_mosaic.version = 11 : i64} {
  func.func @linear_res_ln_kernel(%arg0: i32, %arg1: i32, %arg2: memref<16x32xf32, #tpu.memory_space<vmem>>, %arg3: memref<32x32xf32, #tpu.memory_space<vmem>>, %arg4: memref<1x32xf32, #tpu.memory_space<vmem>>, %arg5: memref<16x32xf32, #tpu.memory_space<vmem>>, %arg6: memref<1x32xf32, #tpu.memory_space<vmem>>, %arg7: memref<1x32xf32, #tpu.memory_space<vmem>>, %arg8: memref<16x32xf32, #tpu.memory_space<vmem>>, %arg9: memref<16x32xf32, #tpu.memory_space<vmem>>) attributes {dimension_semantics = [#tpu.dimension_semantics<parallel>, #tpu.dimension_semantics<arbitrary>], iteration_bounds = array<i64: 1, 1>, scalar_prefetch = 0 : i64, scratch_operands = 1 : i64, tpu.core_type = #tpu.core_type<tc>, window_params = [{transform_indices = @transform_0, window_bounds = array<i64: 16, 32>}, {transform_indices = @transform_1, window_bounds = array<i64: 32, 32>}, {pipeline_mode = #tpu.pipeline_mode<synchronous>, transform_indices = @transform_2, window_bounds = array<i64: 1, 32>}, {transform_indices = @transform_3, window_bounds = array<i64: 16, 32>}, {pipeline_mode = #tpu.pipeline_mode<synchronous>, transform_indices = @transform_4, window_bounds = array<i64: 1, 32>}, {pipeline_mode = #tpu.pipeline_mode<synchronous>, transform_indices = @transform_5, window_bounds = array<i64: 1, 32>}, {transform_indices = @transform_6, window_bounds = array<i64: 16, 32>}]} {
    %c0_i32 = arith.constant 0 : i32
    %0 = arith.cmpi eq, %arg1, %c0_i32 : i32
    %1 = arith.extui %0 : i1 to i32
    %c0_i32_0 = arith.constant 0 : i32
    %2 = arith.cmpi ne, %1, %c0_i32_0 : i32
    scf.if %2 {
      %cst_10 = arith.constant 0.000000e+00 : f32
      %12 = vector.broadcast %cst_10 : f32 to vector<16x32xf32>
      %c0_11 = arith.constant 0 : index
      %c0_12 = arith.constant 0 : index
      %13 = vector.load %arg9[%c0_11, %c0_12] : memref<16x32xf32, #tpu.memory_space<vmem>>, vector<16x32xf32>
      tpu.vector_store %arg9[%c0_11, %c0_12], %12 {strides = array<i32>} : memref<16x32xf32, #tpu.memory_space<vmem>>, vector<16x32xf32>,
    } else {
    }
    %c0 = arith.constant 0 : index
    %c0_1 = arith.constant 0 : index
    %3 = vector.load %arg9[%c0, %c0_1] : memref<16x32xf32, #tpu.memory_space<vmem>>, vector<16x32xf32>
    %c0_2 = arith.constant 0 : index
    %c0_3 = arith.constant 0 : index
    %4 = vector.load %arg2[%c0_2, %c0_3] : memref<16x32xf32, #tpu.memory_space<vmem>>, vector<16x32xf32>
    %c0_4 = arith.constant 0 : index
    %c0_5 = arith.constant 0 : index
    %5 = vector.load %arg3[%c0_4, %c0_5] : memref<32x32xf32, #tpu.memory_space<vmem>>, vector<32x32xf32>
    %cst = arith.constant dense<0.000000e+00> : vector<16x32xf32>
    %6 = tpu.matmul %4, %5, %cst {dimension_numbers = #tpu.dot_dimension_numbers<[1], [0], [0], [1], [0, 0, 1, 1], [], []>} : vector<16x32xf32>, vector<32x32xf32>, vector<16x32xf32> -> vector<16x32xf32>
    %7 = arith.addf %3, %6 : vector<16x32xf32>
    %c0_6 = arith.constant 0 : index
    %c0_7 = arith.constant 0 : index
    %8 = vector.load %arg9[%c0_6, %c0_7] : memref<16x32xf32, #tpu.memory_space<vmem>>, vector<16x32xf32>
    tpu.vector_store %arg9[%c0_6, %c0_7], %7 {strides = array<i32>} : memref<16x32xf32, #tpu.memory_space<vmem>>, vector<16x32xf32>,
    %c0_i32_8 = arith.constant 0 : i32
    %9 = arith.cmpi eq, %arg1, %c0_i32_8 : i32
    %10 = arith.extui %9 : i1 to i32
    %c0_i32_9 = arith.constant 0 : i32
    %11 = arith.cmpi ne, %10, %c0_i32_9 : i32
    scf.if %11 {
      %c0_10 = arith.constant 0 : index
      %c0_11 = arith.constant 0 : index
      %12 = vector.load %arg9[%c0_10, %c0_11] : memref<16x32xf32, #tpu.memory_space<vmem>>, vector<16x32xf32>
      %c0_12 = arith.constant 0 : index
      %c0_13 = arith.constant 0 : index
      %13 = vector.load %arg4[%c0_12, %c0_13] : memref<1x32xf32, #tpu.memory_space<vmem>>, vector<1x32xf32>
      %14 = vector.broadcast %13 : vector<1x32xf32> to vector<16x32xf32>
      %15 = arith.addf %12, %14 : vector<16x32xf32>
      %c0_14 = arith.constant 0 : index
      %c0_15 = arith.constant 0 : index
      %16 = vector.load %arg5[%c0_14, %c0_15] : memref<16x32xf32, #tpu.memory_space<vmem>>, vector<16x32xf32>
      %17 = arith.addf %15, %16 : vector<16x32xf32>
      %c0_16 = arith.constant 0 : index
      %c0_17 = arith.constant 0 : index
      %18 = vector.load %arg6[%c0_16, %c0_17] : memref<1x32xf32, #tpu.memory_space<vmem>>, vector<1x32xf32>
      %c0_18 = arith.constant 0 : index
      %c0_19 = arith.constant 0 : index
      %19 = vector.load %arg7[%c0_18, %c0_19] : memref<1x32xf32, #tpu.memory_space<vmem>>, vector<1x32xf32>
      %cst_20 = arith.constant dense<0.000000e+00> : vector<16xf32>
      %20 = vector.multi_reduction <add>, %17, %cst_20 [1] : vector<16x32xf32> to vector<16xf32>
      %21 = vector.shape_cast %20 : vector<16xf32> to vector<16x1xf32>
      %cst_21 = arith.constant 3.200000e+01 : f32
      %22 = vector.broadcast %cst_21 : f32 to vector<16x1xf32>
      %23 = arith.divf %21, %22 : vector<16x1xf32>
      %24 = vector.broadcast %23 : vector<16x1xf32> to vector<16x32xf32>
      %25 = arith.subf %17, %24 : vector<16x32xf32>
      %26 = arith.mulf %25, %25 : vector<16x32xf32>
      %cst_22 = arith.constant dense<0.000000e+00> : vector<16xf32>
      %27 = vector.multi_reduction <add>, %26, %cst_22 [1] : vector<16x32xf32> to vector<16xf32>
      %28 = vector.shape_cast %27 : vector<16xf32> to vector<16x1xf32>
      %cst_23 = arith.constant 3.200000e+01 : f32
      %29 = vector.broadcast %cst_23 : f32 to vector<16x1xf32>
      %30 = arith.divf %28, %29 : vector<16x1xf32>
      %31 = vector.broadcast %23 : vector<16x1xf32> to vector<16x32xf32>
      %32 = arith.subf %17, %31 : vector<16x32xf32>
      %cst_24 = arith.constant 9.99999996E-13 : f32
      %33 = vector.broadcast %cst_24 : f32 to vector<16x1xf32>
      %34 = arith.addf %30, %33 : vector<16x1xf32>
      %35 = math.rsqrt %34 : vector<16x1xf32>
      %36 = vector.broadcast %35 : vector<16x1xf32> to vector<16x32xf32>
      %37 = arith.mulf %32, %36 : vector<16x32xf32>
      %38 = vector.broadcast %18 : vector<1x32xf32> to vector<16x32xf32>
      %39 = arith.mulf %37, %38 : vector<16x32xf32>
      %40 = vector.broadcast %19 : vector<1x32xf32> to vector<16x32xf32>
      %41 = arith.addf %39, %40 : vector<16x32xf32>
      %c0_25 = arith.constant 0 : index
      %c0_26 = arith.constant 0 : index
      %42 = vector.load %arg8[%c0_25, %c0_26] : memref<16x32xf32, #tpu.memory_space<vmem>>, vector<16x32xf32>
      tpu.vector_store %arg8[%c0_25, %c0_26], %41 {strides = array<i32>} : memref<16x32xf32, #tpu.memory_space<vmem>>, vector<16x32xf32>,
    } else {
    }
    return
  }
  func.func @transform_0(%arg0: i32, %arg1: i32) -> (i32, i32) {
    %c0_i32 = arith.constant 0 : i32
    return %arg0, %arg1 : i32, i32
  }
  func.func @transform_1(%arg0: i32, %arg1: i32) -> (i32, i32) {
    %c0_i32 = arith.constant 0 : i32
    %c0_i32_0 = arith.constant 0 : i32
    return %arg1, %c0_i32 : i32, i32
  }
  func.func @transform_2(%arg0: i32, %arg1: i32) -> (i32, i32) {
    %c0_i32 = arith.constant 0 : i32
    %c0_i32_0 = arith.constant 0 : i32
    %c0_i32_1 = arith.constant 0 : i32
    return %c0_i32, %c0_i32_0 : i32, i32
  }
  func.func @transform_3(%arg0: i32, %arg1: i32) -> (i32, i32) {
    %c0_i32 = arith.constant 0 : i32
    %c0_i32_0 = arith.constant 0 : i32
    return %arg0, %c0_i32 : i32, i32
  }
  func.func @transform_4(%arg0: i32, %arg1: i32) -> (i32, i32) {
    %c0_i32 = arith.constant 0 : i32
    %c0_i32_0 = arith.constant 0 : i32
    %c0_i32_1 = arith.constant 0 : i32
    return %c0_i32, %c0_i32_0 : i32, i32
  }
  func.func @transform_5(%arg0: i32, %arg1: i32) -> (i32, i32) {
    %c0_i32 = arith.constant 0 : i32
    %c0_i32_0 = arith.constant 0 : i32
    %c0_i32_1 = arith.constant 0 : i32
    return %c0_i32, %c0_i32_0 : i32, i32
  }
  func.func @transform_6(%arg0: i32, %arg1: i32) -> (i32, i32) {
    %c0_i32 = arith.constant 0 : i32
    %c0_i32_0 = arith.constant 0 : i32
    return %arg0, %c0_i32 : i32, i32
  }
}

module attributes {stable_mosaic.version = 11 : i64} {
  func.func @linear_kernel(%arg0: i32, %arg1: i32, %arg2: i32, %arg3: memref<16x32xf32, #tpu.memory_space<vmem>>, %arg4: memref<32x64xf32, #tpu.memory_space<vmem>>, %arg5: memref<1x64xf32, #tpu.memory_space<vmem>>, %arg6: memref<16x64xf32, #tpu.memory_space<vmem>>, %arg7: memref<16x64xf32, #tpu.memory_space<vmem>>) attributes {dimension_semantics = [#tpu.dimension_semantics<parallel>, #tpu.dimension_semantics<parallel>, #tpu.dimension_semantics<arbitrary>], iteration_bounds = array<i64: 1, 1, 1>, scalar_prefetch = 0 : i64, scratch_operands = 1 : i64, tpu.core_type = #tpu.core_type<tc>, window_params = [{transform_indices = @transform_0, window_bounds = array<i64: 16, 32>}, {transform_indices = @transform_1, window_bounds = array<i64: 32, 64>}, {transform_indices = @transform_2, window_bounds = array<i64: 1, 64>}, {transform_indices = @transform_3, window_bounds = array<i64: 16, 64>}]} {
    %c0_i32 = arith.constant 0 : i32
    %0 = arith.cmpi eq, %arg2, %c0_i32 : i32
    %1 = arith.extui %0 : i1 to i32
    %c0_i32_0 = arith.constant 0 : i32
    %2 = arith.cmpi ne, %1, %c0_i32_0 : i32
    scf.if %2 {
      %cst_10 = arith.constant 0.000000e+00 : f32
      %12 = vector.broadcast %cst_10 : f32 to vector<16x64xf32>
      %c0_11 = arith.constant 0 : index
      %c0_12 = arith.constant 0 : index
      %13 = vector.load %arg7[%c0_11, %c0_12] : memref<16x64xf32, #tpu.memory_space<vmem>>, vector<16x64xf32>
      tpu.vector_store %arg7[%c0_11, %c0_12], %12 {strides = array<i32>} : memref<16x64xf32, #tpu.memory_space<vmem>>, vector<16x64xf32>,
    } else {
    }
    %c0 = arith.constant 0 : index
    %c0_1 = arith.constant 0 : index
    %3 = vector.load %arg7[%c0, %c0_1] : memref<16x64xf32, #tpu.memory_space<vmem>>, vector<16x64xf32>
    %c0_2 = arith.constant 0 : index
    %c0_3 = arith.constant 0 : index
    %4 = vector.load %arg3[%c0_2, %c0_3] : memref<16x32xf32, #tpu.memory_space<vmem>>, vector<16x32xf32>
    %c0_4 = arith.constant 0 : index
    %c0_5 = arith.constant 0 : index
    %5 = vector.load %arg4[%c0_4, %c0_5] : memref<32x64xf32, #tpu.memory_space<vmem>>, vector<32x64xf32>
    %cst = arith.constant dense<0.000000e+00> : vector<16x64xf32>
    %6 = tpu.matmul %4, %5, %cst {dimension_numbers = #tpu.dot_dimension_numbers<[1], [0], [0], [1], [0, 0, 1, 1], [], []>} : vector<16x32xf32>, vector<32x64xf32>, vector<16x64xf32> -> vector<16x64xf32>
    %7 = arith.addf %3, %6 : vector<16x64xf32>
    %c0_6 = arith.constant 0 : index
    %c0_7 = arith.constant 0 : index
    %8 = vector.load %arg7[%c0_6, %c0_7] : memref<16x64xf32, #tpu.memory_space<vmem>>, vector<16x64xf32>
    tpu.vector_store %arg7[%c0_6, %c0_7], %7 {strides = array<i32>} : memref<16x64xf32, #tpu.memory_space<vmem>>, vector<16x64xf32>,
    %c0_i32_8 = arith.constant 0 : i32
    %9 = arith.cmpi eq, %arg2, %c0_i32_8 : i32
    %10 = arith.extui %9 : i1 to i32
    %c0_i32_9 = arith.constant 0 : i32
    %11 = arith.cmpi ne, %10, %c0_i32_9 : i32
    scf.if %11 {
      %c0_10 = arith.constant 0 : index
      %c0_11 = arith.constant 0 : index
      %12 = vector.load %arg7[%c0_10, %c0_11] : memref<16x64xf32, #tpu.memory_space<vmem>>, vector<16x64xf32>
      %c0_12 = arith.constant 0 : index
      %c0_13 = arith.constant 0 : index
      %13 = vector.load %arg5[%c0_12, %c0_13] : memref<1x64xf32, #tpu.memory_space<vmem>>, vector<1x64xf32>
      %14 = vector.broadcast %13 : vector<1x64xf32> to vector<16x64xf32>
      %15 = arith.addf %12, %14 : vector<16x64xf32>
      %cst_14 = arith.constant 5.000000e-01 : f32
      %16 = vector.broadcast %cst_14 : f32 to vector<16x64xf32>
      %17 = arith.mulf %16, %15 : vector<16x64xf32>
      %cst_15 = arith.constant 0.707106769 : f32
      %18 = vector.broadcast %cst_15 : f32 to vector<16x64xf32>
      %19 = arith.mulf %15, %18 : vector<16x64xf32>
      %20 = math.erf %19 : vector<16x64xf32>
      %cst_16 = arith.constant 1.000000e+00 : f32
      %21 = vector.broadcast %cst_16 : f32 to vector<16x64xf32>
      %22 = arith.addf %21, %20 : vector<16x64xf32>
      %23 = arith.mulf %17, %22 : vector<16x64xf32>
      %c0_17 = arith.constant 0 : index
      %c0_18 = arith.constant 0 : index
      %24 = vector.load %arg6[%c0_17, %c0_18] : memref<16x64xf32, #tpu.memory_space<vmem>>, vector<16x64xf32>
      tpu.vector_store %arg6[%c0_17, %c0_18], %23 {strides = array<i32>} : memref<16x64xf32, #tpu.memory_space<vmem>>, vector<16x64xf32>,
    } else {
    }
    return
  }
  func.func @transform_0(%arg0: i32, %arg1: i32, %arg2: i32) -> (i32, i32) {
    %c0_i32 = arith.constant 0 : i32
    return %arg0, %arg2 : i32, i32
  }
  func.func @transform_1(%arg0: i32, %arg1: i32, %arg2: i32) -> (i32, i32) {
    %c0_i32 = arith.constant 0 : i32
    return %arg2, %arg1 : i32, i32
  }
  func.func @transform_2(%arg0: i32, %arg1: i32, %arg2: i32) -> (i32, i32) {
    %c0_i32 = arith.constant 0 : i32
    %c0_i32_0 = arith.constant 0 : i32
    return %c0_i32, %arg1 : i32, i32
  }
  func.func @transform_3(%arg0: i32, %arg1: i32, %arg2: i32) -> (i32, i32) {
    %c0_i32 = arith.constant 0 : i32
    return %arg0, %arg1 : i32, i32
  }
}

module attributes {stable_mosaic.version = 11 : i64} {
  func.func @linear_res_ln_kernel(%arg0: i32, %arg1: i32, %arg2: memref<16x64xf32, #tpu.memory_space<vmem>>, %arg3: memref<64x32xf32, #tpu.memory_space<vmem>>, %arg4: memref<1x32xf32, #tpu.memory_space<vmem>>, %arg5: memref<16x32xf32, #tpu.memory_space<vmem>>, %arg6: memref<1x32xf32, #tpu.memory_space<vmem>>, %arg7: memref<1x32xf32, #tpu.memory_space<vmem>>, %arg8: memref<16x32xf32, #tpu.memory_space<vmem>>, %arg9: memref<16x32xf32, #tpu.memory_space<vmem>>) attributes {dimension_semantics = [#tpu.dimension_semantics<parallel>, #tpu.dimension_semantics<arbitrary>], iteration_bounds = array<i64: 1, 1>, scalar_prefetch = 0 : i64, scratch_operands = 1 : i64, tpu.core_type = #tpu.core_type<tc>, window_params = [{transform_indices = @transform_0, window_bounds = array<i64: 16, 64>}, {transform_indices = @transform_1, window_bounds = array<i64: 64, 32>}, {pipeline_mode = #tpu.pipeline_mode<synchronous>, transform_indices = @transform_2, window_bounds = array<i64: 1, 32>}, {transform_indices = @transform_3, window_bounds = array<i64: 16, 32>}, {pipeline_mode = #tpu.pipeline_mode<synchronous>, transform_indices = @transform_4, window_bounds = array<i64: 1, 32>}, {pipeline_mode = #tpu.pipeline_mode<synchronous>, transform_indices = @transform_5, window_bounds = array<i64: 1, 32>}, {transform_indices = @transform_6, window_bounds = array<i64: 16, 32>}]} {
    %c0_i32 = arith.constant 0 : i32
    %0 = arith.cmpi eq, %arg1, %c0_i32 : i32
    %1 = arith.extui %0 : i1 to i32
    %c0_i32_0 = arith.constant 0 : i32
    %2 = arith.cmpi ne, %1, %c0_i32_0 : i32
    scf.if %2 {
      %cst_10 = arith.constant 0.000000e+00 : f32
      %12 = vector.broadcast %cst_10 : f32 to vector<16x32xf32>
      %c0_11 = arith.constant 0 : index
      %c0_12 = arith.constant 0 : index
      %13 = vector.load %arg9[%c0_11, %c0_12] : memref<16x32xf32, #tpu.memory_space<vmem>>, vector<16x32xf32>
      tpu.vector_store %arg9[%c0_11, %c0_12], %12 {strides = array<i32>} : memref<16x32xf32, #tpu.memory_space<vmem>>, vector<16x32xf32>,
    } else {
    }
    %c0 = arith.constant 0 : index
    %c0_1 = arith.constant 0 : index
    %3 = vector.load %arg9[%c0, %c0_1] : memref<16x32xf32, #tpu.memory_space<vmem>>, vector<16x32xf32>
    %c0_2 = arith.constant 0 : index
    %c0_3 = arith.constant 0 : index
    %4 = vector.load %arg2[%c0_2, %c0_3] : memref<16x64xf32, #tpu.memory_space<vmem>>, vector<16x64xf32>
    %c0_4 = arith.constant 0 : index
    %c0_5 = arith.constant 0 : index
    %5 = vector.load %arg3[%c0_4, %c0_5] : memref<64x32xf32, #tpu.memory_space<vmem>>, vector<64x32xf32>
    %cst = arith.constant dense<0.000000e+00> : vector<16x32xf32>
    %6 = tpu.matmul %4, %5, %cst {dimension_numbers = #tpu.dot_dimension_numbers<[1], [0], [0], [1], [0, 0, 1, 1], [], []>} : vector<16x64xf32>, vector<64x32xf32>, vector<16x32xf32> -> vector<16x32xf32>
    %7 = arith.addf %3, %6 : vector<16x32xf32>
    %c0_6 = arith.constant 0 : index
    %c0_7 = arith.constant 0 : index
    %8 = vector.load %arg9[%c0_6, %c0_7] : memref<16x32xf32, #tpu.memory_space<vmem>>, vector<16x32xf32>
    tpu.vector_store %arg9[%c0_6, %c0_7], %7 {strides = array<i32>} : memref<16x32xf32, #tpu.memory_space<vmem>>, vector<16x32xf32>,
    %c0_i32_8 = arith.constant 0 : i32
    %9 = arith.cmpi eq, %arg1, %c0_i32_8 : i32
    %10 = arith.extui %9 : i1 to i32
    %c0_i32_9 = arith.constant 0 : i32
    %11 = arith.cmpi ne, %10, %c0_i32_9 : i32
    scf.if %11 {
      %c0_10 = arith.constant 0 : index
      %c0_11 = arith.constant 0 : index
      %12 = vector.load %arg9[%c0_10, %c0_11] : memref<16x32xf32, #tpu.memory_space<vmem>>, vector<16x32xf32>
      %c0_12 = arith.constant 0 : index
      %c0_13 = arith.constant 0 : index
      %13 = vector.load %arg4[%c0_12, %c0_13] : memref<1x32xf32, #tpu.memory_space<vmem>>, vector<1x32xf32>
      %14 = vector.broadcast %13 : vector<1x32xf32> to vector<16x32xf32>
      %15 = arith.addf %12, %14 : vector<16x32xf32>
      %c0_14 = arith.constant 0 : index
      %c0_15 = arith.constant 0 : index
      %16 = vector.load %arg5[%c0_14, %c0_15] : memref<16x32xf32, #tpu.memory_space<vmem>>, vector<16x32xf32>
      %17 = arith.addf %15, %16 : vector<16x32xf32>
      %c0_16 = arith.constant 0 : index
      %c0_17 = arith.constant 0 : index
      %18 = vector.load %arg6[%c0_16, %c0_17] : memref<1x32xf32, #tpu.memory_space<vmem>>, vector<1x32xf32>
      %c0_18 = arith.constant 0 : index
      %c0_19 = arith.constant 0 : index
      %19 = vector.load %arg7[%c0_18, %c0_19] : memref<1x32xf32, #tpu.memory_space<vmem>>, vector<1x32xf32>
      %cst_20 = arith.constant dense<0.000000e+00> : vector<16xf32>
      %20 = vector.multi_reduction <add>, %17, %cst_20 [1] : vector<16x32xf32> to vector<16xf32>
      %21 = vector.shape_cast %20 : vector<16xf32> to vector<16x1xf32>
      %cst_21 = arith.constant 3.200000e+01 : f32
      %22 = vector.broadcast %cst_21 : f32 to vector<16x1xf32>
      %23 = arith.divf %21, %22 : vector<16x1xf32>
      %24 = vector.broadcast %23 : vector<16x1xf32> to vector<16x32xf32>
      %25 = arith.subf %17, %24 : vector<16x32xf32>
      %26 = arith.mulf %25, %25 : vector<16x32xf32>
      %cst_22 = arith.constant dense<0.000000e+00> : vector<16xf32>
      %27 = vector.multi_reduction <add>, %26, %cst_22 [1] : vector<16x32xf32> to vector<16xf32>
      %28 = vector.shape_cast %27 : vector<16xf32> to vector<16x1xf32>
      %cst_23 = arith.constant 3.200000e+01 : f32
      %29 = vector.broadcast %cst_23 : f32 to vector<16x1xf32>
      %30 = arith.divf %28, %29 : vector<16x1xf32>
      %31 = vector.broadcast %23 : vector<16x1xf32> to vector<16x32xf32>
      %32 = arith.subf %17, %31 : vector<16x32xf32>
      %cst_24 = arith.constant 9.99999996E-13 : f32
      %33 = vector.broadcast %cst_24 : f32 to vector<16x1xf32>
      %34 = arith.addf %30, %33 : vector<16x1xf32>
      %35 = math.rsqrt %34 : vector<16x1xf32>
      %36 = vector.broadcast %35 : vector<16x1xf32> to vector<16x32xf32>
      %37 = arith.mulf %32, %36 : vector<16x32xf32>
      %38 = vector.broadcast %18 : vector<1x32xf32> to vector<16x32xf32>
      %39 = arith.mulf %37, %38 : vector<16x32xf32>
      %40 = vector.broadcast %19 : vector<1x32xf32> to vector<16x32xf32>
      %41 = arith.addf %39, %40 : vector<16x32xf32>
      %c0_25 = arith.constant 0 : index
      %c0_26 = arith.constant 0 : index
      %42 = vector.load %arg8[%c0_25, %c0_26] : memref<16x32xf32, #tpu.memory_space<vmem>>, vector<16x32xf32>
      tpu.vector_store %arg8[%c0_25, %c0_26], %41 {strides = array<i32>} : memref<16x32xf32, #tpu.memory_space<vmem>>, vector<16x32xf32>,
    } else {
    }
    return
  }
  func.func @transform_0(%arg0: i32, %arg1: i32) -> (i32, i32) {
    %c0_i32 = arith.constant 0 : i32
    return %arg0, %arg1 : i32, i32
  }
  func.func @transform_1(%arg0: i32, %arg1: i32) -> (i32, i32) {
    %c0_i32 = arith.constant 0 : i32
    %c0_i32_0 = arith.constant 0 : i32
    return %arg1, %c0_i32 : i32, i32
  }
  func.func @transform_2(%arg0: i32, %arg1: i32) -> (i32, i32) {
    %c0_i32 = arith.constant 0 : i32
    %c0_i32_0 = arith.constant 0 : i32
    %c0_i32_1 = arith.constant 0 : i32
    return %c0_i32, %c0_i32_0 : i32, i32
  }
  func.func @transform_3(%arg0: i32, %arg1: i32) -> (i32, i32) {
    %c0_i32 = arith.constant 0 : i32
    %c0_i32_0 = arith.constant 0 : i32
    return %arg0, %c0_i32 : i32, i32
  }
  func.func @transform_4(%arg0: i32, %arg1: i32) -> (i32, i32) {
    %c0_i32 = arith.constant 0 : i32
    %c0_i32_0 = arith.constant 0 : i32
    %c0_i32_1 = arith.constant 0 : i32
    return %c0_i32, %c0_i32_0 : i32, i32
  }
  func.func @transform_5(%arg0: i32, %arg1: i32) -> (i32, i32) {
    %c0_i32 = arith.constant 0 : i32
    %c0_i32_0 = arith.constant 0 : i32
    %c0_i32_1 = arith.constant 0 : i32
    return %c0_i32, %c0_i32_0 : i32, i32
  }
  func.func @transform_6(%arg0: i32, %arg1: i32) -> (i32, i32) {
    %c0_i32 = arith.constant 0 : i32
    %c0_i32_0 = arith.constant 0 : i32
    return %arg0, %c0_i32 : i32, i32
  }
}

module attributes {stable_mosaic.version = 11 : i64} {
  func.func @linear_res_ln_kernel(%arg0: i32, %arg1: i32, %arg2: memref<16x64xf32, #tpu.memory_space<vmem>>, %arg3: memref<64x32xf32, #tpu.memory_space<vmem>>, %arg4: memref<1x32xf32, #tpu.memory_space<vmem>>, %arg5: memref<16x32xf32, #tpu.memory_space<vmem>>, %arg6: memref<1x32xf32, #tpu.memory_space<vmem>>, %arg7: memref<1x32xf32, #tpu.memory_space<vmem>>, %arg8: memref<16x32xf32, #tpu.memory_space<vmem>>, %arg9: memref<16x32xf32, #tpu.memory_space<vmem>>) attributes {dimension_semantics = [#tpu.dimension_semantics<parallel>, #tpu.dimension_semantics<arbitrary>], iteration_bounds = array<i64: 1, 1>, scalar_prefetch = 0 : i64, scratch_operands = 1 : i64, tpu.core_type = #tpu.core_type<tc>, window_params = [{transform_indices = @transform_0, window_bounds = array<i64: 16, 64>}, {transform_indices = @transform_1, window_bounds = array<i64: 64, 32>}, {pipeline_mode = #tpu.pipeline_mode<synchronous>, transform_indices = @transform_2, window_bounds = array<i64: 1, 32>}, {transform_indices = @transform_3, window_bounds = array<i64: 16, 32>}, {pipeline_mode = #tpu.pipeline_mode<synchronous>, transform_indices = @transform_4, window_bounds = array<i64: 1, 32>}, {pipeline_mode = #tpu.pipeline_mode<synchronous>, transform_indices = @transform_5, window_bounds = array<i64: 1, 32>}, {transform_indices = @transform_6, window_bounds = array<i64: 16, 32>}]} {
    %c0_i32 = arith.constant 0 : i32
    %0 = arith.cmpi eq, %arg1, %c0_i32 : i32
    %1 = arith.extui %0 : i1 to i32
    %c0_i32_0 = arith.constant 0 : i32
    %2 = arith.cmpi ne, %1, %c0_i32_0 : i32
    scf.if %2 {
      %cst_10 = arith.constant 0.000000e+00 : f32
      %12 = vector.broadcast %cst_10 : f32 to vector<16x32xf32>
      %c0_11 = arith.constant 0 : index
      %c0_12 = arith.constant 0 : index
      %13 = vector.load %arg9[%c0_11, %c0_12] : memref<16x32xf32, #tpu.memory_space<vmem>>, vector<16x32xf32>
      tpu.vector_store %arg9[%c0_11, %c0_12], %12 {strides = array<i32>} : memref<16x32xf32, #tpu.memory_space<vmem>>, vector<16x32xf32>,
    } else {
    }
    %c0 = arith.constant 0 : index
    %c0_1 = arith.constant 0 : index
    %3 = vector.load %arg9[%c0, %c0_1] : memref<16x32xf32, #tpu.memory_space<vmem>>, vector<16x32xf32>
    %c0_2 = arith.constant 0 : index
    %c0_3 = arith.constant 0 : index
    %4 = vector.load %arg2[%c0_2, %c0_3] : memref<16x64xf32, #tpu.memory_space<vmem>>, vector<16x64xf32>
    %c0_4 = arith.constant 0 : index
    %c0_5 = arith.constant 0 : index
    %5 = vector.load %arg3[%c0_4, %c0_5] : memref<64x32xf32, #tpu.memory_space<vmem>>, vector<64x32xf32>
    %cst = arith.constant dense<0.000000e+00> : vector<16x32xf32>
    %6 = tpu.matmul %4, %5, %cst {dimension_numbers = #tpu.dot_dimension_numbers<[1], [0], [0], [1], [0, 0, 1, 1], [], []>} : vector<16x64xf32>, vector<64x32xf32>, vector<16x32xf32> -> vector<16x32xf32>
    %7 = arith.addf %3, %6 : vector<16x32xf32>
    %c0_6 = arith.constant 0 : index
    %c0_7 = arith.constant 0 : index
    %8 = vector.load %arg9[%c0_6, %c0_7] : memref<16x32xf32, #tpu.memory_space<vmem>>, vector<16x32xf32>
    tpu.vector_store %arg9[%c0_6, %c0_7], %7 {strides = array<i32>} : memref<16x32xf32, #tpu.memory_space<vmem>>, vector<16x32xf32>,
    %c0_i32_8 = arith.constant 0 : i32
    %9 = arith.cmpi eq, %arg1, %c0_i32_8 : i32
    %10 = arith.extui %9 : i1 to i32
    %c0_i32_9 = arith.constant 0 : i32
    %11 = arith.cmpi ne, %10, %c0_i32_9 : i32
    scf.if %11 {
      %c0_10 = arith.constant 0 : index
      %c0_11 = arith.constant 0 : index
      %12 = vector.load %arg9[%c0_10, %c0_11] : memref<16x32xf32, #tpu.memory_space<vmem>>, vector<16x32xf32>
      %c0_12 = arith.constant 0 : index
      %c0_13 = arith.constant 0 : index
      %13 = vector.load %arg4[%c0_12, %c0_13] : memref<1x32xf32, #tpu.memory_space<vmem>>, vector<1x32xf32>
      %14 = vector.broadcast %13 : vector<1x32xf32> to vector<16x32xf32>
      %15 = arith.addf %12, %14 : vector<16x32xf32>
      %c0_14 = arith.constant 0 : index
      %c0_15 = arith.constant 0 : index
      %16 = vector.load %arg5[%c0_14, %c0_15] : memref<16x32xf32, #tpu.memory_space<vmem>>, vector<16x32xf32>
      %17 = arith.addf %15, %16 : vector<16x32xf32>
      %c0_16 = arith.constant 0 : index
      %c0_17 = arith.constant 0 : index
      %18 = vector.load %arg6[%c0_16, %c0_17] : memref<1x32xf32, #tpu.memory_space<vmem>>, vector<1x32xf32>
      %c0_18 = arith.constant 0 : index
      %c0_19 = arith.constant 0 : index
      %19 = vector.load %arg7[%c0_18, %c0_19] : memref<1x32xf32, #tpu.memory_space<vmem>>, vector<1x32xf32>
      %cst_20 = arith.constant dense<0.000000e+00> : vector<16xf32>
      %20 = vector.multi_reduction <add>, %17, %cst_20 [1] : vector<16x32xf32> to vector<16xf32>
      %21 = vector.shape_cast %20 : vector<16xf32> to vector<16x1xf32>
      %cst_21 = arith.constant 3.200000e+01 : f32
      %22 = vector.broadcast %cst_21 : f32 to vector<16x1xf32>
      %23 = arith.divf %21, %22 : vector<16x1xf32>
      %24 = vector.broadcast %23 : vector<16x1xf32> to vector<16x32xf32>
      %25 = arith.subf %17, %24 : vector<16x32xf32>
      %26 = arith.mulf %25, %25 : vector<16x32xf32>
      %cst_22 = arith.constant dense<0.000000e+00> : vector<16xf32>
      %27 = vector.multi_reduction <add>, %26, %cst_22 [1] : vector<16x32xf32> to vector<16xf32>
      %28 = vector.shape_cast %27 : vector<16xf32> to vector<16x1xf32>
      %cst_23 = arith.constant 3.200000e+01 : f32
      %29 = vector.broadcast %cst_23 : f32 to vector<16x1xf32>
      %30 = arith.divf %28, %29 : vector<16x1xf32>
      %31 = vector.broadcast %23 : vector<16x1xf32> to vector<16x32xf32>
      %32 = arith.subf %17, %31 : vector<16x32xf32>
      %cst_24 = arith.constant 9.99999996E-13 : f32
      %33 = vector.broadcast %cst_24 : f32 to vector<16x1xf32>
      %34 = arith.addf %30, %33 : vector<16x1xf32>
      %35 = math.rsqrt %34 : vector<16x1xf32>
      %36 = vector.broadcast %35 : vector<16x1xf32> to vector<16x32xf32>
      %37 = arith.mulf %32, %36 : vector<16x32xf32>
      %38 = vector.broadcast %18 : vector<1x32xf32> to vector<16x32xf32>
      %39 = arith.mulf %37, %38 : vector<16x32xf32>
      %40 = vector.broadcast %19 : vector<1x32xf32> to vector<16x32xf32>
      %41 = arith.addf %39, %40 : vector<16x32xf32>
      %c0_25 = arith.constant 0 : index
      %c0_26 = arith.constant 0 : index
      %42 = vector.load %arg8[%c0_25, %c0_26] : memref<16x32xf32, #tpu.memory_space<vmem>>, vector<16x32xf32>
      tpu.vector_store %arg8[%c0_25, %c0_26], %41 {strides = array<i32>} : memref<16x32xf32, #tpu.memory_space<vmem>>, vector<16x32xf32>,
    } else {
    }
    return
  }
  func.func @transform_0(%arg0: i32, %arg1: i32) -> (i32, i32) {
    %c0_i32 = arith.constant 0 : i32
    return %arg0, %arg1 : i32, i32
  }
  func.func @transform_1(%arg0: i32, %arg1: i32) -> (i32, i32) {
    %c0_i32 = arith.constant 0 : i32
    %c0_i32_0 = arith.constant 0 : i32
    return %arg1, %c0_i32 : i32, i32
  }
  func.func @transform_2(%arg0: i32, %arg1: i32) -> (i32, i32) {
    %c0_i32 = arith.constant 0 : i32
    %c0_i32_0 = arith.constant 0 : i32
    %c0_i32_1 = arith.constant 0 : i32
    return %c0_i32, %c0_i32_0 : i32, i32
  }
  func.func @transform_3(%arg0: i32, %arg1: i32) -> (i32, i32) {
    %c0_i32 = arith.constant 0 : i32
    %c0_i32_0 = arith.constant 0 : i32
    return %arg0, %c0_i32 : i32, i32
  }
  func.func @transform_4(%arg0: i32, %arg1: i32) -> (i32, i32) {
    %c0_i32 = arith.constant 0 : i32
    %c0_i32_0 = arith.constant 0 : i32
    %c0_i32_1 = arith.constant 0 : i32
    return %c0_i32, %c0_i32_0 : i32, i32
  }
  func.func @transform_5(%arg0: i32, %arg1: i32) -> (i32, i32) {
    %c0_i32 = arith.constant 0 : i32
    %c0_i32_0 = arith.constant 0 : i32
    %c0_i32_1 = arith.constant 0 : i32
    return %c0_i32, %c0_i32_0 : i32, i32
  }
  func.func @transform_6(%arg0: i32, %arg1: i32) -> (i32, i32) {
    %c0_i32 = arith.constant 0 : i32
    %c0_i32_0 = arith.constant 0 : i32
    return %arg0, %c0_i32 : i32, i32
  }
}

</mosaic_0001>

<bundles_post_ra>
// kernel: fuse_bert_forward.11
= control target key start
LH: loop header
LB: loop body
LE: loop exit
PB: predicated region body
PF: predicated region fallthrough
CT: control target
= control target key end

     0   :  { %s544_s18 = smov 0   ;;  %s546_s19 = smov 0   ;;  %s597_s0 = inlined_call_operand.vmem [shape: f32[2,8,32], index: 0, kind: input, shape index: {}]   ;;  %s598_s1 = inlined_call_operand.vmem [shape: f32[8,32], index: 1, kind: input, shape index: {}]   ;;  %s599_s2 = inlined_call_operand.vmem [shape: f32[2,8,32], index: 2, kind: input, shape index: {}]   ;;  %s600_s3 = inlined_call_operand.vmem [shape: f32[1,32], index: 3, kind: input, shape index: {}]   ;;  %s601_s4 = inlined_call_operand.vmem [shape: f32[1,32], index: 4, kind: input, shape index: {}]   ;;  %s602_s5 = inlined_call_operand.vmem [shape: f32[2,8,32], index: 5, kind: output, shape index: {}]  }
   0x1   :  { %s548_s20 = smov 0  }
   0x2 LB: > { %s27_s21 = sadd.s32 1, %s507_s19  ;;  %p452_p0 = scmp.ge.s32.totalorder %s511_s20, 1  ;;  %s511_s20 = sphi %s548_s20, %s15_s20   ;;  %s507_s19 = sphi %s546_s19, %s604_s19   ;;  %s503_s18 = sphi %s544_s18, %s603_s18  }
   0x3   : > { %p29_p1 = scmp.ge.s32.totalorder %s27_s21, 2  ;;  %p228_p2 = scmp.lt.s32.totalorder %s511_s20, 3 }
   0x5   : > { %s606_s21 = smov (%p29_p1, %s27_s21), 0  ;;  %p229_p3 = pnand %p452_p0, %p228_p2 }
   0x6   : > { %p271_p4 = scmp.lt.s32.totalorder (!%p229_p3), %s503_s18, 1 }
   0x7   : > { %232 = sbr.rel (%p229_p3) target bundleno = 289 (0x121), region = 40 }
   0xc   : > { %s608_s18 = smov (!%p271_p4, %s503_s18), 1  ;;  %v297_v0 = vld [vmem:[%s598_s1] sm:$0xff]  ;;  %vm303_vm0 = vcmask 261120   ;;  %v513_v6 = vmov 32.0  }
   0xd   : > { %s562_s22 = sshll.u32 %s608_s18, 3  ;;  %485 = vrcp.f32 %v513_v6  ;;  %v483_v27 = vld [vmem:[%s600_s3] ss:$0 sm:$0xff] }
   0xe   : > { %s277_s27 = scalar_lea.vmem %s597_s0, %s562_s22  ;;  %s288_s30 = scalar_lea.vmem %s599_s2, %s562_s22  ;;  %v484_v29 = vld [vmem:[%s601_s4] ss:$0 sm:$0xff] }
   0xf   : > { %v296_v1 = vld [vmem:[%s277_s27] sm:$0xff]  ;;  %s295_s12 = scalar_lea.vmem %s602_s5, %s562_s22 }
  0x10   : > { %v299_v2 = vld [vmem:[%s288_s30] sm:$0xff]  ;;  %v298_v3 = vadd.f32 %v297_v0, %v296_v1 }
  0x12   : > { %v300_v4 = vadd.f32 %v299_v2, %v298_v3 }
  0x13   : > { %v486_v7 = vpop.eup %485 }
  0x14   : > { %v304_v5 = vsel %vm303_vm0, %v300_v4, 0.0  ;;  %v308_v8 = vmul.f32 32.0, %v486_v7  ;;  %vm312_vm1 = vweird.f32 %v486_v7 }
  0x15   : > { %305 = vadd.xlane.f32.xlu0 %v304_v5 }
  0x16   : > { %v309_v9 = vsub.f32 1.0, %v308_v8 }
  0x18   : > { %v310_v10 = vmul.f32 %v486_v7, %v309_v9 }
  0x1a   : > { %v311_v11 = vadd.f32 %v486_v7, %v310_v10 }
  0x1c   : > { %v313_v12 = vsel %vm312_vm1, %v486_v7, %v311_v11 }
  0x88   : > { %v306_v13 = vpop.xlane.xlu0 %305 }
  0x89   : > { %v314_v14 = vmul.f32 %v313_v12, %v306_v13 }
  0x8b   : > { %v315_v15 = vsub.f32 %v300_v4, %v314_v14 }
  0x8d   : > { %v316_v16 = vmul.f32 %v315_v15, %v315_v15 }
  0x8f   : > { %v317_v17 = vsel %vm303_vm0, %v316_v16, 0.0 }
  0x90   : > { %318 = vadd.xlane.f32.xlu0 %v317_v17 }
 0x103   : > { %v319_v18 = vpop.xlane.xlu0 %318 }
 0x104   : > { %v320_v19 = vmul.f32 %v319_v18, %v313_v12 }
 0x106   : > { %v321_v20 = vadd.f32 1e-12, %v320_v19 }
 0x108   : > { %487 = vrsqrt.f32 %v321_v20  ;;  %vm328_vm3 = vweird.f32 %v321_v20 }
 0x10e   : > { %v488_v21 = vpop.eup %487 }
 0x10f   : > { %v323_v22 = vmul.f32 %v488_v21, %v321_v20  ;;  %vm329_vm2 = vweird.f32 %v488_v21 }
 0x110   : > { %vm330_vm4 = vmor %vm328_vm3, %vm329_vm2 }
 0x111   : > { %v324_v23 = vmul.f32 %v488_v21, %v323_v22 }
 0x113   : > { %v325_v24 = vmul.f32 0.5, %v324_v23 }
 0x115   : > { %v326_v25 = vsub.f32 1.5, %v325_v24 }
 0x117   : > { %v327_v26 = vmul.f32 %v488_v21, %v326_v25 }
 0x119   : > { %v331_v28 = vsel %vm330_vm4, %v488_v21, %v327_v26 }
 0x11a   : > { %v332_v30 = vmul.f32 %v331_v28, %v315_v15 }
 0x11c   : > { %v336_v31 = vmul.f32 %v483_v27, %v332_v30 }
 0x11e   : > { %v340_v32 = vadd.f32 %v484_v29, %v336_v31 }
 0x120   : > { %341 = vst.msk [vmem:[%s295_s12] sm:$0xff] %vm303_vm0, %v340_v32 }
 0x121 PF: > { %s15_s20 = sadd.s32 1, %s511_s20   ;;  %s603_s18 = smov %s507_s19 }
 0x122   : > { %p12_p5 = scmp.ge.s32.totalorder %s15_s20, 4   ;;  %s604_s19 = smov %s606_s21 }
 0x124   :  { %14 = sbr.rel (!%p12_p5) target bundleno = 2 (0x2), region = 76 }

// kernel: fuse_bert_forward.12
= control target key start
LH: loop header
LB: loop body
LE: loop exit
PB: predicated region body
PF: predicated region fallthrough
CT: control target
= control target key end

     0   :  { %vm18_vm0 = vcmask 785408   ;;  %v89_v2 = vmov 0.0   ;;  %vm29_vm1 = vcmask 261120   ;;  %s143_s1 = inlined_call_operand.vmem [shape: f32[32,96], index: 1, kind: input, shape index: {}]   ;;  %s144_s2 = inlined_call_operand.vmem [shape: f32[1,96], index: 2, kind: input, shape index: {}]   ;;  %s145_s0 = inlined_call_operand.vmem [shape: f32[16,32], index: 0, kind: input, shape index: {}]   ;;  %s146_s3 = inlined_call_operand.vmem [shape: f32[16,96], index: 3, kind: output, shape index: {}]  }
   0x1   :  { %v28_v0 = vld [vmem:[%s143_s1 + $0x18] sm:$0xff]  ;;  %v27_v1 = vld [vmem:[%s143_s1 + $0x10] sm:$0xff]  ;;  %19 = vst.msk [vmem:[#allocation2] sm:$0xff] %vm18_vm0, %v89_v2  ;;  %v26_v3 = vld [vmem:[%s143_s1 + $0x8] sm:$0xff] }
   0x2   :  { %48 = vmatpush.msra.mxu0 %v28_v0  ;;  %83 = vmatpush.msra.mxu1 %v28_v0  ;;  %20 = vst.msk [vmem:[#allocation2 + $0x8] sm:$0xff] %vm18_vm0, %v89_v2  ;;  %v25_v4 = vld [vmem:[%s143_s1] sm:$0xff]  ;;  %v24_v6 = vld [vmem:[%s145_s0 + $0x8] sm:$0xff] }
   0x3   :  { %v23_v5 = vld [vmem:[%s145_s0] sm:$0xff] }
   0x4   :  { %49 = vmatpush.msra.mxu0 %v27_v1  ;;  %84 = vmatpush.msra.mxu1 %v27_v1  ;;  %v88_v13 = vld [vmem:[%s144_s2] ss:$0 sm:$0xff] }
   0x6   :  { %50 = vmatpush.msra.mxu0 %v26_v3  ;;  %85 = vmatpush.msra.mxu1 %v26_v3 }
   0x8   :  { %51 = vmatpush.msra.mxu0 %v25_v4  ;;  %86 = vmatpush.msra.mxu1 %v25_v4  ;;  %v21_v7 = vld [vmem:[#allocation2] sm:$0xff] }
   0x9   :  { %81 = vmatmul.msk.f32.vlgmr.msra.gmra.mxu0 %vm29_vm1, %v23_v5  ;;  %82 = vmatmul.msk.f32.vlgmr.msra.gmra.mxu1 %vm29_vm1, %v24_v6  ;;  %v22_v8 = vld [vmem:[#allocation2 + $0x8] sm:$0xff] }
  0x86   :  { %v53_v9 = vpop.f32.mrf.mxu0  ;;  %v56_v10 = vpop.f32.mrf.mxu1 }
  0x87   :  { %v59_v11 = vadd.f32 %v53_v9, %v21_v7  ;;  %v60_v12 = vadd.f32 %v56_v10, %v22_v8 }
  0x89   :  { %62 = vst.msk [vmem:[#allocation2] sm:$0xff] %vm18_vm0, %v59_v11 }
  0x8a   :  { %63 = vst.msk [vmem:[#allocation2 + $0x8] sm:$0xff] %vm18_vm0, %v60_v12 }
  0x90   :  { %v67_v14 = vld [vmem:[#allocation2] sm:$0xff] }
  0x91   :  { %v73_v15 = vadd.f32 %v88_v13, %v67_v14  ;;  %v68_v16 = vld [vmem:[#allocation2 + $0x8] sm:$0xff] }
  0x92   :  { %v74_v17 = vadd.f32 %v88_v13, %v68_v16 }
  0x93   :  { %75 = vst.msk [vmem:[%s146_s3] sm:$0xff] %vm18_vm0, %v73_v15 }
  0x94   :  { %76 = vst.msk [vmem:[%s146_s3 + $0x8] sm:$0xff] %vm18_vm0, %v74_v17 }

// kernel: fuse_bert_forward.14
= control target key start
LH: loop header
LB: loop body
LE: loop exit
PB: predicated region body
PF: predicated region fallthrough
CT: control target
= control target key end

     0   :  { %vm27_vm0 = vcmask 261120   ;;  %v173_v2 = vmov 0.0   ;;  %v174_v24 = vmov 32.0   ;;  %s261_s1 = inlined_call_operand.vmem [shape: f32[32,32], index: 1, kind: input, shape index: {}]   ;;  %s262_s0 = inlined_call_operand.vmem [shape: f32[16,32], index: 0, kind: input, shape index: {}]   ;;  %s263_s2 = inlined_call_operand.vmem [shape: f32[1,32], index: 2, kind: input, shape index: {}]   ;;  %s264_s3 = inlined_call_operand.vmem [shape: f32[16,32], index: 3, kind: input, shape index: {}]   ;;  %s265_s4 = inlined_call_operand.vmem [shape: f32[1,32], index: 4, kind: input, shape index: {}]   ;;  %s266_s5 = inlined_call_operand.vmem [shape: f32[1,32], index: 5, kind: input, shape index: {}]   ;;  %s267_s6 = inlined_call_operand.vmem [shape: f32[16,32], index: 6, kind: output, shape index: {}]  }
   0x1   :  { %v37_v0 = vld [vmem:[%s261_s1 + $0x18] sm:$0xff]  ;;  %v36_v1 = vld [vmem:[%s261_s1 + $0x10] sm:$0xff]  ;;  %28 = vst.msk [vmem:[#allocation2] sm:$0xff] %vm27_vm0, %v173_v2  ;;  %v35_v3 = vld [vmem:[%s261_s1 + $0x8] sm:$0xff]  ;;  %167 = vrcp.f32 %v174_v24 }
   0x2   :  { %57 = vmatpush.msra.mxu0 %v37_v0  ;;  %158 = vmatpush.msra.mxu1 %v37_v0  ;;  %29 = vst.msk [vmem:[#allocation2 + $0x8] sm:$0xff] %vm27_vm0, %v173_v2  ;;  %v34_v4 = vld [vmem:[%s261_s1] sm:$0xff]  ;;  %v33_v6 = vld [vmem:[%s262_s0 + $0x8] sm:$0xff] }
   0x3   :  { %v32_v5 = vld [vmem:[%s262_s0] sm:$0xff]  ;;  %v84_v20 = vld [vmem:[%s264_s3 + $0x8] sm:$0xff] }
   0x4   :  { %58 = vmatpush.msra.mxu0 %v36_v1  ;;  %159 = vmatpush.msra.mxu1 %v36_v1  ;;  %v164_v13 = vld [vmem:[%s263_s2] ss:$0 sm:$0xff] }
   0x5   :  { %v83_v15 = vld [vmem:[%s264_s3] sm:$0xff] }
   0x6   :  { %59 = vmatpush.msra.mxu0 %v35_v3  ;;  %160 = vmatpush.msra.mxu1 %v35_v3  ;;  %v165_v55 = vld [vmem:[%s265_s4] ss:$0 sm:$0xff] }
   0x7   :  { %v168_v25 = vpop.eup %167  ;;  %v166_v58 = vld [vmem:[%s266_s5] ss:$0 sm:$0xff] }
   0x8   :  { %60 = vmatpush.msra.mxu0 %v34_v4  ;;  %161 = vmatpush.msra.mxu1 %v34_v4  ;;  %v30_v7 = vld [vmem:[#allocation2] sm:$0xff]  ;;  %v96_v26 = vmul.f32 32.0, %v168_v25  ;;  %vm100_vm1 = vweird.f32 %v168_v25 }
   0x9   :  { %156 = vmatmul.msk.f32.vlgmr.msra.gmra.mxu0 %vm27_vm0, %v32_v5  ;;  %157 = vmatmul.msk.f32.vlgmr.msra.gmra.mxu1 %vm27_vm0, %v33_v6  ;;  %v31_v8 = vld [vmem:[#allocation2 + $0x8] sm:$0xff] }
   0xa   :  { %v97_v27 = vsub.f32 1.0, %v96_v26 }
   0xc   :  { %v98_v28 = vmul.f32 %v168_v25, %v97_v27 }
   0xe   :  { %v99_v29 = vadd.f32 %v168_v25, %v98_v28 }
  0x10   :  { %v101_v30 = vsel %vm100_vm1, %v168_v25, %v99_v29 }
  0x86   :  { %v62_v9 = vpop.f32.mrf.mxu0  ;;  %v65_v10 = vpop.f32.mrf.mxu1 }
  0x87   :  { %v68_v11 = vadd.f32 %v62_v9, %v30_v7  ;;  %v69_v12 = vadd.f32 %v65_v10, %v31_v8 }
  0x89   :  { %70 = vst.msk [vmem:[#allocation2] sm:$0xff] %vm27_vm0, %v68_v11 }
  0x8a   :  { %71 = vst.msk [vmem:[#allocation2 + $0x8] sm:$0xff] %vm27_vm0, %v69_v12 }
  0x90   :  { %v75_v14 = vld [vmem:[#allocation2] sm:$0xff] }
  0x91   :  { %v81_v16 = vadd.f32 %v164_v13, %v75_v14  ;;  %v76_v17 = vld [vmem:[#allocation2 + $0x8] sm:$0xff] }
  0x92   :  { %v82_v19 = vadd.f32 %v164_v13, %v76_v17 }
  0x93   :  { %v85_v18 = vadd.f32 %v83_v15, %v81_v16 }
  0x94   :  { %v86_v22 = vadd.f32 %v84_v20, %v82_v19 }
  0x95   :  { %v89_v21 = vsel %vm27_vm0, %v85_v18, 0.0 }
  0x96   :  { %90 = vadd.xlane.f32.xlu0 %v89_v21  ;;  %v92_v23 = vsel %vm27_vm0, %v86_v22, 0.0 }
  0x9e   :  { %93 = vadd.xlane.f32.xlu0 %v92_v23 }
 0x109   :  { %v91_v31 = vpop.xlane.xlu0 %90 }
 0x10a   :  { %v102_v32 = vmul.f32 %v101_v30, %v91_v31 }
 0x10c   :  { %v104_v33 = vsub.f32 %v85_v18, %v102_v32 }
 0x10e   :  { %v106_v34 = vmul.f32 %v104_v33, %v104_v33 }
 0x110   :  { %v108_v35 = vsel %vm27_vm0, %v106_v34, 0.0 }
 0x111   :  { %109 = vadd.xlane.f32.xlu1 %v108_v35  ;;  %v94_v36 = vpop.xlane.xlu0 %93 }
 0x112   :  { %v103_v37 = vmul.f32 %v101_v30, %v94_v36 }
 0x114   :  { %v105_v38 = vsub.f32 %v86_v22, %v103_v37 }
 0x116   :  { %v107_v39 = vmul.f32 %v105_v38, %v105_v38 }
 0x118   :  { %v111_v40 = vsel %vm27_vm0, %v107_v39, 0.0 }
 0x119   :  { %112 = vadd.xlane.f32.xlu1 %v111_v40 }
 0x184   :  { %v110_v41 = vpop.xlane.xlu1 %109 }
 0x185   :  { %v114_v42 = vmul.f32 %v110_v41, %v101_v30 }
 0x187   :  { %v116_v43 = vadd.f32 1e-12, %v114_v42 }
 0x189   :  { %169 = vrsqrt.f32 %v116_v43  ;;  %vm124_vm3 = vweird.f32 %v116_v43 }
 0x18c   :  { %v113_v44 = vpop.xlane.xlu1 %112 }
 0x18d   :  { %v115_v45 = vmul.f32 %v113_v44, %v101_v30 }
 0x18f   :  { %v170_v46 = vpop.eup %169  ;;  %v117_v47 = vadd.f32 1e-12, %v115_v45 }
 0x190   :  { %v119_v48 = vmul.f32 %v170_v46, %v116_v43  ;;  %vm125_vm2 = vweird.f32 %v170_v46 }
 0x191   :  { %171 = vrsqrt.f32 %v117_v47  ;;  %vm126_vm4 = vmor %vm124_vm3, %vm125_vm2  ;;  %vm134_vm6 = vweird.f32 %v117_v47 }
 0x192   :  { %v120_v49 = vmul.f32 %v170_v46, %v119_v48 }
 0x194   :  { %v121_v50 = vmul.f32 0.5, %v120_v49 }
 0x196   :  { %v122_v51 = vsub.f32 1.5, %v121_v50 }
 0x197   :  { %v172_v52 = vpop.eup %171 }
 0x198   :  { %v123_v53 = vmul.f32 %v170_v46, %v122_v51  ;;  %v129_v54 = vmul.f32 %v172_v52, %v117_v47  ;;  %vm135_vm5 = vweird.f32 %v172_v52 }
 0x199   :  { %vm136_vm7 = vmor %vm134_vm6, %vm135_vm5 }
 0x19a   :  { %v127_v56 = vsel %vm126_vm4, %v170_v46, %v123_v53  ;;  %v130_v57 = vmul.f32 %v172_v52, %v129_v54 }
 0x19b   :  { %v138_v59 = vmul.f32 %v127_v56, %v104_v33 }
 0x19c   :  { %v131_v60 = vmul.f32 0.5, %v130_v57 }
 0x19d   :  { %v143_v61 = vmul.f32 %v165_v55, %v138_v59 }
 0x19e   :  { %v132_v62 = vsub.f32 1.5, %v131_v60 }
 0x19f   :  { %v148_v63 = vadd.f32 %v166_v58, %v143_v61 }
 0x1a0   :  { %v133_v0 = vmul.f32 %v172_v52, %v132_v62 }
 0x1a1   :  { %150 = vst.msk [vmem:[%s267_s6] sm:$0xff] %vm27_vm0, %v148_v63 }
 0x1a2   :  { %v137_v1 = vsel %vm136_vm7, %v172_v52, %v133_v0 }
 0x1a3   :  { %v139_v2 = vmul.f32 %v137_v1, %v105_v38 }
 0x1a5   :  { %v144_v3 = vmul.f32 %v165_v55, %v139_v2 }
 0x1a7   :  { %v149_v4 = vadd.f32 %v166_v58, %v144_v3 }
 0x1a9   :  { %151 = vst.msk [vmem:[%s267_s6 + $0x8] sm:$0xff] %vm27_vm0, %v149_v4 }

// kernel: fuse_bert_forward.15
= control target key start
LH: loop header
LB: loop body
LE: loop exit
PB: predicated region body
PF: predicated region fallthrough
CT: control target
= control target key end

     0   :  { %vm18_vm0 = vcmask 523264   ;;  %v183_v2 = vmov 0.0   ;;  %vm29_vm1 = vcmask 261120   ;;  %s255_s1 = inlined_call_operand.vmem [shape: f32[32,64], index: 1, kind: input, shape index: {}]   ;;  %s256_s2 = inlined_call_operand.vmem [shape: f32[1,64], index: 2, kind: input, shape index: {}]   ;;  %s257_s0 = inlined_call_operand.vmem [shape: f32[16,32], index: 0, kind: input, shape index: {}]   ;;  %s258_s3 = inlined_call_operand.vmem [shape: f32[16,64], index: 3, kind: output, shape index: {}]  }
   0x1   :  { %v28_v0 = vld [vmem:[%s255_s1 + $0x18] sm:$0xff]  ;;  %v27_v1 = vld [vmem:[%s255_s1 + $0x10] sm:$0xff]  ;;  %19 = vst.msk [vmem:[#allocation2] sm:$0xff] %vm18_vm0, %v183_v2  ;;  %v26_v3 = vld [vmem:[%s255_s1 + $0x8] sm:$0xff] }
   0x2   :  { %48 = vmatpush.msra.mxu0 %v28_v0  ;;  %173 = vmatpush.msra.mxu1 %v28_v0  ;;  %20 = vst.msk [vmem:[#allocation2 + $0x8] sm:$0xff] %vm18_vm0, %v183_v2  ;;  %v25_v4 = vld [vmem:[%s255_s1] sm:$0xff]  ;;  %v24_v6 = vld [vmem:[%s257_s0 + $0x8] sm:$0xff] }
   0x3   :  { %v23_v5 = vld [vmem:[%s257_s0] sm:$0xff] }
   0x4   :  { %49 = vmatpush.msra.mxu0 %v27_v1  ;;  %174 = vmatpush.msra.mxu1 %v27_v1  ;;  %v178_v13 = vld [vmem:[%s256_s2] ss:$0 sm:$0xff] }
   0x6   :  { %50 = vmatpush.msra.mxu0 %v26_v3  ;;  %175 = vmatpush.msra.mxu1 %v26_v3 }
   0x8   :  { %51 = vmatpush.msra.mxu0 %v25_v4  ;;  %176 = vmatpush.msra.mxu1 %v25_v4  ;;  %v21_v7 = vld [vmem:[#allocation2] sm:$0xff] }
   0x9   :  { %169 = vmatmul.msk.f32.vlgmr.msra.gmra.mxu0 %vm29_vm1, %v23_v5  ;;  %170 = vmatmul.msk.f32.vlgmr.msra.gmra.mxu1 %vm29_vm1, %v24_v6  ;;  %v22_v8 = vld [vmem:[#allocation2 + $0x8] sm:$0xff] }
  0x86   :  { %v53_v9 = vpop.f32.mrf.mxu0  ;;  %v56_v10 = vpop.f32.mrf.mxu1 }
  0x87   :  { %v59_v11 = vadd.f32 %v53_v9, %v21_v7  ;;  %v60_v12 = vadd.f32 %v56_v10, %v22_v8 }
  0x89   :  { %62 = vst.msk [vmem:[#allocation2] sm:$0xff] %vm18_vm0, %v59_v11 }
  0x8a   :  { %63 = vst.msk [vmem:[#allocation2 + $0x8] sm:$0xff] %vm18_vm0, %v60_v12 }
  0x90   :  { %v67_v14 = vld [vmem:[#allocation2] sm:$0xff] }
  0x91   :  { %v229_v15 = vadd.f32 %v178_v13, %v67_v14  ;;  %v68_v16 = vld [vmem:[#allocation2 + $0x8] sm:$0xff] }
  0x92   :  { %v231_v17 = vadd.f32 %v178_v13, %v68_v16 }
  0x93   :  { %v234_v18 = vmul.f32 0.70710677, %v229_v15 }
  0x94   :  { %v237_v19 = vmul.f32 0.70710677, %v231_v17 }
  0x95   :  { %v79_v20 = vmul.f32 %v234_v18, %v234_v18 }
  0x96   :  { %v119_v21 = vmul.f32 %v237_v19, %v237_v19 }
  0x97   :  { %v80_v22 = vmin.f32 %v79_v20, 16.0 }
  0x98   :  { %v120_v23 = vmin.f32 %v119_v21, 16.0 }
  0x99   :  { %v81_v24 = vmul.f32 2.1237322e-06, %v80_v22  ;;  %v92_v25 = vmul.f32 3.8918573e-05, %v80_v22 }
  0x9a   :  { %v121_v26 = vmul.f32 2.1237322e-06, %v120_v23  ;;  %v132_v27 = vmul.f32 3.8918573e-05, %v120_v23 }
  0x9b   :  { %v82_v28 = vadd.f32 0.00028619796, %v81_v24  ;;  %v93_v29 = vadd.f32 0.001143296, %v92_v25 }
  0x9c   :  { %v122_v30 = vadd.f32 0.00028619796, %v121_v26  ;;  %v133_v31 = vadd.f32 0.001143296, %v132_v27 }
  0x9d   :  { %v83_v32 = vmul.f32 %v82_v28, %v80_v22  ;;  %v94_v33 = vmul.f32 %v93_v29, %v80_v22 }
  0x9e   :  { %v123_v34 = vmul.f32 %v122_v30, %v120_v23  ;;  %v134_v35 = vmul.f32 %v133_v31, %v120_v23  ;;  %v75_v30 = vmul.f32 0.5, %v229_v15 }
  0x9f   :  { %v84_v36 = vadd.f32 0.0036580483, %v83_v32  ;;  %v95_v37 = vadd.f32 0.014752088, %v94_v33  ;;  %v76_v32 = vmul.f32 0.5, %v231_v17 }
  0xa0   :  { %v135_v38 = vadd.f32 0.014752088, %v134_v35  ;;  %v124_v40 = vadd.f32 0.0036580483, %v123_v34 }
  0xa1   :  { %v96_v39 = vmul.f32 %v95_v37, %v80_v22  ;;  %v85_v42 = vmul.f32 %v84_v36, %v80_v22 }
  0xa2   :  { %v136_v41 = vmul.f32 %v135_v38, %v120_v23  ;;  %v125_v46 = vmul.f32 %v124_v40, %v120_v23 }
  0xa3   :  { %v97_v43 = vadd.f32 0.112945676, %v96_v39  ;;  %v86_v48 = vadd.f32 0.05243302, %v85_v42 }
  0xa4   :  { %v137_v44 = vadd.f32 0.112945676, %v136_v41  ;;  %v126_v52 = vadd.f32 0.05243302, %v125_v46 }
  0xa5   :  { %v98_v45 = vmul.f32 %v97_v43, %v80_v22  ;;  %v87_v54 = vmul.f32 %v86_v48, %v80_v22 }
  0xa6   :  { %v138_v47 = vmul.f32 %v137_v44, %v120_v23  ;;  %v127_v57 = vmul.f32 %v126_v52, %v120_v23 }
  0xa7   :  { %v99_v49 = vadd.f32 0.4994258, %v98_v45  ;;  %v88_v58 = vadd.f32 0.18741608, %v87_v54 }
  0xa8   :  { %v139_v50 = vadd.f32 0.4994258, %v138_v47  ;;  %v128_v59 = vadd.f32 0.18741608, %v127_v57 }
  0xa9   :  { %v100_v51 = vmul.f32 %v99_v49, %v80_v22  ;;  %v89_v61 = vmul.f32 %v88_v58, %v80_v22 }
  0xaa   :  { %v140_v53 = vmul.f32 %v139_v50, %v120_v23  ;;  %v129_v0 = vmul.f32 %v128_v59, %v120_v23 }
  0xab   :  { %v101_v55 = vadd.f32 1.0, %v100_v51  ;;  %v90_v3 = vadd.f32 1.1283791, %v89_v61 }
  0xac   :  { %v141_v56 = vadd.f32 1.0, %v140_v53  ;;  %v130_v9 = vadd.f32 1.1283791, %v129_v0 }
  0xad   :  { %179 = vrcp.f32 %v101_v55  ;;  %v113_v4 = vand.u32 2147483648, %v101_v55  ;;  %v111_v7 = vand.u32 2147483647, %v101_v55  ;;  %vm107_vm4 = vweird.f32 %v101_v55 }
  0xae   :  { %181 = vrcp.f32 %v141_v56  ;;  %v153_v8 = vand.u32 2147483648, %v141_v56  ;;  %v151_v11 = vand.u32 2147483647, %v141_v56  ;;  %vm147_vm6 = vweird.f32 %v141_v56 }
  0xaf   :  { %v114_v13 = vor.u32 1.1754944e-38, %v113_v4  ;;  %v91_v16 = vmul.f32 %v90_v3, %v234_v18  ;;  %vm112_vm7 = vcmp.eq.f32.partialorder %v111_v7, 8.507059e+37  ;;  %v131_v23 = vmul.f32 %v130_v9, %v237_v19 }
  0xb0   :  { %v154_v21 = vor.u32 1.1754944e-38, %v153_v8  ;;  %vm152_vm9 = vcmp.eq.f32.partialorder %v151_v11, 8.507059e+37 }
  0xb3   :  { %v180_v60 = vpop.eup %179 }
  0xb4   :  { %v182_v62 = vpop.eup %181  ;;  %v103_v63 = vmul.f32 %v180_v60, %v101_v55  ;;  %vm108_vm2 = vweird.f32 %v180_v60 }
  0xb5   :  { %v143_v1 = vmul.f32 %v182_v62, %v141_v56  ;;  %vm148_vm3 = vweird.f32 %v182_v62  ;;  %vm109_vm5 = vmor %vm107_vm4, %vm108_vm2 }
  0xb6   :  { %v104_v2 = vsub.f32 1.0, %v103_v63  ;;  %vm149_vm8 = vmor %vm147_vm6, %vm148_vm3 }
  0xb7   :  { %v144_v5 = vsub.f32 1.0, %v143_v1 }
  0xb8   :  { %v105_v6 = vmul.f32 %v180_v60, %v104_v2 }
  0xb9   :  { %v145_v10 = vmul.f32 %v182_v62, %v144_v5 }
  0xba   :  { %v106_v12 = vadd.f32 %v180_v60, %v105_v6 }
  0xbb   :  { %v146_v14 = vadd.f32 %v182_v62, %v145_v10 }
  0xbc   :  { %v110_v20 = vsel %vm109_vm5, %v180_v60, %v106_v12 }
  0xbd   :  { %v115_v22 = vsel %vm112_vm7, %v114_v13, %v110_v20  ;;  %v150_v24 = vsel %vm149_vm8, %v182_v62, %v146_v14 }
  0xbe   :  { %v116_v25 = vmul.f32 %v115_v22, %v91_v16  ;;  %v155_v26 = vsel %vm152_vm9, %v154_v21, %v150_v24 }
  0xbf   :  { %v156_v27 = vmul.f32 %v155_v26, %v131_v23 }
  0xc0   :  { %v171_v28 = vclamps-f32 %v116_v25, 1.0 }
  0xc1   :  { %v172_v29 = vclamps-f32 %v156_v27, 1.0 }
  0xc2   :  { %v159_v31 = vadd.f32 1.0, %v171_v28 }
  0xc3   :  { %v160_v18 = vadd.f32 1.0, %v172_v29 }
  0xc4   :  { %v161_v33 = vmul.f32 %v159_v31, %v75_v30 }
  0xc5   :  { %v162_v34 = vmul.f32 %v160_v18, %v76_v32 }
  0xc6   :  { %163 = vst.msk [vmem:[%s258_s3] sm:$0xff] %vm18_vm0, %v161_v33 }
  0xc7   :  { %164 = vst.msk [vmem:[%s258_s3 + $0x8] sm:$0xff] %vm18_vm0, %v162_v34 }

// kernel: fuse_bert_forward.16
= control target key start
LH: loop header
LB: loop body
LE: loop exit
PB: predicated region body
PF: predicated region fallthrough
CT: control target
= control target key end

     0   :  { %vm27_vm0 = vcmask 261120   ;;  %v182_v2 = vmov 0.0   ;;  %vm42_vm1 = vcmask 523264   ;;  %v183_v28 = vmov 32.0   ;;  %s280_s1 = inlined_call_operand.vmem [shape: f32[64,32], index: 1, kind: input, shape index: {}]   ;;  %s281_s0 = inlined_call_operand.vmem [shape: f32[16,64], index: 0, kind: input, shape index: {}]   ;;  %s282_s2 = inlined_call_operand.vmem [shape: f32[1,32], index: 2, kind: input, shape index: {}]   ;;  %s283_s3 = inlined_call_operand.vmem [shape: f32[16,32], index: 3, kind: input, shape index: {}]   ;;  %s284_s4 = inlined_call_operand.vmem [shape: f32[1,32], index: 4, kind: input, shape index: {}]   ;;  %s285_s5 = inlined_call_operand.vmem [shape: f32[1,32], index: 5, kind: input, shape index: {}]   ;;  %s286_s6 = inlined_call_operand.vmem [shape: f32[16,32], index: 6, kind: output, shape index: {}]  }
   0x1   :  { %v41_v0 = vld [vmem:[%s280_s1 + $0x38] sm:$0xff]  ;;  %v40_v1 = vld [vmem:[%s280_s1 + $0x30] sm:$0xff]  ;;  %28 = vst.msk [vmem:[#allocation2] sm:$0xff] %vm27_vm0, %v182_v2  ;;  %v39_v3 = vld [vmem:[%s280_s1 + $0x28] sm:$0xff]  ;;  %176 = vrcp.f32 %v183_v28 }
   0x2   :  { %57 = vmatpush.msra.mxu0 %v41_v0  ;;  %163 = vmatpush.msra.mxu1 %v41_v0  ;;  %29 = vst.msk [vmem:[#allocation2 + $0x8] sm:$0xff] %vm27_vm0, %v182_v2  ;;  %v38_v4 = vld [vmem:[%s280_s1 + $0x20] sm:$0xff]  ;;  %v37_v5 = vld [vmem:[%s280_s1 + $0x18] sm:$0xff]  ;;  %v36_v6 = vld [vmem:[%s280_s1 + $0x10] sm:$0xff] }
   0x3   :  { %v35_v7 = vld [vmem:[%s280_s1 + $0x8] sm:$0xff]  ;;  %v34_v8 = vld [vmem:[%s280_s1] sm:$0xff] }
   0x4   :  { %58 = vmatpush.msra.mxu0 %v40_v1  ;;  %164 = vmatpush.msra.mxu1 %v40_v1  ;;  %v32_v9 = vld [vmem:[%s281_s0] sm:$0xff]  ;;  %v33_v10 = vld [vmem:[%s281_s0 + $0x8] sm:$0xff] }
   0x5   :  { %v173_v17 = vld [vmem:[%s282_s2] ss:$0 sm:$0xff]  ;;  %v89_v24 = vld [vmem:[%s283_s3 + $0x8] sm:$0xff] }
   0x6   :  { %59 = vmatpush.msra.mxu0 %v39_v3  ;;  %165 = vmatpush.msra.mxu1 %v39_v3  ;;  %v88_v19 = vld [vmem:[%s283_s3] sm:$0xff] }
   0x7   :  { %v177_v29 = vpop.eup %176  ;;  %v174_v59 = vld [vmem:[%s284_s4] ss:$0 sm:$0xff] }
   0x8   :  { %60 = vmatpush.msra.mxu0 %v38_v4  ;;  %166 = vmatpush.msra.mxu1 %v38_v4  ;;  %v30_v11 = vld [vmem:[#allocation2] sm:$0xff]  ;;  %v101_v30 = vmul.f32 32.0, %v177_v29  ;;  %vm105_vm2 = vweird.f32 %v177_v29 }
   0x9   :  { %v31_v12 = vld [vmem:[#allocation2 + $0x8] sm:$0xff]  ;;  %v175_v62 = vld [vmem:[%s285_s5] ss:$0 sm:$0xff] }
   0xa   :  { %61 = vmatpush.msra.mxu0 %v37_v5  ;;  %167 = vmatpush.msra.mxu1 %v37_v5  ;;  %v102_v31 = vsub.f32 1.0, %v101_v30 }
   0xc   :  { %62 = vmatpush.msra.mxu0 %v36_v6  ;;  %168 = vmatpush.msra.mxu1 %v36_v6  ;;  %v103_v32 = vmul.f32 %v177_v29, %v102_v31 }
   0xe   :  { %63 = vmatpush.msra.mxu0 %v35_v7  ;;  %169 = vmatpush.msra.mxu1 %v35_v7  ;;  %v104_v33 = vadd.f32 %v177_v29, %v103_v32 }
  0x10   :  { %64 = vmatpush.msra.mxu0 %v34_v8  ;;  %170 = vmatpush.msra.mxu1 %v34_v8  ;;  %v106_v34 = vsel %vm105_vm2, %v177_v29, %v104_v33 }
  0x11   :  { %161 = vmatmul.msk.f32.vlgmr.msra.gmra.mxu0 %vm42_vm1, %v32_v9  ;;  %162 = vmatmul.msk.f32.vlgmr.msra.gmra.mxu1 %vm42_vm1, %v33_v10 }
  0x8e   :  { %v66_v13 = vpop.f32.mrf.mxu0  ;;  %v69_v14 = vpop.f32.mrf.mxu1 }
  0x8f   :  { %v72_v15 = vadd.f32 %v66_v13, %v30_v11  ;;  %v73_v16 = vadd.f32 %v69_v14, %v31_v12 }
  0x91   :  { %75 = vst.msk [vmem:[#allocation2] sm:$0xff] %vm27_vm0, %v72_v15 }
  0x92   :  { %76 = vst.msk [vmem:[#allocation2 + $0x8] sm:$0xff] %vm27_vm0, %v73_v16 }
  0x98   :  { %v80_v18 = vld [vmem:[#allocation2] sm:$0xff] }
  0x99   :  { %v86_v20 = vadd.f32 %v173_v17, %v80_v18  ;;  %v81_v21 = vld [vmem:[#allocation2 + $0x8] sm:$0xff] }
  0x9a   :  { %v87_v23 = vadd.f32 %v173_v17, %v81_v21 }
  0x9b   :  { %v90_v22 = vadd.f32 %v88_v19, %v86_v20 }
  0x9c   :  { %v91_v26 = vadd.f32 %v89_v24, %v87_v23 }
  0x9d   :  { %v94_v25 = vsel %vm27_vm0, %v90_v22, 0.0 }
  0x9e   :  { %95 = vadd.xlane.f32.xlu0 %v94_v25  ;;  %v97_v27 = vsel %vm27_vm0, %v91_v26, 0.0 }
  0xa6   :  { %98 = vadd.xlane.f32.xlu0 %v97_v27 }
 0x111   :  { %v96_v35 = vpop.xlane.xlu0 %95 }
 0x112   :  { %v107_v36 = vmul.f32 %v106_v34, %v96_v35 }
 0x114   :  { %v109_v37 = vsub.f32 %v90_v22, %v107_v36 }
 0x116   :  { %v111_v38 = vmul.f32 %v109_v37, %v109_v37 }
 0x118   :  { %v113_v39 = vsel %vm27_vm0, %v111_v38, 0.0 }
 0x119   :  { %114 = vadd.xlane.f32.xlu1 %v113_v39  ;;  %v99_v40 = vpop.xlane.xlu0 %98 }
 0x11a   :  { %v108_v41 = vmul.f32 %v106_v34, %v99_v40 }
 0x11c   :  { %v110_v42 = vsub.f32 %v91_v26, %v108_v41 }
 0x11e   :  { %v112_v43 = vmul.f32 %v110_v42, %v110_v42 }
 0x120   :  { %v116_v44 = vsel %vm27_vm0, %v112_v43, 0.0 }
 0x121   :  { %117 = vadd.xlane.f32.xlu1 %v116_v44 }
 0x18c   :  { %v115_v45 = vpop.xlane.xlu1 %114 }
 0x18d   :  { %v119_v46 = vmul.f32 %v115_v45, %v106_v34 }
 0x18f   :  { %v121_v47 = vadd.f32 1e-12, %v119_v46 }
 0x191   :  { %178 = vrsqrt.f32 %v121_v47  ;;  %vm129_vm4 = vweird.f32 %v121_v47 }
 0x194   :  { %v118_v48 = vpop.xlane.xlu1 %117 }
 0x195   :  { %v120_v49 = vmul.f32 %v118_v48, %v106_v34 }
 0x197   :  { %v179_v50 = vpop.eup %178  ;;  %v122_v51 = vadd.f32 1e-12, %v120_v49 }
 0x198   :  { %v124_v52 = vmul.f32 %v179_v50, %v121_v47  ;;  %vm130_vm3 = vweird.f32 %v179_v50 }
 0x199   :  { %180 = vrsqrt.f32 %v122_v51  ;;  %vm131_vm5 = vmor %vm129_vm4, %vm130_vm3  ;;  %vm139_vm7 = vweird.f32 %v122_v51 }
 0x19a   :  { %v125_v53 = vmul.f32 %v179_v50, %v124_v52 }
 0x19c   :  { %v126_v54 = vmul.f32 0.5, %v125_v53 }
 0x19e   :  { %v127_v55 = vsub.f32 1.5, %v126_v54 }
 0x19f   :  { %v181_v56 = vpop.eup %180 }
 0x1a0   :  { %v128_v57 = vmul.f32 %v179_v50, %v127_v55  ;;  %v134_v58 = vmul.f32 %v181_v56, %v122_v51  ;;  %vm140_vm6 = vweird.f32 %v181_v56 }
 0x1a1   :  { %vm141_vm8 = vmor %vm139_vm7, %vm140_vm6 }
 0x1a2   :  { %v132_v60 = vsel %vm131_vm5, %v179_v50, %v128_v57  ;;  %v135_v61 = vmul.f32 %v181_v56, %v134_v58 }
 0x1a3   :  { %v143_v63 = vmul.f32 %v132_v60, %v109_v37 }
 0x1a4   :  { %v136_v0 = vmul.f32 0.5, %v135_v61 }
 0x1a5   :  { %v148_v1 = vmul.f32 %v174_v59, %v143_v63 }
 0x1a6   :  { %v137_v2 = vsub.f32 1.5, %v136_v0 }
 0x1a7   :  { %v153_v3 = vadd.f32 %v175_v62, %v148_v1 }
 0x1a8   :  { %v138_v4 = vmul.f32 %v181_v56, %v137_v2 }
 0x1a9   :  { %155 = vst.msk [vmem:[%s286_s6] sm:$0xff] %vm27_vm0, %v153_v3 }
 0x1aa   :  { %v142_v5 = vsel %vm141_vm8, %v181_v56, %v138_v4 }
 0x1ab   :  { %v144_v6 = vmul.f32 %v142_v5, %v110_v42 }
 0x1ad   :  { %v149_v7 = vmul.f32 %v174_v59, %v144_v6 }
 0x1af   :  { %v154_v8 = vadd.f32 %v175_v62, %v149_v7 }
 0x1b1   :  { %156 = vst.msk [vmem:[%s286_s6 + $0x8] sm:$0xff] %vm27_vm0, %v154_v8 }

// kernel: fuse_bert_forward.13
= control target key start
LH: loop header
LB: loop body
LE: loop exit
PB: predicated region body
PF: predicated region fallthrough
CT: control target
= control target key end

     0   :  { %s3434_s15 = smov 0   ;;  %s3436_s16 = smov 0   ;;  %s3941_s0 = inlined_call_operand.vmem [shape: f32[2,8,3,2,16], index: 0, kind: input, shape index: {}, may-alias: {0,1,2}]   ;;  %s3942_s1 = inlined_call_operand.vmem [shape: f32[2,8,3,2,16], index: 1, kind: input, shape index: {}, may-alias: {0,1,2}]   ;;  %s3943_s2 = inlined_call_operand.vmem [shape: f32[2,8,3,2,16], index: 2, kind: input, shape index: {}, may-alias: {0,1,2}]   ;;  %s3944_s3 = inlined_call_operand.vmem [shape: f32[2,1,8], index: 3, kind: input, shape index: {}]   ;;  %s3945_s4 = inlined_call_operand.vmem [shape: f32[2,8,32], index: 4, kind: output, shape index: {}]  }
   0x1   :  { %s3438_s17 = smov 0   ;;  %s3440_s18 = smov 0  }
   0x2   :  { %s3442_s19 = smov 0  }
   0x3 LB: > { %s26_s20 = sadd.s32 1, %s3400_s18  ;;  %p42_p1 = scmp.ne.s32.totalorder %s3392_s16, %s3388_s15  ;;  %s3404_s19 = sphi %s3442_s19, %s14_s19   ;;  %s3400_s18 = sphi %s3440_s18, %s3950_s18   ;;  %s3396_s17 = sphi %s3438_s17, %s3949_s17   ;;  %s3392_s16 = sphi %s3436_s16, %s3948_s16   ;;  %s3388_s15 = sphi %s3434_s15, %s3947_s15  }
   0x4   : > { %p28_p0 = scmp.ge.s32.totalorder %s26_s20, 2  ;;  %p43_p2 = scmp.eq.s32.totalorder %s3404_s19, 0 }
   0x5   : > { %s35_s23 = sadd.s32 1, %s3392_s16  ;;  %p3170_p5 = scmp.ge.s32.totalorder %s3404_s19, 2 }
   0x6   : > { %s3952_s20 = smov (%p28_p0, %s26_s20), 0  ;;  %p3465_p3 = por %p43_p2, %p42_p1 }
   0x7   : > { %s30_s22 = ssub.s32 %s3400_s18, %s3952_s20  ;;  %174 = sbr.rel (%p3170_p5) target bundleno = 51 (0x33), region = 16 }
   0x8   : > { %p33_p4 = scmp.eq.s32.totalorder %s30_s22, 0 }
   0xa   : > { %s3473_s24 = scalar_select %p33_p4, %s3392_s16, %s35_s23  }
   0xc   : > { %177 = sbr.rel (!%p3465_p3) target bundleno = 25 (0x19), region = 20  ;;  %s179_s25 = sand.u32 (%p3465_p3), 1, %s3392_s16  }
   0xd   : > { %s3208_s26 = smul.u32 (%p3465_p3), 48, %s3400_s18  ;;  %s3171_s27 = sshll.u32 (%p3465_p3), %s179_s25, 4 }
   0xe   : > { %s181_s5 = scalar_lea.vmem (%p3465_p3), [#allocation2], %s3171_s27 }
   0xf   : > { %s187_s30 = scalar_lea.vmem (%p3465_p3), %s3941_s0, %s3208_s26 }
  0x10   : > { %v204_v0 = vld [vmem:[%s187_s30] sm:$0x3] (%p3465_p3)  ;;  %v206_v1 = vld [vmem:[%s187_s30 + $0x6] sm:$0x3] (%p3465_p3)  ;;  %v208_v2 = vld [vmem:[%s187_s30 + $0xc] sm:$0x3] (%p3465_p3) }
  0x11   : > { %205 = vst [vmem:[%s181_s5] sm:$0x3] %v204_v0  ;;  %v210_v3 = vld [vmem:[%s187_s30 + $0x12] sm:$0x3]  ;;  %v212_v4 = vld [vmem:[%s187_s30 + $0x18] sm:$0x3] }
  0x12   : > { %207 = vst [vmem:[%s181_s5 + $0x2] sm:$0x3] %v206_v1  ;;  %v214_v5 = vld [vmem:[%s187_s30 + $0x1e] sm:$0x3]  ;;  %v216_v6 = vld [vmem:[%s187_s30 + $0x24] sm:$0x3] }
  0x13   : > { %209 = vst [vmem:[%s181_s5 + $0x4] sm:$0x3] %v208_v2  ;;  %v218_v7 = vld [vmem:[%s187_s30 + $0x2a] sm:$0x3] }
  0x14   : > { %211 = vst [vmem:[%s181_s5 + $0x6] sm:$0x3] %v210_v3 }
  0x15   : > { %213 = vst [vmem:[%s181_s5 + $0x8] sm:$0x3] %v212_v4 }
  0x16   : > { %215 = vst [vmem:[%s181_s5 + $0xa] sm:$0x3] %v214_v5 }
  0x17   : > { %217 = vst [vmem:[%s181_s5 + $0xc] sm:$0x3] %v216_v6 }
  0x18   : > { %219 = vst [vmem:[%s181_s5 + $0xe] sm:$0x3] %v218_v7 }
  0x19 PF: > { %259 = sbr.rel (!%p3465_p3) target bundleno = 38 (0x26), region = 61  ;;  %s261_s6 = sand.u32 (%p3465_p3), 1, %s3392_s16  }
  0x1a   : > { %s3174_s7 = smul.u32 (%p3465_p3), 48, %s3400_s18  ;;  %s3173_s8 = sshll.u32 (%p3465_p3), %s261_s6, 4 }
  0x1b   : > { %s263_s12 = scalar_lea.vmem (%p3465_p3), [#allocation3], %s3173_s8 }
  0x1c   : > { %s3074_s11 = scalar_lea.vmem (%p3465_p3), %s3942_s1, %s3174_s7 }
  0x1d   : > { %v3175_v8 = vld [vmem:[%s3074_s11 + $0x2] sm:$0x3] (%p3465_p3)  ;;  %v3176_v9 = vld [vmem:[%s3074_s11 + $0x8] sm:$0x3] (%p3465_p3)  ;;  %v3177_v10 = vld [vmem:[%s3074_s11 + $0xe] sm:$0x3] (%p3465_p3) }
  0x1e   : > { %285 = vst [vmem:[%s263_s12] sm:$0x3] %v3175_v8  ;;  %v3178_v11 = vld [vmem:[%s3074_s11 + $0x14] sm:$0x3]  ;;  %v3179_v12 = vld [vmem:[%s3074_s11 + $0x1a] sm:$0x3] }
  0x1f   : > { %287 = vst [vmem:[%s263_s12 + $0x2] sm:$0x3] %v3176_v9  ;;  %v3180_v13 = vld [vmem:[%s3074_s11 + $0x20] sm:$0x3]  ;;  %v3181_v14 = vld [vmem:[%s3074_s11 + $0x26] sm:$0x3] }
  0x20   : > { %289 = vst [vmem:[%s263_s12 + $0x4] sm:$0x3] %v3177_v10  ;;  %v3182_v15 = vld [vmem:[%s3074_s11 + $0x2c] sm:$0x3] }
  0x21   : > { %291 = vst [vmem:[%s263_s12 + $0x6] sm:$0x3] %v3178_v11 }
  0x22   : > { %293 = vst [vmem:[%s263_s12 + $0x8] sm:$0x3] %v3179_v12 }
  0x23   : > { %295 = vst [vmem:[%s263_s12 + $0xa] sm:$0x3] %v3180_v13 }
  0x24   : > { %297 = vst [vmem:[%s263_s12 + $0xc] sm:$0x3] %v3181_v14 }
  0x25   : > { %299 = vst [vmem:[%s263_s12 + $0xe] sm:$0x3] %v3182_v15 }
  0x26 PF: > { %339 = sbr.rel (!%p3465_p3) target bundleno = 51 (0x33), region = 102  ;;  %s341_s13 = sand.u32 (%p3465_p3), 1, %s3392_s16  }
  0x27   : > { %s3184_s14 = smul.u32 (%p3465_p3), 48, %s3400_s18  ;;  %s3183_s22 = sshll.u32 (%p3465_p3), %s341_s13, 4 }
  0x28   : > { %s343_s27 = scalar_lea.vmem (%p3465_p3), [#allocation4], %s3183_s22 }
  0x29   : > { %s3080_s26 = scalar_lea.vmem (%p3465_p3), %s3943_s2, %s3184_s14 }
  0x2a   : > { %v3185_v16 = vld [vmem:[%s3080_s26 + $0x4] sm:$0x3] (%p3465_p3)  ;;  %v3186_v17 = vld [vmem:[%s3080_s26 + $0xa] sm:$0x3] (%p3465_p3)  ;;  %v3187_v18 = vld [vmem:[%s3080_s26 + $0x10] sm:$0x3] (%p3465_p3) }
  0x2b   : > { %365 = vst [vmem:[%s343_s27] sm:$0x3] %v3185_v16  ;;  %v3188_v19 = vld [vmem:[%s3080_s26 + $0x16] sm:$0x3]  ;;  %v3189_v20 = vld [vmem:[%s3080_s26 + $0x1c] sm:$0x3] }
  0x2c   : > { %367 = vst [vmem:[%s343_s27 + $0x2] sm:$0x3] %v3186_v17  ;;  %v3190_v21 = vld [vmem:[%s3080_s26 + $0x22] sm:$0x3]  ;;  %v3191_v22 = vld [vmem:[%s3080_s26 + $0x28] sm:$0x3] }
  0x2d   : > { %369 = vst [vmem:[%s343_s27 + $0x4] sm:$0x3] %v3187_v18  ;;  %v3192_v23 = vld [vmem:[%s3080_s26 + $0x2e] sm:$0x3] }
  0x2e   : > { %371 = vst [vmem:[%s343_s27 + $0x6] sm:$0x3] %v3188_v19 }
  0x2f   : > { %373 = vst [vmem:[%s343_s27 + $0x8] sm:$0x3] %v3189_v20 }
  0x30   : > { %375 = vst [vmem:[%s343_s27 + $0xa] sm:$0x3] %v3190_v21 }
  0x31   : > { %377 = vst [vmem:[%s343_s27 + $0xc] sm:$0x3] %v3191_v22 }
  0x32   : > { %379 = vst [vmem:[%s343_s27 + $0xe] sm:$0x3] %v3192_v23 }
  0x33 PF: > { %p3193_p6 = scmp.ge.s32.totalorder %s3404_s19, 1  ;;  %p424_p7 = scmp.lt.s32.totalorder %s3404_s19, 3 }
  0x35   : > { %p425_p8 = pnand %p3193_p6, %p424_p7 }
  0x36   : > { %s431_s21 = sand.u32 (!%p425_p8), 1, %s3388_s15   ;;  %p484_p9 = scmp.lt.s32.totalorder (!%p425_p8), %s3396_s17, 1 }
  0x37   : > { %428 = sbr.rel (%p425_p8) target bundleno = 1618 (0x652), region = 147  ;;  %s3500_s28 = sshll.u32 (!%p425_p8), %s431_s21, 4 }
  0x38   : > { %s440_s29 = scalar_lea.vmem (!%p425_p8), [#allocation3], %s3500_s28  ;;  %s433_s6 = scalar_lea.vmem (!%p425_p8), [#allocation2], %s3500_s28 }
  0x39   : > { %s3645_s7 = scalar_lea.vmem (!%p425_p8), [#allocation4], %s3500_s28  ;;  %s3408_s10 = smov (!%p425_p8), 16  }
  0x3c   : > { %v513_v24 = vld [vmem:[%s440_s29 + $0x6] sm:$0x3]  ;;  %v515_v25 = vld [vmem:[%s440_s29 + $0xa] sm:$0x3]  ;;  %v510_v26 = vld [vmem:[%s440_s29] sm:$0x3] }
  0x3d   : > { %v3277_v27 = vpack.i.bf16 %v515_v25, %v513_v24  ;;  %v511_v28 = vld [vmem:[%s440_s29 + $0x2] sm:$0x3]  ;;  %v516_v30 = vld [vmem:[%s440_s29 + $0xc] sm:$0x3]  ;;  %v517_v31 = vld [vmem:[%s440_s29 + $0xe] sm:$0x3] }
  0x3e   : > { %v3253_v29 = vpack.i.bf16 %v511_v28, %v510_v26  ;;  %v512_v32 = vld [vmem:[%s440_s29 + $0x4] sm:$0x3]  ;;  %v514_v33 = vld [vmem:[%s440_s29 + $0x8] sm:$0x3]  ;;  %v3289_v34 = vpack.i.bf16 %v517_v31, %v516_v30  ;;  %v3406_v39 = vmov 1983009808  }
  0x3f   : > { %3278 = vxpose.xlu1.b32.start.end [1/1] (short) (narrow) %v3277_v27, 16  ;;  %v3265_v35 = vpack.i.bf16 %v514_v33, %v512_v32  ;;  %v534_v40 = vunpack.c.l.s4 %v3406_v39  ;;  %vm531_vm0 = vcmask 1047556   ;;  %v3407_v50 = vmov 1934713408   ;;  %s3954_s17 = smov (!%p484_p9, %s3396_s17), 1 }
  0x40   : > { %3254 = vxpose.xlu0.b32.start.end [1/1] (short) (narrow) %v3253_v29, 16  ;;  %v558_v51 = vunpack.c.l.s4 %v3407_v50  ;;  %s486_s5 = scalar_lea.vmem %s3944_s3, %s3954_s17  ;;  %vm1643_vm1 = vcmask 130048   ;;  %vm1690_vm2 = vcmask 64512   ;;  %s3197_s11 = sshll.u32 %s3954_s17, 3  ;;  %vm3036_vm11 = vcmask 261120  }
  0x41   : > { %v3503_v43 = vunpack.c.0.s8 %v534_v40  ;;  %s493_s14 = scalar_lea.vmem %s3945_s4, %s3197_s11 }
  0x42   : > { %v3519_v61 = vunpack.c.0.s8 %v558_v51 }
  0x4f   : > { %3290 = vxpose.xlu1.b32.start.end [1/1] (short) (narrow) %v3289_v34, 16 }
  0x50   : > { %3266 = vxpose.xlu0.b32.start.end [1/1] (short) (narrow) %v3265_v35, 16 }
  0xe3   : > { %v3279_v36 = vpop.trf.xlu1 }
  0xe4   : > { %v3280_v37 = vunpack.i.l.bf16 %v3279_v36  ;;  %v3255_v38 = vpop.trf.xlu0  ;;  %v3283_v52 = vunpack.i.h.bf16 %v3279_v36 }
  0xe5   : > { %v3259_v42 = vunpack.i.h.bf16 %v3255_v38  ;;  %v3256_v54 = vunpack.i.l.bf16 %v3255_v38 }
  0xe6   : > { %v839_v41 = vrot.slane %v3280_v37, 4  ;;  %v865_v62 = vrot.slane %v3283_v52, 4 }
  0xe7   : > { %v841_v45 = vrot.slane %v3259_v42, 4  ;;  %v829_v63 = vrot.slane %v3256_v54, 4 }
  0xe8   : > { %v840_v44 = vsel %vm531_vm0, %v839_v41, %v3259_v42 }
  0xe9   : > { %v3513_v53 = vperm.slane %v840_v44, %v3503_v43  ;;  %v842_v56 = vsel %vm531_vm0, %v3280_v37, %v841_v45 }
  0xea   : > { %v850_v0 = vperm.slane %v842_v56, %v3503_v43 }
  0xeb   : > { %v3506_v46 = vpop.trf.xlu1  ;;  %v875_v1 = vrot.slane %v3513_v53, 4 }
  0xec   : > { %v3285_v47 = vunpack.i.l.bf16 %v3506_v46  ;;  %v3509_v48 = vpop.trf.xlu0  ;;  %v3288_v57 = vunpack.i.h.bf16 %v3506_v46  ;;  %v887_v15 = vrot.slane %v850_v0, 4 }
  0xed   : > { %v3264_v49 = vunpack.i.h.bf16 %v3509_v48  ;;  %v3261_v4 = vunpack.i.l.bf16 %v3509_v48 }
  0xee   : > { %v951_v55 = vrot.slane %v3285_v47, 4  ;;  %v977_v2 = vrot.slane %v3288_v57, 4 }
  0xef   : > { %v953_v58 = vrot.slane %v3264_v49, 4  ;;  %v941_v20 = vrot.slane %v3261_v4, 4 }
  0xf0   : > { %v952_v59 = vsel %vm531_vm0, %v951_v55, %v3264_v49 }
  0xf1   : > { %v954_v60 = vsel %vm531_vm0, %v3285_v47, %v953_v58  ;;  %v3524_v3 = vperm.slane %v952_v59, %v3503_v43 }
  0xf2   : > { %v3528_v6 = vperm.slane %v954_v60, %v3503_v43 }
  0xf3   : > { %v3291_v5 = vpop.trf.xlu1  ;;  %v987_v24 = vrot.slane %v3524_v3, 4 }
  0xf4   : > { %v3295_v7 = vunpack.i.h.bf16 %v3291_v5  ;;  %v3292_v8 = vunpack.i.l.bf16 %v3291_v5  ;;  %v3267_v9 = vpop.trf.xlu0  ;;  %v999_v27 = vrot.slane %v3528_v6, 4 }
  0xf5   : > { %v3271_v10 = vunpack.i.h.bf16 %v3267_v9  ;;  %v3268_v11 = vunpack.i.l.bf16 %v3267_v9 }
  0xf6   : > { %v863_v12 = vrot.slane %v3295_v7, 4  ;;  %v851_v13 = vrot.slane %v3292_v8, 4  ;;  %v866_v14 = vsel %vm531_vm0, %v3295_v7, %v865_v62 }
  0xf7   : > { %v874_v16 = vperm.slane %v866_v14, %v3503_v43  ;;  %v853_v17 = vrot.slane %v3271_v10, 4  ;;  %v827_v18 = vrot.slane %v3268_v11, 4  ;;  %v830_v19 = vsel %vm531_vm0, %v3268_v11, %v829_v63 }
  0xf8   : > { %v864_v21 = vsel %vm531_vm0, %v863_v12, %v3283_v52  ;;  %v852_v22 = vsel %vm531_vm0, %v851_v13, %v3271_v10  ;;  %v838_v23 = vperm.slane %v830_v19, %v3503_v43 }
  0xf9   : > { %v854_v25 = vsel %vm531_vm0, %v3292_v8, %v853_v17  ;;  %v828_v26 = vsel %vm531_vm0, %v827_v18, %v3256_v54  ;;  %v3541_v28 = vperm.slane %v864_v21, %v3503_v43  ;;  %v3544_v29 = vperm.slane %v852_v22, %v3503_v43 }
  0xfa   : > { %v888_v30 = vsel %vm531_vm0, %v887_v15, %v838_v23  ;;  %v889_v31 = vrot.slane %v838_v23, 4  ;;  %v862_v33 = vperm.slane %v854_v25, %v3503_v43  ;;  %v911_v35 = vrot.slane %v874_v16, 4 }
  0xfb   : > { %v3296_v32 = vpop.trf.xlu1  ;;  %v3549_v34 = vperm.slane %v888_v30, %v3519_v61  ;;  %v3552_v36 = vperm.slane %v828_v26, %v3503_v43  ;;  %v899_v8 = vrot.slane %v3541_v28, 4 }
  0xfc   : > { %v3300_v37 = vunpack.i.h.bf16 %v3296_v32  ;;  %v3297_v38 = vunpack.i.l.bf16 %v3296_v32  ;;  %v3272_v39 = vpop.trf.xlu0  ;;  %v890_v46 = vsel %vm531_vm0, %v850_v0, %v889_v31  ;;  %v912_v55 = vsel %vm531_vm0, %v911_v35, %v862_v33 }
  0xfd   : > { %v3276_v40 = vunpack.i.h.bf16 %v3272_v39  ;;  %v3273_v41 = vunpack.i.l.bf16 %v3272_v39  ;;  %v898_v50 = vperm.slane %v890_v46, %v3519_v61  ;;  %v913_v63 = vrot.slane %v862_v33, 4 }
  0xfe   : > { %v975_v42 = vrot.slane %v3300_v37, 4  ;;  %v963_v44 = vrot.slane %v3297_v38, 4  ;;  %v978_v45 = vsel %vm531_vm0, %v3300_v37, %v977_v2  ;;  %v3568_v0 = vperm.slane %v912_v55, %v3519_v61 }
  0xff   : > { %v965_v47 = vrot.slane %v3276_v40, 4  ;;  %v939_v48 = vrot.slane %v3273_v41, 4  ;;  %v942_v49 = vsel %vm531_vm0, %v3273_v41, %v941_v20  ;;  %v937_v5 = vrot.slane %v898_v50, 4 }
 0x100   : > { %v976_v51 = vsel %vm531_vm0, %v975_v42, %v3288_v57  ;;  %v964_v52 = vsel %vm531_vm0, %v963_v44, %v3276_v40  ;;  %v950_v54 = vperm.slane %v942_v49, %v3503_v43  ;;  %v933_v57 = vrot.slane %v3549_v34, 4 }
 0x101   : > { %v982_v56 = vperm.slane %v976_v51, %v3503_v43  ;;  %v966_v58 = vsel %vm531_vm0, %v3297_v38, %v965_v47  ;;  %v970_v59 = vperm.slane %v964_v52, %v3503_v43  ;;  %v940_v60 = vsel %vm531_vm0, %v939_v48, %v3261_v4 }
 0x102   : > { %v946_v62 = vperm.slane %v940_v60, %v3503_v43  ;;  %v974_v7 = vperm.slane %v966_v58, %v3503_v43  ;;  %v914_v9 = vsel %vm531_vm0, %v874_v16, %v913_v63  ;;  %v986_v10 = vperm.slane %v978_v45, %v3503_v43 }
 0x103   : > { %v1013_v2 = vrot.slane %v970_v59, 4  ;;  %v1001_v11 = vrot.slane %v950_v54, 4  ;;  %v922_v12 = vperm.slane %v914_v9, %v3519_v61  ;;  %v934_v13 = vsel %vm531_vm0, %v3568_v0, %v933_v57 }
 0x104   : > { %v988_v4 = vsel %vm531_vm0, %v987_v24, %v946_v62  ;;  %v1025_v14 = vrot.slane %v974_v7, 4  ;;  %v989_v15 = vrot.slane %v946_v62, 4  ;;  %v1011_v19 = vrot.slane %v982_v56, 4 }
 0x105   : > { %v1002_v17 = vsel %vm531_vm0, %v3528_v6, %v1001_v11  ;;  %v994_v18 = vperm.slane %v988_v4, %v3519_v61  ;;  %v1014_v16 = vsel %vm531_vm0, %v982_v56, %v1013_v2  ;;  %v935_v20 = vrot.slane %v922_v12, 4 }
 0x106   : > { %v1010_v21 = vperm.slane %v1002_v17, %v3519_v61  ;;  %v1026_v22 = vsel %vm531_vm0, %v986_v10, %v1025_v14  ;;  %v876_v23 = vsel %vm531_vm0, %v875_v1, %v3552_v36  ;;  %v990_v25 = vsel %vm531_vm0, %v3524_v3, %v989_v15 }
 0x107   : > { %v1034_v24 = vperm.slane %v1026_v22, %v3519_v61  ;;  %v1012_v26 = vsel %vm531_vm0, %v1011_v19, %v970_v59  ;;  %v1022_v30 = vperm.slane %v1014_v16, %v3519_v61  ;;  %v936_v31 = vsel %vm531_vm0, %v935_v20, %v898_v50 }
 0x108   : > { %v938_v32 = vsel %vm531_vm0, %v922_v12, %v937_v5  ;;  %v1049_v33 = vrot.slane %v1010_v21, 4  ;;  %v1018_v35 = vperm.slane %v1012_v26, %v3519_v61  ;;  %v3301_v37 = vpack.i.bf16 %v936_v31, %v934_v13  ;;  %v497_v31 = vld [vmem:[%s433_s6 + $0x6] sm:$0x3] }
 0x109   : > { %v998_v38 = vperm.slane %v990_v25, %v3519_v61  ;;  %v1037_v1 = vrot.slane %v994_v18, 4  ;;  %v1039_v39 = vrot.slane %v1022_v30, 4  ;;  %v900_v3 = vsel %vm531_vm0, %v899_v8, %v3544_v29 }
 0x10a   : > { %v1050_v40 = vsel %vm531_vm0, %v1034_v24, %v1049_v33  ;;  %v1035_v41 = vrot.slane %v1018_v35, 4  ;;  %v1000_v42 = vsel %vm531_vm0, %v999_v27, %v950_v54  ;;  %3302 = vxpose.xlu0.b32.start.end [1/1] (short) (narrow) %v3301_v37, 8  ;;  %v906_v47 = vperm.slane %v900_v3, %v3519_v61  ;;  %v495_v37 = vld [vmem:[%s433_s6 + $0x2] sm:$0x3] }
 0x10b   : > { %v3308_v44 = vpack.i.bf16 %v938_v32, %v1050_v40  ;;  %v1038_v45 = vsel %vm531_vm0, %v1018_v35, %v1037_v1  ;;  %v1040_v46 = vsel %vm531_vm0, %v1039_v39, %v998_v38  ;;  %v882_v49 = vperm.slane %v876_v23, %v3519_v61  ;;  %v494_v35 = vld [vmem:[%s433_s6] sm:$0x3]  ;;  %v498_v1 = vld [vmem:[%s433_s6 + $0x8] sm:$0x3]  ;;  %v499_v39 = vld [vmem:[%s433_s6 + $0xa] sm:$0x3] }
 0x10c   : > { %v3329_v48 = vpack.i.bf16 %v1040_v46, %v1038_v45  ;;  %v1006_v50 = vperm.slane %v1000_v42, %v3519_v61  ;;  %v1023_v51 = vrot.slane %v986_v10, 4  ;;  %v923_v52 = vrot.slane %v906_v47, 4  ;;  %v500_v40 = vld [vmem:[%s433_s6 + $0xc] sm:$0x3]  ;;  %v519_v46 = vld [vmem:[%s3645_s7 + $0x2] sm:$0x3] }
 0x10d   : > { %3309 = vxpose.xlu2.b32.start.end [1/1] (short) (narrow) %v3308_v44, 8  ;;  %v1036_v6 = vsel %vm531_vm0, %v1035_v41, %v994_v18  ;;  %v1041_v55 = vrot.slane %v998_v38, 4  ;;  %v877_v27 = vrot.slane %v3552_v36, 4  ;;  %v901_v57 = vrot.slane %v3544_v29, 4 }
 0x10e   : > { %3330 = vxpose.xlu1.b32.start.end [1/1] (short) (narrow) %v3329_v48, 8  ;;  %v1024_v54 = vsel %vm531_vm0, %v1023_v51, %v974_v7  ;;  %v1045_v56 = vrot.slane %v1006_v50, 4  ;;  %v924_v58 = vsel %vm531_vm0, %v923_v52, %v882_v49  ;;  %v1047_v7 = vrot.slane %v1034_v24, 4  ;;  %v518_v51 = vld [vmem:[%s3645_s7] sm:$0x3] }
 0x10f   : > { %v1030_v59 = vperm.slane %v1024_v54, %v3519_v61  ;;  %v878_v60 = vsel %vm531_vm0, %v3513_v53, %v877_v27  ;;  %v3350_v62 = vpack.i.bf16 %v924_v58, %v1036_v6  ;;  %v1042_v63 = vsel %vm531_vm0, %v1022_v30, %v1041_v55  ;;  %v496_v30 = vld [vmem:[%s433_s6 + $0x4] sm:$0x3] }
 0x110   : > { %v886_v36 = vperm.slane %v878_v60, %v3519_v61  ;;  %v902_v8 = vsel %vm531_vm0, %v3541_v28, %v901_v57  ;;  %v1048_v53 = vsel %vm531_vm0, %v1047_v7, %v1010_v21  ;;  %v925_v12 = vrot.slane %v882_v49, 4  ;;  %v501_v49 = vld [vmem:[%s433_s6 + $0xe] sm:$0x3] }
 0x111   : > { %v1046_v2 = vsel %vm531_vm0, %v1030_v59, %v1045_v56  ;;  %v910_v10 = vperm.slane %v902_v8, %v3519_v61  ;;  %v1043_v4 = vrot.slane %v1030_v59, 4  ;;  %v931_v28 = vrot.slane %v3568_v0, 4 }
 0x112   : > { %3351 = vxpose.xlu0.b32.start.end [1/1] (short) (narrow) %v3350_v62, 8  ;;  %v3315_v5 = vpack.i.bf16 %v1046_v2, %v1042_v63  ;;  %v929_v9 = vrot.slane %v886_v36, 4  ;;  %v926_v14 = vsel %vm531_vm0, %v906_v47, %v925_v12  ;;  %v504_v44 = vmul.f32 0.25, %v496_v30 }
 0x113   : > { %v1044_v13 = vsel %vm531_vm0, %v1043_v4, %v1006_v50  ;;  %v927_v17 = vrot.slane %v910_v10, 4  ;;  %v932_v19 = vsel %vm531_vm0, %v931_v28, %v3549_v34  ;;  %v505_v45 = vmul.f32 0.25, %v497_v31 }
 0x114   : > { %v930_v11 = vsel %vm531_vm0, %v910_v10, %v929_v9  ;;  %v3336_v15 = vpack.i.bf16 %v926_v14, %v1044_v13  ;;  %v502_v50 = vmul.f32 0.25, %v494_v35  ;;  %v503_v6 = vmul.f32 0.25, %v495_v37 }
 0x115   : > { %3316 = vxpose.xlu2.b32.start.end [1/1] (short) (narrow) %v3315_v5, 8  ;;  %v3322_v29 = vpack.i.bf16 %v930_v11, %v1048_v53  ;;  %v928_v18 = vsel %vm531_vm0, %v927_v17, %v886_v36  ;;  %v506_v27 = vmul.f32 0.25, %v498_v1  ;;  %v507_v54 = vmul.f32 0.25, %v499_v39 }
 0x116   : > { %v3343_v16 = vpack.i.bf16 %v932_v19, %v928_v18  ;;  %1741 = vxpose.xlu1.b32.start.end [1/1] (short) (narrow) %v518_v51, 16  ;;  %v508_v56 = vmul.f32 0.25, %v500_v40  ;;  %v509_v59 = vmul.f32 0.25, %v501_v49  ;;  %v530_v60 = vrot.slane %v504_v44, 4 }
 0x117   : > { %v537_v62 = vrot.slane %v505_v45, 4 }
 0x118   : > { %v543_v2 = vrot.slane %v508_v56, 4  ;;  %v549_v8 = vrot.slane %v509_v59, 4 }
 0x119   : > { %v538_v7 = vsel %vm531_vm0, %v537_v62, %v503_v6 }
 0x11a   : > { %v542_v4 = vperm.slane %v538_v7, %v3503_v43  ;;  %v544_v12 = vsel %vm531_vm0, %v543_v2, %v506_v27  ;;  %v550_v13 = vsel %vm531_vm0, %v549_v8, %v507_v54  ;;  %v520_v8 = vld [vmem:[%s3645_s7 + $0x4] sm:$0x3] }
 0x11b   : > { %v554_v19 = vperm.slane %v550_v13, %v3503_v43  ;;  %1805 = vxpose.xlu0.b32.start.end [1/1] (short) (narrow) %v520_v8, 16 }
 0x11d   : > { %3323 = vxpose.xlu2.b32.start.end [1/1] (short) (narrow) %v3322_v29, 8  ;;  %v532_v29 = vsel %vm531_vm0, %v530_v60, %v502_v50 }
 0x125   : > { %3337 = vxpose.xlu2.b32.start.end [1/1] (short) (narrow) %v3336_v15, 8 }
 0x12d   : > { %3344 = vxpose.xlu2.b32.start.end [1/1] (short) (narrow) %v3343_v16, 8 }
 0x135   : > { %1773 = vxpose.xlu2.b32.start.end [1/1] (short) (narrow) %v519_v46, 16 }
 0x1a6   : > { %v3310_v20 = vpop.trf.xlu2 }
 0x1a7   : > { %v3311_v22 = vunpack.i.l.bf16 %v3310_v20  ;;  %v3314_v36 = vunpack.i.h.bf16 %v3310_v20 }
 0x1a9   : > { %v1621_v26 = vrot.slane %v3311_v22, 4  ;;  %v1581_v17 = vrot.slane %v3314_v36, 4  ;;  %v548_v22 = vperm.slane %v544_v12, %v3503_v43 }
 0x1ae   : > { %v3317_v21 = vpop.trf.xlu2  ;;  %v3639_v0 = vpop.trf.xlu0 }
 0x1af   : > { %v3318_v23 = vunpack.i.l.bf16 %v3317_v21  ;;  %v3321_v24 = vunpack.i.h.bf16 %v3317_v21  ;;  %v3304_v9 = vunpack.i.l.bf16 %v3639_v0  ;;  %v3307_v28 = vunpack.i.h.bf16 %v3639_v0 }
 0x1b0   : > { %v536_v21 = vperm.slane %v532_v29, %v3503_v43 }
 0x1b1   : > { %v1609_v32 = vrot.slane %v3318_v23, 4  ;;  %v1622_v38 = vsel %vm531_vm0, %v1621_v26, %v3321_v24  ;;  %v561_v26 = vrot.slane %v554_v19, 4  ;;  %v1575_v35 = vrot.slane %v3307_v28, 4  ;;  %v524_v28 = vld [vmem:[%s3645_s7 + $0xc] sm:$0x3] }
 0x1b2   : > { %v3331_v25 = vpop.trf.xlu1  ;;  %v1626_v5 = vperm.slane %v1622_v38, %v3503_v43 }
 0x1b3   : > { %v3335_v34 = vunpack.i.h.bf16 %v3331_v25  ;;  %v3332_v33 = vunpack.i.l.bf16 %v3331_v25  ;;  %v555_v25 = vrot.slane %v542_v4, 4 }
 0x1b4   : > { %v1633_v18 = vrot.slane %v1626_v5, 4 }
 0x1b5   : > { %v1603_v3 = vrot.slane %v3335_v34, 4  ;;  %v1610_v41 = vsel %vm531_vm0, %v1609_v32, %v3332_v33  ;;  %v1582_v34 = vsel %vm531_vm0, %v1581_v17, %v3304_v9  ;;  %v562_v33 = vsel %vm531_vm0, %v561_v26, %v548_v22  ;;  %v521_v9 = vld [vmem:[%s3645_s7 + $0x6] sm:$0x3]  ;;  %v523_v17 = vld [vmem:[%s3645_s7 + $0xa] sm:$0x3] }
 0x1b6   : > { %v3324_v42 = vpop.trf.xlu2  ;;  %v1614_v47 = vperm.slane %v1610_v41, %v3503_v43  ;;  %v3649_v48 = vpop.trf.xlu0  ;;  %v1586_v37 = vperm.slane %v1582_v34, %v3503_v43  ;;  %v556_v39 = vsel %vm531_vm0, %v555_v25, %v536_v21  ;;  %v566_v45 = vperm.slane %v562_v33, %v3519_v61  ;;  %1837 = vxpose.xlu0.b32.start.end [1/1] (short) (narrow) %v521_v9, 16 }
 0x1b7   : > { %v3353_v52 = vunpack.i.l.bf16 %v3649_v48  ;;  %v3325_v55 = vunpack.i.l.bf16 %v3324_v42  ;;  %v3328_v10 = vunpack.i.h.bf16 %v3324_v42  ;;  %v3356_v46 = vunpack.i.h.bf16 %v3649_v48 }
 0x1b8   : > { %v1627_v57 = vrot.slane %v1614_v47, 4  ;;  %v1593_v50 = vrot.slane %v1586_v37, 4  ;;  %v560_v6 = vperm.slane %v556_v39, %v3519_v61  ;;  %v567_v48 = vrot.slane %v566_v45, 4 }
 0x1b9   : > { %v1604_v58 = vsel %vm531_vm0, %v1603_v3, %v3353_v52  ;;  %v1615_v53 = vrot.slane %v3325_v55, 4  ;;  %v1569_v30 = vrot.slane %v3328_v10, 4  ;;  %v3357_v10 = vld [vmem:[%s486_s5] ss:$0 sm:$0xff] }
 0x1ba   : > { %v1608_v63 = vperm.slane %v1604_v58, %v3503_v43  ;;  %v569_v60 = vrot.slane %v560_v6, 4  ;;  %v1757_v22 = vpop.trf.xlu1 }
 0x1bb   : > { %v1999_v39 = vrot.slane %v1757_v22, 4 }
 0x1bc   : > { %v1628_v15 = vsel %vm531_vm0, %v1627_v57, %v1608_v63  ;;  %v568_v57 = vsel %vm531_vm0, %v567_v48, %v560_v6  ;;  %v570_v5 = vsel %vm531_vm0, %v566_v45, %v569_v60 }
 0x1bd   : > { %v1632_v24 = vperm.slane %v1628_v15, %v3519_v61  ;;  %v522_v15 = vld [vmem:[%s3645_s7 + $0x8] sm:$0x3] }
 0x1be   : > { %v3338_v11 = vpop.trf.xlu2 }
 0x1bf   : > { %v3339_v14 = vunpack.i.l.bf16 %v3338_v11  ;;  %v3342_v16 = vunpack.i.h.bf16 %v3338_v11  ;;  %v1641_v1 = vrot.slane %v1632_v24, 4 }
 0x1c1   : > { %v1616_v20 = vsel %vm531_vm0, %v1615_v53, %v3339_v14  ;;  %v1570_v31 = vsel %vm531_vm0, %v1569_v30, %v3342_v16  ;;  %v525_v14 = vld [vmem:[%s3645_s7 + $0xe] sm:$0x3] }
 0x1c2   : > { %v1620_v23 = vperm.slane %v1616_v20, %v3503_v43  ;;  %v1574_v44 = vperm.slane %v1570_v31, %v3503_v43  ;;  %v1758_v30 = vpop.trf.xlu1 }
 0x1c4   : > { %v1634_v0 = vsel %vm531_vm0, %v1633_v18, %v1620_v23  ;;  %v1587_v54 = vrot.slane %v1574_v44, 4  ;;  %v1821_v18 = vpop.trf.xlu0 }
 0x1c5   : > { %v1638_v32 = vperm.slane %v1634_v0, %v3519_v61 }
 0x1c6   : > { %v3345_v38 = vpop.trf.xlu2  ;;  %1965 = vxpose.xlu0.b32.start.end [1/1] (short) (narrow) %v525_v14, 16 }
 0x1c7   : > { %v3349_v40 = vunpack.i.h.bf16 %v3345_v38  ;;  %v3346_v3 = vunpack.i.l.bf16 %v3345_v38  ;;  %v1642_v41 = vsel %vm531_vm0, %v1638_v32, %v1641_v1  ;;  %v1639_v42 = vrot.slane %v1638_v32, 4 }
 0x1c8   : > { %1684 = vmatpush.msra.mxu1 %v1642_v41  ;;  %v1997_v1 = vrot.slane %v1821_v18, 4 }
 0x1c9   : > { %v1576_v47 = vsel %vm531_vm0, %v1575_v35, %v3349_v40  ;;  %v1563_v49 = vrot.slane %v3346_v3, 4  ;;  %v1640_v52 = vsel %vm531_vm0, %v1639_v42, %v1632_v24  ;;  %v2000_v42 = vsel %vm531_vm0, %v1821_v18, %v1999_v39 }
 0x1ca   : > { %v1580_v51 = vperm.slane %v1576_v47, %v3503_v43  ;;  %1661 = vmatpush.msra.mxu0 %v1640_v52  ;;  %v1998_v3 = vsel %vm531_vm0, %v1997_v1, %v1757_v22 }
 0x1cb   : > { %v1564_v55 = vsel %vm531_vm0, %v1563_v49, %v3356_v46  ;;  %v3734_v44 = vperm.slane %v1998_v3, %v3503_v43 }
 0x1cc   : > { %v1568_v27 = vperm.slane %v1564_v55, %v3503_v43  ;;  %v1594_v56 = vsel %vm531_vm0, %v1593_v50, %v1580_v51  ;;  %v1822_v19 = vpop.trf.xlu0  ;;  %v2008_v51 = vperm.slane %v2000_v42, %v3503_v43 }
 0x1cd   : > { %v1598_v58 = vperm.slane %v1594_v56, %v3519_v61  ;;  %v2109_v26 = vrot.slane %v1822_v19, 4  ;;  %v2047_v55 = vrot.slane %v3734_v44, 4 }
 0x1ce   : > { %v1588_v59 = vsel %vm531_vm0, %v1587_v54, %v1568_v27  ;;  %v1789_v20 = vpop.trf.xlu2  ;;  %v2111_v54 = vrot.slane %v1758_v30, 4 }
 0x1cf   : > { %v1592_v62 = vperm.slane %v1588_v59, %v3519_v61  ;;  %v1599_v63 = vrot.slane %v1598_v58, 4  ;;  %v2110_v0 = vsel %vm531_vm0, %v2109_v26, %v1758_v30  ;;  %v2011_v40 = vrot.slane %v1789_v20, 4 }
 0x1d0   : > { %v3723_v32 = vperm.slane %v2110_v0, %v3503_v43 }
 0x1d1   : > { %v1600_v2 = vsel %vm531_vm0, %v1599_v63, %v1592_v62  ;;  %v1601_v36 = vrot.slane %v1592_v62, 4 }
 0x1d2   : > { %1662 = vmatpush.msra.mxu0 %v1600_v2 }
 0x1d3   : > { %3198 = vmatmul.msk.f32.vlgmr.msra.gmra.mxu0 %vm1643_vm1, %v568_v57  ;;  %v1602_v7 = vsel %vm531_vm0, %v1598_v58, %v1601_v36  ;;  %v2059_v58 = vrot.slane %v2008_v51, 4 }
 0x1d4   : > { %1685 = vmatpush.msra.mxu1 %v1602_v7 }
 0x1d5   : > { %3199 = vmatmul.msk.f32.vlgmr.msra.gmra.mxu1 %vm1643_vm1, %v570_v5  ;;  %v2112_v5 = vsel %vm531_vm0, %v1822_v19, %v2111_v54 }
 0x1d6   : > { %v1790_v24 = vpop.trf.xlu2  ;;  %v3760_v14 = vperm.slane %v2112_v5, %v3503_v43 }
 0x1d7   : > { %v2123_v36 = vrot.slane %v1790_v24, 4 }
 0x250   : > { %v1664_v53 = vpop.f32.mrf.mxu0 }
 0x251   : > { %v3704_v11 = vadd.f32 %v3357_v10, %v1664_v53 }
 0x252   : > { %v1687_v29 = vpop.f32.mrf.mxu1 }
 0x253   : > { %v3706_v4 = vadd.f32 %v3357_v10, %v1687_v29  ;;  %v1691_v12 = vsel %vm1690_vm2, %v3704_v11, -inf }
 0x254   : > { %1692 = vmax.xlane.f32.xlu1 %v1691_v12 }
 0x255   : > { %v1694_v13 = vsel %vm1690_vm2, %v3706_v4, -inf }
 0x256   : > { %1695 = vmax.xlane.f32.xlu2 %v1694_v13 }
 0x25a   : > { %v1853_v16 = vpop.trf.xlu0 }
 0x25b   : > { %v2009_v41 = vrot.slane %v1853_v16, 4  ;;  %v2012_v45 = vsel %vm531_vm0, %v1853_v16, %v2011_v40 }
 0x25c   : > { %v2020_v6 = vperm.slane %v2012_v45, %v3503_v43 }
 0x25d   : > { %v2010_v47 = vsel %vm531_vm0, %v2009_v41, %v1789_v20 }
 0x25e   : > { %v3744_v27 = vperm.slane %v2010_v47, %v3503_v43  ;;  %v2057_v59 = vrot.slane %v2020_v6, 4  ;;  %v2060_v8 = vsel %vm531_vm0, %v2020_v6, %v2059_v58 }
 0x25f   : > { %v2068_v20 = vperm.slane %v2060_v8, %v3519_v61 }
 0x260   : > { %v2048_v2 = vsel %vm531_vm0, %v3744_v27, %v2047_v55  ;;  %v2058_v13 = vsel %vm531_vm0, %v2057_v59, %v2008_v51 }
 0x261   : > { %v2056_v12 = vperm.slane %v2048_v2, %v3519_v61  ;;  %v2107_v42 = vrot.slane %v2068_v20, 4 }
 0x262   : > { %v1854_v21 = vpop.trf.xlu0 }
 0x263   : > { %v2121_v23 = vrot.slane %v1854_v21, 4  ;;  %v2124_v18 = vsel %vm531_vm0, %v1854_v21, %v2123_v36  ;;  %v2171_v21 = vrot.slane %v3760_v14, 4 }
 0x264   : > { %v3783_v45 = vperm.slane %v2124_v18, %v3503_v43 }
 0x265   : > { %v2122_v25 = vsel %vm531_vm0, %v2121_v23, %v1790_v24 }
 0x266   : > { %v3718_v34 = vperm.slane %v2122_v25, %v3503_v43  ;;  %v2064_v25 = vperm.slane %v2058_v13, %v3519_v61  ;;  %v2172_v5 = vsel %vm531_vm0, %v3783_v45, %v2171_v21 }
 0x268   : > { %v2157_v31 = vrot.slane %v3718_v34, 4 }
 0x26a   : > { %v3727_v33 = vsel %vm531_vm0, %v2157_v31, %v3723_v32  ;;  %v1981_v52 = vpop.trf.xlu0  ;;  %v2099_v31 = vrot.slane %v2056_v12, 4 }
 0x26b   : > { %v2033_v62 = vrot.slane %v1981_v52, 4 }
 0x27f   : > { %1869 = vxpose.xlu2.b32.start.end [1/1] (short) (narrow) %v522_v15, 16 }
 0x28e   : > { %1901 = vxpose.xlu1.b32.start.end [1/1] (short) (narrow) %v523_v17, 16 }
 0x28f   : > { %1933 = vxpose.xlu2.b32.start.end [1/1] (short) (narrow) %v524_v28, 16  ;;  %v1982_v28 = vpop.trf.xlu0 }
 0x290   : > { %v2145_v30 = vrot.slane %v1982_v28, 4 }
 0x2c7   : > { %v3738_v50 = vpop.xlane.xlu1 %1692 }
 0x2c9   : > { %v3729_v35 = vpop.xlane.xlu2 %1695 }
 0x318   : > { %v1885_v37 = vpop.trf.xlu2 }
 0x319   : > { %v2023_v56 = vrot.slane %v1885_v37, 4 }
 0x320   : > { %v1886_v38 = vpop.trf.xlu2 }
 0x321   : > { %v2135_v26 = vrot.slane %v1886_v38, 4 }
 0x328   : > { %v1949_v46 = vpop.trf.xlu2 }
 0x329   : > { %v2021_v49 = vrot.slane %v1949_v46, 4  ;;  %v2024_v60 = vsel %vm531_vm0, %v1949_v46, %v2023_v56 }
 0x32a   : > { %v2032_v9 = vperm.slane %v2024_v60, %v3503_v43 }
 0x32b   : > { %v2022_v48 = vsel %vm531_vm0, %v2021_v49, %v1885_v37  ;;  %v2103_v49 = vrot.slane %v2064_v25, 4 }
 0x32c   : > { %v3749_v63 = vperm.slane %v2022_v48, %v3503_v43  ;;  %v2083_v22 = vrot.slane %v2032_v9, 4  ;;  %v2164_v48 = vperm.slane %v3727_v33, %v3519_v61 }
 0x32e   : > { %v2071_v15 = vrot.slane %v3749_v63, 4 }
 0x330   : > { %v1950_v57 = vpop.trf.xlu2 }
 0x331   : > { %v2133_v7 = vrot.slane %v1950_v57, 4  ;;  %v2136_v40 = vsel %vm531_vm0, %v1950_v57, %v2135_v26 }
 0x332   : > { %v1917_v10 = vpop.trf.xlu1  ;;  %v2144_v54 = vperm.slane %v2136_v40, %v3503_v43 }
 0x333   : > { %v2034_v53 = vsel %vm531_vm0, %v2033_v62, %v1917_v10  ;;  %v2035_v29 = vrot.slane %v1917_v10, 4  ;;  %v2134_v19 = vsel %vm531_vm0, %v2133_v7, %v1886_v38  ;;  %v2159_v38 = vrot.slane %v3723_v32, 4 }
 0x334   : > { %v3764_v17 = vperm.slane %v2034_v53, %v3503_v43  ;;  %v2140_v37 = vperm.slane %v2134_v19, %v3503_v43  ;;  %v2045_v62 = vrot.slane %v3744_v27, 4  ;;  %v2207_v53 = vrot.slane %v2164_v48, 4 }
 0x335   : > { %v2036_v16 = vsel %vm531_vm0, %v1981_v52, %v2035_v29  ;;  %v2160_v33 = vsel %vm531_vm0, %v3718_v34, %v2159_v38 }
 0x336   : > { %v2044_v23 = vperm.slane %v2036_v16, %v3503_v43  ;;  %v2072_v24 = vsel %vm531_vm0, %v3764_v17, %v2071_v15  ;;  %v2183_v56 = vrot.slane %v2140_v37, 4  ;;  %v2069_v10 = vrot.slane %v3764_v17, 4 }
 0x337   : > { %v2080_v0 = vperm.slane %v2072_v24, %v3519_v61  ;;  %v2046_v34 = vsel %vm531_vm0, %v2045_v62, %v3734_v44  ;;  %v2168_v19 = vperm.slane %v2160_v33, %v3519_v61  ;;  %v2180_v17 = vperm.slane %v2172_v5, %v3519_v61 }
 0x338   : > { %v2081_v1 = vrot.slane %v2044_v23, 4  ;;  %v2084_v39 = vsel %vm531_vm0, %v2044_v23, %v2083_v22  ;;  %v2052_v44 = vperm.slane %v2046_v34, %v3519_v61 }
 0x339   : > { %v2100_v3 = vsel %vm531_vm0, %v2080_v0, %v2099_v31  ;;  %v2092_v41 = vperm.slane %v2084_v39, %v3519_v61  ;;  %v2097_v60 = vrot.slane %v2080_v0, 4  ;;  %v2219_v0 = vrot.slane %v2180_v17, 4 }
 0x33a   : > { %2317 = vxpose.xlu2.b32.start.end [1/1] (short) (narrow) %v2100_v3, 8  ;;  %v1918_v46 = vpop.trf.xlu1  ;;  %v2082_v47 = vsel %vm531_vm0, %v2081_v1, %v2032_v9  ;;  %v2195_v9 = vrot.slane %v2144_v54, 4  ;;  %v2211_v39 = vrot.slane %v2168_v19, 4  ;;  %v2169_v3 = vrot.slane %v3783_v45, 4 }
 0x33b   : > { %v2146_v51 = vsel %vm531_vm0, %v2145_v30, %v1918_v46  ;;  %v2147_v52 = vrot.slane %v1918_v46, 4  ;;  %v2108_v6 = vsel %vm531_vm0, %v2092_v41, %v2107_v42  ;;  %v2088_v55 = vperm.slane %v2082_v47, %v3519_v61 }
 0x33c   : > { %v2152_v32 = vperm.slane %v2146_v51, %v3503_v43  ;;  %2445 = vxpose.xlu1.b32.start.end [1/1] (short) (narrow) %v2108_v6, 8  ;;  %v2105_v7 = vrot.slane %v2092_v41, 4  ;;  %v2098_v29 = vsel %vm531_vm0, %v2097_v60, %v2056_v12  ;;  %v2070_v12 = vsel %vm531_vm0, %v2069_v10, %v3749_v63 }
 0x33d   : > { %v2148_v58 = vsel %vm531_vm0, %v1982_v28, %v2147_v52  ;;  %v2104_v59 = vsel %vm531_vm0, %v2088_v55, %v2103_v49  ;;  %v2101_v13 = vrot.slane %v2088_v55, 4  ;;  %v2076_v31 = vperm.slane %v2070_v12, %v3519_v61 }
 0x33e   : > { %v2156_v57 = vperm.slane %v2148_v58, %v3503_v43  ;;  %v2181_v2 = vrot.slane %v2152_v32, 4  ;;  %2381 = vxpose.xlu0.b32.start.end [1/1] (short) (narrow) %v2104_v59, 8  ;;  %v2184_v36 = vsel %vm531_vm0, %v2152_v32, %v2183_v56  ;;  %v2106_v16 = vsel %vm531_vm0, %v2105_v7, %v2068_v20 }
 0x33f   : > { %v2192_v8 = vperm.slane %v2184_v36, %v3519_v61  ;;  %v2102_v26 = vsel %vm531_vm0, %v2101_v13, %v2064_v25  ;;  %v2093_v42 = vrot.slane %v2076_v31, 4  ;;  %v2170_v47 = vsel %vm531_vm0, %v2169_v3, %v3760_v14 }
 0x340   : > { %v2182_v27 = vsel %vm531_vm0, %v2181_v2, %v2140_v37  ;;  %v2196_v18 = vsel %vm531_vm0, %v2156_v57, %v2195_v9  ;;  %v2095_v37 = vrot.slane %v2052_v44, 4  ;;  %v2193_v1 = vrot.slane %v2156_v57, 4 }
 0x341   : > { %v2188_v15 = vperm.slane %v2182_v27, %v3519_v61  ;;  %v2209_v28 = vrot.slane %v2192_v8, 4  ;;  %v2204_v30 = vperm.slane %v2196_v18, %v3519_v61  ;;  %v2212_v25 = vsel %vm531_vm0, %v2192_v8, %v2211_v39 }
 0x342   : > { %2285 = vxpose.xlu2.b32.start.end [1/1] (short) (narrow) %v2098_v29, 8  ;;  %v2096_v63 = vsel %vm531_vm0, %v2076_v31, %v2095_v37  ;;  %v2194_v41 = vsel %vm531_vm0, %v2193_v1, %v2144_v54  ;;  %v2094_v49 = vsel %vm531_vm0, %v2093_v42, %v2052_v44  ;;  %v2176_v51 = vperm.slane %v2170_v47, %v3519_v61 }
 0x343   : > { %v2208_v22 = vsel %vm531_vm0, %v2188_v15, %v2207_v53  ;;  %v2205_v23 = vrot.slane %v2188_v15, 4  ;;  %v2210_v24 = vsel %vm531_vm0, %v2209_v28, %v2168_v19  ;;  %v2220_v21 = vsel %vm531_vm0, %v2204_v30, %v2219_v0 }
 0x344   : > { %2413 = vxpose.xlu1.b32.start.end [1/1] (short) (narrow) %v2106_v16, 8  ;;  %v2217_v40 = vrot.slane %v2204_v30, 4  ;;  %v2200_v46 = vperm.slane %v2194_v41, %v3519_v61  ;;  %v2215_v6 = vrot.slane %v2176_v51, 4  ;;  %v1698_v54 = vsub.f32 %v3706_v4, %v3729_v35 }
 0x345   : > { %v2206_v20 = vsel %vm531_vm0, %v2205_v23, %v2164_v48  ;;  %v1697_v56 = vsub.f32 %v3704_v11, %v3738_v50 }
 0x346   : > { %2349 = vxpose.xlu0.b32.start.end [1/1] (short) (narrow) %v2102_v26, 8  ;;  %v2218_v38 = vsel %vm531_vm0, %v2217_v40, %v2180_v17  ;;  %v2213_v52 = vrot.slane %v2200_v46, 4  ;;  %v2216_v55 = vsel %vm531_vm0, %v2200_v46, %v2215_v6  ;;  %v1701_v14 = vmul.f32 1.442695, %v1698_v54 }
 0x347   : > { %v1699_v32 = vmul.f32 1.442695, %v1697_v56 }
 0x348   : > { %v2214_v45 = vsel %vm531_vm0, %v2213_v52, %v2176_v51  ;;  %3358 = vpow2.f32 %v1701_v14 }
 0x349   : > { %3360 = vpow2.f32 %v1699_v32 }
 0x34a   : > { %2701 = vxpose.xlu2.b32.start.end [1/1] (short) (narrow) %v2220_v21, 8 }
 0x34c   : > { %2253 = vxpose.xlu1.b32.start.end [1/1] (short) (narrow) %v2096_v63, 8 }
 0x34e   : > { %2573 = vxpose.xlu0.b32.start.end [1/1] (short) (narrow) %v2212_v25, 8  ;;  %v3839_v48 = vpop.eup %3358 }
 0x34f   : > { %v3841_v58 = vpop.eup %3360  ;;  %v1706_v59 = vsel %vm1690_vm2, %v3839_v48, 0.0 }
 0x350   : > { %v1703_v60 = vsel %vm1690_vm2, %v3841_v58, 0.0 }
 0x352   : > { %2669 = vxpose.xlu2.b32.start.end [1/1] (short) (narrow) %v2218_v38, 8 }
 0x354   : > { %2221 = vxpose.xlu1.b32.start.end [1/1] (short) (narrow) %v2094_v49, 8 }
 0x35a   : > { %2605 = vxpose.xlu2.b32.start.end [1/1] (short) (narrow) %v2214_v45, 8 }
 0x35c   : > { %2637 = vxpose.xlu1.b32.start.end [1/1] (short) (narrow) %v2216_v55, 8 }
 0x3bc   : > { %1707 = vadd.xlane.f32.xlu1 %v1706_v59 }
 0x3bf   : > { %1704 = vadd.xlane.f32.xlu0 %v1703_v60 }
 0x3d3   : > { %v2333_v36 = vpop.trf.xlu2 }
 0x3d4   : > { %v2739_v7 = vrot.slane %v2333_v36, 4 }
 0x3db   : > { %v2301_v9 = vpop.trf.xlu2 }
 0x3dc   : > { %v2733_v29 = vrot.slane %v2301_v9, 4 }
 0x3e0   : > { %v2461_v11 = vpop.trf.xlu1 }
 0x3e1   : > { %v2751_v33 = vrot.slane %v2461_v11, 4 }
 0x3e2   : > { %v2397_v50 = vpop.trf.xlu0 }
 0x3e3   : > { %v2752_v27 = vsel %vm531_vm0, %v2751_v33, %v2397_v50  ;;  %v2717_v14 = vpop.trf.xlu2 }
 0x3e4   : > { %v2756_v28 = vperm.slane %v2752_v27, %v3503_v43 }
 0x3e8   : > { %2509 = vxpose.xlu0.b32.start.end [1/1] (short) (narrow) %v2208_v22, 8  ;;  %v2429_v4 = vpop.trf.xlu1  ;;  %v2763_v22 = vrot.slane %v2756_v28, 4 }
 0x3e9   : > { %v2745_v10 = vrot.slane %v2429_v4, 4 }
 0x3ea   : > { %v2365_v57 = vpop.trf.xlu0 }
 0x3eb   : > { %v2746_v34 = vsel %vm531_vm0, %v2745_v10, %v2365_v57  ;;  %v2685_v32 = vpop.trf.xlu2 }
 0x3ec   : > { %v2750_v12 = vperm.slane %v2746_v34, %v3503_v43  ;;  %v2785_v60 = vrot.slane %v2685_v32, 4 }
 0x3ee   : > { %v2764_v0 = vsel %vm531_vm0, %v2763_v22, %v2750_v12 }
 0x3ef   : > { %v2768_v25 = vperm.slane %v2764_v0, %v3519_v61 }
 0x3f0   : > { %2477 = vxpose.xlu0.b32.start.end [1/1] (short) (narrow) %v2206_v20, 8  ;;  %v2269_v35 = vpop.trf.xlu1 }
 0x3f1   : > { %v2740_v8 = vsel %vm531_vm0, %v2739_v7, %v2269_v35  ;;  %v2769_v45 = vrot.slane %v2768_v25, 4 }
 0x3f2   : > { %v3849_v5 = vpop.trf.xlu0  ;;  %v2744_v13 = vperm.slane %v2740_v8, %v3503_v43 }
 0x3f3   : > { %v2621_v11 = vpop.trf.xlu2  ;;  %v2779_v50 = vrot.slane %v3849_v5, 4 }
 0x3f4   : > { %v2757_v19 = vrot.slane %v2744_v13, 4 }
 0x3f6   : > { %2541 = vxpose.xlu1.b32.start.end [1/1] (short) (narrow) %v2210_v24, 8 }
 0x3f8   : > { %v2237_v62 = vpop.trf.xlu1 }
 0x3f9   : > { %v2734_v15 = vsel %vm531_vm0, %v2733_v29, %v2237_v62 }
 0x3fa   : > { %v2738_v16 = vperm.slane %v2734_v15, %v3503_v43 }
 0x3fc   : > { %v2758_v24 = vsel %vm531_vm0, %v2757_v19, %v2738_v16 }
 0x3fd   : > { %v2762_v37 = vperm.slane %v2758_v24, %v3519_v61 }
 0x3ff   : > { %v2771_v38 = vrot.slane %v2762_v37, 4  ;;  %v2770_v56 = vsel %vm531_vm0, %v2769_v45, %v2762_v37 }
 0x400   : > { %v3847_v2 = vpop.trf.xlu1 }
 0x401   : > { %v2772_v55 = vsel %vm531_vm0, %v2768_v25, %v2771_v38 }
 0x42f   : > { %v1708_v53 = vpop.xlane.xlu1 %1707 }
 0x430   : > { %3362 = vrcp.f32 %v1708_v53  ;;  %v1735_v20 = vand.u32 2147483648, %v1708_v53  ;;  %v1733_v21 = vand.u32 2147483647, %v1708_v53  ;;  %vm1729_vm4 = vweird.f32 %v1708_v53 }
 0x432   : > { %v1705_v18 = vpop.xlane.xlu0 %1704  ;;  %v1736_v3 = vor.u32 1.1754944e-38, %v1735_v20  ;;  %vm1734_vm7 = vcmp.eq.f32.partialorder %v1733_v21, 8.507059e+37 }
 0x433   : > { %3364 = vrcp.f32 %v1705_v18  ;;  %v1720_v39 = vand.u32 2147483648, %v1705_v18  ;;  %v1718_v41 = vand.u32 2147483647, %v1705_v18  ;;  %vm1714_vm8 = vweird.f32 %v1705_v18 }
 0x435   : > { %v1721_v51 = vor.u32 1.1754944e-38, %v1720_v39  ;;  %vm1719_vm10 = vcmp.eq.f32.partialorder %v1718_v41, 8.507059e+37 }
 0x436   : > { %v3363_v17 = vpop.eup %3362 }
 0x437   : > { %v1725_v23 = vmul.f32 %v3363_v17, %v1708_v53  ;;  %vm1730_vm3 = vweird.f32 %v3363_v17 }
 0x438   : > { %vm1731_vm5 = vmor %vm1729_vm4, %vm1730_vm3 }
 0x439   : > { %v3365_v26 = vpop.eup %3364  ;;  %v1726_v30 = vsub.f32 1.0, %v1725_v23 }
 0x43a   : > { %v1710_v44 = vmul.f32 %v3365_v26, %v1705_v18  ;;  %vm1715_vm6 = vweird.f32 %v3365_v26 }
 0x43b   : > { %v1727_v31 = vmul.f32 %v3363_v17, %v1726_v30  ;;  %vm1716_vm9 = vmor %vm1714_vm8, %vm1715_vm6 }
 0x43c   : > { %v1711_v1 = vsub.f32 1.0, %v1710_v44 }
 0x43d   : > { %v1728_v63 = vadd.f32 %v3363_v17, %v1727_v31 }
 0x43e   : > { %v1712_v40 = vmul.f32 %v3365_v26, %v1711_v1 }
 0x43f   : > { %v1732_v42 = vsel %vm1731_vm5, %v3363_v17, %v1728_v63 }
 0x440   : > { %v1737_v46 = vsel %vm1734_vm7, %v1736_v3, %v1732_v42  ;;  %v1713_v47 = vadd.f32 %v3365_v26, %v1712_v40 }
 0x441   : > { %v1740_v49 = vmul.f32 %v3839_v48, %v1737_v46  ;;  %v2791_v48 = vrot.slane %v2717_v14, 4 }
 0x442   : > { %v1717_v52 = vsel %vm1716_vm9, %v3365_v26, %v1713_v47 }
 0x443   : > { %3203 = vmatpush.xpose.msk.msra.mxu3 %vm1690_vm2, %v1740_v49  ;;  %v1722_v6 = vsel %vm1719_vm10, %v1721_v51, %v1717_v52  ;;  %v2792_v59 = vsel %vm531_vm0, %v2791_v48, %v3847_v2 }
 0x444   : > { %v1739_v54 = vmul.f32 %v3841_v58, %v1722_v6  ;;  %v2796_v4 = vperm.slane %v2792_v59, %v3503_v43  ;;  %v2786_v58 = vsel %vm531_vm0, %v2785_v60, %v2621_v11 }
 0x445   : > { %v2790_v57 = vperm.slane %v2786_v58, %v3503_v43 }
 0x446   : > { %3200 = vmatpush.xpose.msk.msra.mxu2 %vm1690_vm2, %v1739_v54  ;;  %3204 = vmatmul.msk.f32.vlgmr.msra.gmra.mxu3 %vm1690_vm2, %v2772_v55  ;;  %v2803_v62 = vrot.slane %v2796_v4, 4 }
 0x448   : > { %v2804_v7 = vsel %vm531_vm0, %v2803_v62, %v2790_v57 }
 0x449   : > { %3201 = vmatmul.msk.f32.vlgmr.msra.gmra.mxu2 %vm1690_vm2, %v2770_v56  ;;  %v2808_v27 = vperm.slane %v2804_v7, %v3519_v61 }
 0x44b   : > { %v2809_v15 = vrot.slane %v2808_v27, 4 }
 0x48c   : > { %v2525_v35 = vpop.trf.xlu0 }
 0x48d   : > { %v2780_v36 = vsel %vm531_vm0, %v2779_v50, %v2525_v35 }
 0x48e   : > { %v2784_v33 = vperm.slane %v2780_v36, %v3503_v43 }
 0x490   : > { %v2797_v53 = vrot.slane %v2784_v33, 4 }
 0x494   : > { %v2493_v2 = vpop.trf.xlu0 }
 0x49a   : > { %v2557_v8 = vpop.trf.xlu1 }
 0x49b   : > { %v2773_v9 = vrot.slane %v2557_v8, 4 }
 0x49d   : > { %v2774_v10 = vsel %vm531_vm0, %v2773_v9, %v2493_v2 }
 0x49e   : > { %v2778_v29 = vperm.slane %v2774_v10, %v3503_v43 }
 0x4a0   : > { %v2798_v5 = vsel %vm531_vm0, %v2797_v53, %v2778_v29 }
 0x4a1   : > { %v2802_v13 = vperm.slane %v2798_v5, %v3519_v61 }
 0x4a3   : > { %v2810_v28 = vsel %vm531_vm0, %v2809_v15, %v2802_v13  ;;  %v2811_v18 = vrot.slane %v2802_v13, 4 }
 0x4a4   : > { %3202 = vmatmul.msk.f32.gmra.mxu2 %vm1690_vm2, %v2810_v28 }
 0x4a5   : > { %v2812_v34 = vsel %vm531_vm0, %v2808_v27, %v2811_v18 }
 0x4a6   : > { %3205 = vmatmul.msk.f32.gmra.mxu3 %vm1690_vm2, %v2812_v34 }
 0x4c9   : > { %v2871_v19 = vpop.f32.mrf.mxu3 }
 0x4ca   : > { %2909 = vxpose.xlu2.b32.start [1/2] (short) (narrow) %v2871_v19, 8 }
 0x4cc   : > { %v2839_v16 = vpop.f32.mrf.mxu2 }
 0x4cd   : > { %2877 = vxpose.xlu1.b32.start [1/2] (short) (narrow) %v2839_v16, 8 }
 0x527   : > { %v2842_v17 = vpop.f32.mrf.mxu2 }
 0x528   : > { %2878 = vxpose.xlu1.b32.end [2/2] (short) (narrow) %v2842_v17, 8 }
 0x529   : > { %v2874_v22 = vpop.f32.mrf.mxu3 }
 0x52a   : > { %2910 = vxpose.xlu2.b32.end [2/2] (short) (narrow) %v2874_v22, 8 }
 0x5bb   : > { %v2925_v12 = vpop.trf.xlu2 }
 0x5bc   : > { %v2951_v23 = vrot.slane %v2925_v12, 4  ;;  %v2956_v26 = vperm.slane %v2925_v12, %v3503_v43 }
 0x5be   : > { %v2952_v24 = vsel %vm531_vm0, 0.0, %v2951_v23  ;;  %v2961_v44 = vrot.slane %v2956_v26, 4 }
 0x5bf   : > { %v2960_v30 = vperm.slane %v2952_v24, %v3503_v43 }
 0x5c1   : > { %v2973_v21 = vrot.slane %v2960_v30, 4 }
 0x5c4   : > { %v2893_v20 = vpop.trf.xlu1 }
 0x5c5   : > { %v2941_v0 = vrot.slane %v2893_v20, 4  ;;  %v2946_v31 = vperm.slane %v2893_v20, %v3503_v43 }
 0x5c7   : > { %v2942_v37 = vsel %vm531_vm0, 0.0, %v2941_v0  ;;  %v2962_v1 = vsel %vm531_vm0, %v2961_v44, %v2946_v31  ;;  %v2963_v63 = vrot.slane %v2946_v31, 4 }
 0x5c8   : > { %v2950_v39 = vperm.slane %v2942_v37, %v3503_v43  ;;  %v2968_v25 = vperm.slane %v2962_v1, %v3519_v61 }
 0x5c9   : > { %v2964_v40 = vsel %vm531_vm0, %v2956_v26, %v2963_v63 }
 0x5ca   : > { %v2972_v3 = vperm.slane %v2964_v40, %v3519_v61  ;;  %v2974_v41 = vsel %vm531_vm0, %v2973_v21, %v2950_v39  ;;  %v2975_v42 = vrot.slane %v2950_v39, 4  ;;  %v2985_v47 = vrot.slane %v2968_v25, 4 }
 0x5cb   : > { %v2980_v38 = vperm.slane %v2974_v41, %v3519_v61 }
 0x5cc   : > { %v2976_v46 = vsel %vm531_vm0, %v2960_v30, %v2975_v42  ;;  %v2987_v49 = vrot.slane %v2972_v3, 4  ;;  %v2986_v54 = vsel %vm531_vm0, 0.0, %v2985_v47 }
 0x5cd   : > { %v2984_v51 = vperm.slane %v2976_v46, %v3519_v61  ;;  %v2989_v45 = vrot.slane %v2980_v38, 4 }
 0x5ce   : > { %v2988_v52 = vsel %vm531_vm0, 0.0, %v2987_v49  ;;  %v2993_v14 = vsel %vm531_vm0, %v2987_v49, %v2968_v25 }
 0x5cf   : > { %v2991_v6 = vrot.slane %v2984_v51, 4  ;;  %v2998_v55 = vrot.slane %v2988_v52, 4  ;;  %v2990_v60 = vsel %vm531_vm0, 0.0, %v2989_v45  ;;  %v2997_v11 = vperm.slane %v2993_v14, %v3503_v43 }
 0x5d1   : > { %v2992_v56 = vsel %vm531_vm0, 0.0, %v2991_v6  ;;  %v2999_v32 = vsel %vm531_vm0, %v2998_v55, %v2986_v54  ;;  %v3004_v4 = vsel %vm531_vm0, %v2991_v6, %v2980_v38 }
 0x5d2   : > { %v3003_v48 = vperm.slane %v2999_v32, %v3503_v43  ;;  %v3009_v59 = vrot.slane %v2992_v56, 4  ;;  %v3008_v57 = vperm.slane %v3004_v4, %v3503_v43 }
 0x5d4   : > { %v3010_v35 = vsel %vm531_vm0, %v3009_v59, %v2990_v60  ;;  %v3015_v58 = vrot.slane %v3003_v48, 4 }
 0x5d5   : > { %v3014_v50 = vperm.slane %v3010_v35, %v3503_v43 }
 0x5d6   : > { %v3016_v62 = vsel %vm531_vm0, %v3015_v58, %v2997_v11 }
 0x5d7   : > { %v3020_v36 = vperm.slane %v3016_v62, %v3519_v61  ;;  %v3021_v7 = vrot.slane %v3014_v50, 4 }
 0x5d9   : > { %v3022_v33 = vsel %vm531_vm0, %v3021_v7, %v3008_v57  ;;  %v3029_v8 = vrot.slane %v3020_v36, 4 }
 0x5da   : > { %v3026_v2 = vperm.slane %v3022_v33, %v3519_v61 }
 0x5dc   : > { %v3030_v9 = vsel %vm531_vm0, %v3026_v2, %v3029_v8  ;;  %v3027_v10 = vrot.slane %v3026_v2, 4 }
 0x5dd   : > { %3032 = vrot.lane.b32.xlu0 %v3030_v9, %s3408_s10 }
 0x5de   : > { %v3028_v27 = vsel %vm531_vm0, %v3027_v10, %v3020_v36 }
 0x64f   : > { %v3033_v43 = vpop.permute.xlu0 %3032 }
 0x650   : > { %v3035_v53 = vsel %vm1643_vm1, %v3028_v27, %v3033_v43 }
 0x651   : > { %3037 = vst.msk [vmem:[%s493_s14] sm:$0xff] %vm3036_vm11, %v3035_v53 }
 0x652 PF: > { %s14_s19 = sadd.s32 1, %s3404_s19   ;;  %s3947_s15 = smov %s3392_s16 }
 0x653   : > { %p11_p10 = scmp.ge.s32.totalorder %s14_s19, 4   ;;  %s3948_s16 = smov %s3473_s24 }
 0x654   : > { %s3949_s17 = smov %s3400_s18  ;;  %s3950_s18 = smov %s3952_s20 }
 0x655   :  { %13 = sbr.rel (!%p11_p10) target bundleno = 3 (0x3), region = 213 }

// kernel: fuse_bert_forward.21
= control target key start
LH: loop header
LB: loop body
LE: loop exit
PB: predicated region body
PF: predicated region fallthrough
CT: control target
= control target key end

     0   :  { %vm28_vm0 = vcmask 261120   ;;  %v226_v2 = vmov 0.0   ;;  %s324_s0 = inlined_call_operand.vmem [shape: f32[16,64], index: 0, kind: input, shape index: {}]   ;;  %s325_s1 = inlined_call_operand.vmem [shape: f32[64,32], index: 1, kind: input, shape index: {}]   ;;  %s326_s2 = inlined_call_operand.vmem [shape: f32[1,32], index: 2, kind: input, shape index: {}]   ;;  %s327_s3 = inlined_call_operand.vmem [shape: f32[16,32], index: 3, kind: input, shape index: {}]   ;;  %s328_s4 = inlined_call_operand.vmem [shape: f32[1,32], index: 4, kind: input, shape index: {}]   ;;  %s329_s5 = inlined_call_operand.vmem [shape: f32[1,32], index: 5, kind: input, shape index: {}]   ;;  %s330_s6 = inlined_call_operand.hbm [shape: f32[16,32], index: 6, kind: output, shape index: {}]  }
   0x1   :  { %v42_v0 = vld [vmem:[%s325_s1 + $0x38] sm:$0xff]  ;;  %v41_v1 = vld [vmem:[%s325_s1 + $0x30] sm:$0xff]  ;;  %29 = vst.msk [vmem:[#allocation2] sm:$0xff] %vm28_vm0, %v226_v2  ;;  %v40_v3 = vld [vmem:[%s325_s1 + $0x28] sm:$0xff] }
   0x2   :  { %58 = vmatpush.msra.mxu0 %v42_v0  ;;  %178 = vmatpush.msra.mxu1 %v42_v0  ;;  %30 = vst.msk [vmem:[#allocation2 + $0x8] sm:$0xff] %vm28_vm0, %v226_v2  ;;  %v39_v4 = vld [vmem:[%s325_s1 + $0x20] sm:$0xff] }
   0x4   :  { %59 = vmatpush.msra.mxu0 %v41_v1  ;;  %179 = vmatpush.msra.mxu1 %v41_v1 }
   0x5   :  { %11 = vsyncpa [#allocation4], 0  ;;  %v38_v5 = vld [vmem:[%s325_s1 + $0x18] sm:$0xff]  ;;  %v37_v6 = vld [vmem:[%s325_s1 + $0x10] sm:$0xff]  ;;  %vm43_vm1 = vcmask 523264   ;;  %v227_v28 = vmov 32.0  }
   0x6   :  { %60 = vmatpush.msra.mxu0 %v40_v3  ;;  %180 = vmatpush.msra.mxu1 %v40_v3  ;;  %v36_v7 = vld [vmem:[%s325_s1 + $0x8] sm:$0xff]  ;;  %v35_v8 = vld [vmem:[%s325_s1] sm:$0xff]  ;;  %194 = vrcp.f32 %v227_v28  ;;  %s164_s26 = sshll.u32 %s330_s6, 4  ;;  %s230_s27 = smov 8   ;;  %s165_s26 = int_to_ptr.hbm [resolvable:$true] %s164_s26 }
   0x7   :  { %v33_v9 = vld [vmem:[%s324_s0] sm:$0xff]  ;;  %v34_v10 = vld [vmem:[%s324_s0 + $0x8] sm:$0xff] }
   0x8   :  { %61 = vmatpush.msra.mxu0 %v39_v4  ;;  %181 = vmatpush.msra.mxu1 %v39_v4  ;;  %v31_v11 = vld [vmem:[#allocation2] sm:$0xff]  ;;  %v90_v24 = vld [vmem:[%s327_s3 + $0x8] sm:$0xff] }
   0x9   :  { %v32_v12 = vld [vmem:[#allocation2 + $0x8] sm:$0xff]  ;;  %v191_v17 = vld [vmem:[%s326_s2] ss:$0 sm:$0xff] }
   0xa   :  { %62 = vmatpush.msra.mxu0 %v38_v5  ;;  %182 = vmatpush.msra.mxu1 %v38_v5  ;;  %v89_v19 = vld [vmem:[%s327_s3] sm:$0xff] }
   0xb   :  { %v192_v59 = vld [vmem:[%s328_s4] ss:$0 sm:$0xff]  ;;  %s228_s4 = smov [#allocation3]  }
   0xc   :  { %63 = vmatpush.msra.mxu0 %v37_v6  ;;  %183 = vmatpush.msra.mxu1 %v37_v6  ;;  %v195_v29 = vpop.eup %194  ;;  %v193_v63 = vld [vmem:[%s329_s5] ss:$0 sm:$0xff]  ;;  %s162_s23 = sshll.u32 %s228_s4, 4  ;;  %s229_s5 = smov 128   ;;  %s163_s23 = int_to_ptr.vmem [resolvable:$true] %s162_s23 }
   0xd   :  { %v102_v30 = vmul.f32 32.0, %v195_v29  ;;  %vm106_vm2 = vweird.f32 %v195_v29 }
   0xe   :  { %64 = vmatpush.msra.mxu0 %v36_v7  ;;  %184 = vmatpush.msra.mxu1 %v36_v7 }
   0xf   :  { %v103_v31 = vsub.f32 1.0, %v102_v30 }
  0x10   :  { %65 = vmatpush.msra.mxu0 %v35_v8  ;;  %185 = vmatpush.msra.mxu1 %v35_v8 }
  0x11   :  { %176 = vmatmul.msk.f32.vlgmr.msra.gmra.mxu0 %vm43_vm1, %v33_v9  ;;  %177 = vmatmul.msk.f32.vlgmr.msra.gmra.mxu1 %vm43_vm1, %v34_v10  ;;  %v104_v32 = vmul.f32 %v195_v29, %v103_v31 }
  0x13   :  { %v105_v33 = vadd.f32 %v195_v29, %v104_v32 }
  0x15   :  { %v107_v34 = vsel %vm106_vm2, %v195_v29, %v105_v33 }
  0x8e   :  { %v67_v13 = vpop.f32.mrf.mxu0  ;;  %v70_v14 = vpop.f32.mrf.mxu1 }
  0x8f   :  { %v73_v15 = vadd.f32 %v67_v13, %v31_v11  ;;  %v74_v16 = vadd.f32 %v70_v14, %v32_v12 }
  0x91   :  { %76 = vst.msk [vmem:[#allocation2] sm:$0xff] %vm28_vm0, %v73_v15 }
  0x92   :  { %77 = vst.msk [vmem:[#allocation2 + $0x8] sm:$0xff] %vm28_vm0, %v74_v16 }
  0x98   :  { %v81_v18 = vld [vmem:[#allocation2] sm:$0xff] }
  0x99   :  { %v87_v20 = vadd.f32 %v191_v17, %v81_v18  ;;  %v82_v21 = vld [vmem:[#allocation2 + $0x8] sm:$0xff] }
  0x9a   :  { %v88_v23 = vadd.f32 %v191_v17, %v82_v21 }
  0x9b   :  { %v91_v22 = vadd.f32 %v89_v19, %v87_v20 }
  0x9c   :  { %v92_v26 = vadd.f32 %v90_v24, %v88_v23 }
  0x9d   :  { %v95_v25 = vsel %vm28_vm0, %v91_v22, 0.0 }
  0x9e   :  { %96 = vadd.xlane.f32.xlu0 %v95_v25  ;;  %v98_v27 = vsel %vm28_vm0, %v92_v26, 0.0 }
  0xa6   :  { %99 = vadd.xlane.f32.xlu0 %v98_v27 }
 0x111   :  { %v97_v35 = vpop.xlane.xlu0 %96 }
 0x112   :  { %v108_v36 = vmul.f32 %v107_v34, %v97_v35 }
 0x114   :  { %v110_v37 = vsub.f32 %v91_v22, %v108_v36 }
 0x116   :  { %v112_v38 = vmul.f32 %v110_v37, %v110_v37 }
 0x118   :  { %v114_v39 = vsel %vm28_vm0, %v112_v38, 0.0 }
 0x119   :  { %115 = vadd.xlane.f32.xlu1 %v114_v39  ;;  %v100_v40 = vpop.xlane.xlu0 %99 }
 0x11a   :  { %v109_v41 = vmul.f32 %v107_v34, %v100_v40 }
 0x11c   :  { %v111_v42 = vsub.f32 %v92_v26, %v109_v41 }
 0x11e   :  { %v113_v43 = vmul.f32 %v111_v42, %v111_v42 }
 0x120   :  { %v117_v44 = vsel %vm28_vm0, %v113_v43, 0.0 }
 0x121   :  { %118 = vadd.xlane.f32.xlu1 %v117_v44 }
 0x18c   :  { %v116_v45 = vpop.xlane.xlu1 %115 }
 0x18d   :  { %v120_v46 = vmul.f32 %v116_v45, %v107_v34 }
 0x18f   :  { %v122_v47 = vadd.f32 1e-12, %v120_v46 }
 0x191   :  { %196 = vrsqrt.f32 %v122_v47  ;;  %vm130_vm4 = vweird.f32 %v122_v47 }
 0x194   :  { %v119_v48 = vpop.xlane.xlu1 %118 }
 0x195   :  { %v121_v49 = vmul.f32 %v119_v48, %v107_v34 }
 0x197   :  { %v197_v50 = vpop.eup %196  ;;  %v123_v51 = vadd.f32 1e-12, %v121_v49 }
 0x198   :  { %v125_v52 = vmul.f32 %v197_v50, %v122_v47  ;;  %vm131_vm3 = vweird.f32 %v197_v50 }
 0x199   :  { %198 = vrsqrt.f32 %v123_v51  ;;  %vm132_vm5 = vmor %vm130_vm4, %vm131_vm3  ;;  %vm140_vm7 = vweird.f32 %v123_v51 }
 0x19a   :  { %v126_v53 = vmul.f32 %v197_v50, %v125_v52 }
 0x19c   :  { %v127_v54 = vmul.f32 0.5, %v126_v53 }
 0x19e   :  { %v128_v55 = vsub.f32 1.5, %v127_v54 }
 0x19f   :  { %v199_v56 = vpop.eup %198 }
 0x1a0   :  { %v129_v57 = vmul.f32 %v197_v50, %v128_v55  ;;  %v135_v58 = vmul.f32 %v199_v56, %v123_v51  ;;  %vm141_vm6 = vweird.f32 %v199_v56 }
 0x1a1   :  { %vm142_vm8 = vmor %vm140_vm7, %vm141_vm6 }
 0x1a2   :  { %v133_v60 = vsel %vm132_vm5, %v197_v50, %v129_v57  ;;  %v136_v61 = vmul.f32 %v199_v56, %v135_v58 }
 0x1a3   :  { %v144_v62 = vmul.f32 %v133_v60, %v110_v37 }
 0x1a4   :  { %v137_v0 = vmul.f32 0.5, %v136_v61 }
 0x1a5   :  { %v149_v1 = vmul.f32 %v192_v59, %v144_v62 }
 0x1a6   :  { %v138_v2 = vsub.f32 1.5, %v137_v0 }
 0x1a7   :  { %v154_v3 = vadd.f32 %v193_v63, %v149_v1 }
 0x1a8   :  { %v139_v4 = vmul.f32 %v199_v56, %v138_v2 }
 0x1a9   :  { %156 = vst.msk [vmem:[#allocation3] sm:$0xff] %vm28_vm0, %v154_v3 }
 0x1aa   :  { %v143_v5 = vsel %vm142_vm8, %v199_v56, %v139_v4 }
 0x1ab   :  { %v145_v6 = vmul.f32 %v143_v5, %v111_v42 }
 0x1ad   :  { %v150_v7 = vmul.f32 %v192_v59, %v145_v6 }
 0x1af   :  { %v155_v8 = vadd.f32 %v193_v63, %v150_v7 }
 0x1b1   :  { %157 = vst.msk [vmem:[#allocation3 + $0x8] sm:$0xff] %vm28_vm0, %v155_v8 }
 0x1b2   :  { %170 = dma.vmem_to_hbm [thread:$0]  %s163_s23, 256, %s165_s26, [#allocation4], %s229_s5, %s229_s5, %s230_s27  }
 0x1b3   :  { %224 = dma.done.wait [#allocation4], 256  }
 0x1b4   :  { %225 = vsyncadd [#allocation4], 4294967040 }
 0x1b5   :  { %175 = vsyncpa [#allocation4], 1 }

</bundles_post_ra>
